<compile_context>
chip_gen: v6e
topology: v6e:2x2x1
jax: 0.10.0
libtpu: 0.0.40
codegen_flags: <defaults>
</compile_context>

<pallas_src>
import functools

import jax
import jax.numpy as jnp
from jax import lax
from jax.experimental import pallas as pl
from jax.experimental.pallas import tpu as pltpu


def _round_up(x, m):
    return (x + m - 1) // m * m


def _pad_gate_cols(w, H, Hp):
    """(..., 4H) -> (..., 4Hp): gate block g lands at columns [g*Hp, g*Hp+H)."""
    w4 = w.reshape(w.shape[:-1] + (4, H))
    pad = [(0, 0)] * (w4.ndim - 1) + [(0, Hp - H)]
    return jnp.pad(w4, pad).reshape(w.shape[:-1] + (4 * Hp,))


def _tensorcores_per_chip():
    """Best-effort detection of TensorCores per chip (v7x has 2)."""
    try:
        kind = jax.devices()[0].device_kind.lower()
        return 2 if ("v7" in kind or "tpu7" in kind) else 1
    except Exception:
        return 1


def _sigmoid(x):
    # sigmoid(x) = 0.5*tanh(0.5*x) + 0.5  -> single EUP op instead of exp + divide.
    return 0.5 * jnp.tanh(0.5 * x) + 0.5


# ---------------------------------------------------------------------------
# Pallas kernel: one grid step == `chunk` LSTM timesteps for one batch tile.
# grid = (batch_tiles, time_chunks); time is innermost and sequential
# ("arbitrary"), batch is "parallel".  h/c carry lives in VMEM scratch.
# ---------------------------------------------------------------------------
def _lstm_kernel(x_ref, wih_ref, whh_ref, bias_ref, h0_ref, c0_ref, hT_ref,
                 h_sc, c_sc, xg_sc, *, hidden_pad, batch_tile, chunk, seq_len,
                 needs_mask, unroll, proj_on_vpu):
    t = pl.program_id(1)
    Hp = hidden_pad
    Bt = batch_tile

    @pl.when(t == 0)
    def _():
        h_sc[...] = h0_ref[...]
        c_sc[...] = c0_ref[...]

    whh = whh_ref[...]                        # resident (Hp, 4Hp), bf16 or f32
    mxu_dtype = whh.dtype

    # --- whole-chunk input projection, hoisted off the per-step critical path ---
    xc = x_ref[0]                             # raw (chunk*Bt, D) slab
    if proj_on_vpu:
        # D is tiny: D broadcast-MACs on the VPU beat an MXU GEMM with K=D<<256.
        xcf = xc.astype(jnp.float32)
        wih = wih_ref[...].astype(jnp.float32)
        xg = bias_ref[...]                    # (1, 4Hp); broadcasts on first add
        for d in range(xc.shape[-1]):
            xg = xg + xcf[:, d:d + 1] * wih[d:d + 1, :]
        xg_sc[...] = xg
    else:
        xg_sc[...] = bias_ref[...] + jnp.dot(
            xc.astype(mxu_dtype), wih_ref[...],
            preferred_element_type=jnp.float32)

    # --- serial recurrence over the chunk ---
    def step(s, carry):
        h, c = carry
        row = pl.multiple_of(s * Bt, 8)
        gates = xg_sc[pl.ds(row, Bt), :] + jnp.dot(
            h.astype(mxu_dtype), whh, preferred_element_type=jnp.float32)
        # lane-aligned gate blocks: each gate owns its own Hp-lane slot
        i_g = _sigmoid(gates[:, 0 * Hp:1 * Hp])
        f_g = _sigmoid(gates[:, 1 * Hp:2 * Hp])
        g_g = jnp.tanh(gates[:, 2 * Hp:3 * Hp])
        o_g = _sigmoid(gates[:, 3 * Hp:4 * Hp])
        # TODO(synk): on v6e/v7x the nonlinearities could run in bf16 (bf16 EUP);
        # kept f32 for portability/accuracy (v5e has no bf16 EUP).
        c_new = f_g * c + i_g * g_g           # cell / gate math stays f32
        h_new = o_g * jnp.tanh(c_new)
        if needs_mask:                        # padded tail timesteps keep old state
            valid = t * chunk + s < seq_len
            h_new = jnp.where(valid, h_new, h)
            c_new = jnp.where(valid, c_new, c)
        return h_new, c_new

    h, c = lax.fori_loop(0, chunk, step, (h_sc[...], c_sc[...]), unroll=unroll)
    h_sc[...] = h
    c_sc[...] = c

    @pl.when(t == pl.num_programs(1) - 1)
    def _():
        hT_ref[...] = h                       # lane-dense (Bt, Hp) output


def protein_lstm_forward(x, params, h0, c0, *, time_chunk=32, batch_tile=None,
                         mxu_dtype=jnp.bfloat16, unroll=8,
                         vmem_budget_bytes=40 * 1024 * 1024,
                         single_buffer_consts=False):
    """ProteinLSTM forward: single-layer LSTM over (B, T, D), then fc on h_T.

    x: (B, T, D) float32, or (B, T) when input_size == 1 (mirrors torch.unsqueeze).
    params = (W_ih, W_hh, b_ih, b_hh, W_fc, b_fc) with PyTorch nn.LSTM shapes.
    mxu_dtype: dtype of MXU operands (W_ih/W_hh and the h copy). bf16 is MXU-native
    on v5e/v6e/v7x; pass jnp.float32 for bit-accurate checks. State stays f32.
    """
    W_ih, W_hh, b_ih, b_hh, W_fc, b_fc = params

    if x.ndim == 2:     # mirrors `if self.input_size == 1: x = unsqueeze(x, 2)`
        x = x[:, :, None]
    x = x.astype(jnp.float32)
    B, T, D = x.shape
    H = W_hh.shape[1]

    Hp = _round_up(H, 128)            # lane-aligned per-gate width
    Bp = _round_up(B, 8)              # sublane-aligned batch

    # Batch tiling: split across TensorCores only when each tile stays MXU-wide.
    if batch_tile is None:
        if _tensorcores_per_chip() >= 2 and Bp >= 512 and Bp % 16 == 0:
            Bt = Bp // 2              # v7x: 2 "parallel" batch tiles, one per TC
        else:
            Bt = Bp                   # v5e/v6e: keep the MXU M dimension maximal
    else:
        Bt = _round_up(min(batch_tile, Bp), 8)
        if Bp % Bt != 0:
            Bt = Bp
    n_bt = Bp // Bt

    # Time chunking: budget the per-chunk VMEM working set explicitly.
    dsz = jnp.dtype(mxu_dtype).itemsize
    nbuf_const = 1 if single_buffer_consts else 2
    resident = nbuf_const * (Hp * 4 * Hp * dsz       # W_hh^T
                             + D * 4 * Hp * dsz      # W_ih^T
                             + 4 * Hp * 4)           # fused bias
    io_state = (2 * 2 * Bt * Hp * 4                  # h0, c0 (double-buffered)
                + 2 * Bt * Hp * 4)                   # hT out (double-buffered)
    scratch_hc = 2 * Bt * Hp * 4
    per_step = Bt * 4 * Hp * 4 + 2 * Bt * D * 4      # xg scratch + x slab (2 bufs)
    avail = vmem_budget_bytes - resident - io_state - scratch_hc
    tc_cap = max(1, avail // per_step)
    tc = int(max(1, min(time_chunk, T, tc_cap)))
    Tp = _round_up(T, tc)
    needs_mask = Tp != T
    unroll_eff = int(max(1, min(unroll, tc)))

    need = resident + io_state + scratch_hc + tc * per_step
    # Explicit scoped-VMEM limit (v5e defaults to 16 MiB; v7x has 64 MiB physical).
    vmem_limit = int(min(max(need + (16 << 20), 32 << 20), 56 << 20))

    # --- one-time parameter prep (glue) ---
    wih_p = _pad_gate_cols(W_ih.T.astype(jnp.float32), H, Hp).astype(mxu_dtype)  # (D, 4Hp)
    whh_p = _pad_gate_cols(W_hh.T.astype(jnp.float32), H, Hp)                    # (H, 4Hp)
    whh_p = jnp.pad(whh_p, ((0, Hp - H), (0, 0))).astype(mxu_dtype)              # (Hp, 4Hp)
    bias_p = _pad_gate_cols((b_ih + b_hh).astype(jnp.float32)[None, :], H, Hp)   # (1, 4Hp)

    # Raw x, padded first (no expanded tensor is ever materialized in HBM), then
    # laid out time-major and grouped by batch tile: (n_bt, Tp*Bt, D).
    x_p = jnp.pad(x, ((0, Bp - B), (0, Tp - T), (0, 0)))            # (Bp, Tp, D)
    x_tm = jnp.transpose(x_p, (1, 0, 2))                            # (Tp, Bp, D)
    x_g = (x_tm.reshape(Tp, n_bt, Bt, D)
                .transpose(1, 0, 2, 3)
                .reshape(n_bt, Tp * Bt, D))

    h0p = jnp.pad(h0.astype(jnp.float32), ((0, Bp - B), (0, Hp - H)))   # (Bp, Hp)
    c0p = jnp.pad(c0.astype(jnp.float32), ((0, Bp - B), (0, Hp - H)))

    def _const_spec(shape):
        # Resident (constant index-map) inputs.
        # TODO(synk): on v7x with large H, set single_buffer_consts=True so the
        # resident W_hh is not double-buffered under the 64 MiB physical VMEM.
        if single_buffer_consts:
            return pl.BlockSpec(shape, lambda b, t: (0, 0),
                                pipeline_mode=pl.Buffered(1))
        return pl.BlockSpec(shape, lambda b, t: (0, 0))

    # TODO(synk): only n_layers=1 (the module default) is implemented; multi-layer
    # would chain this kernel once per layer.

    grid = (n_bt, Tp // tc)   # (batch tiles: parallel, time chunks: sequential)

    hT = pl.pallas_call(
        functools.partial(_lstm_kernel, hidden_pad=Hp, batch_tile=Bt, chunk=tc,
                          seq_len=T, needs_mask=needs_mask, unroll=unroll_eff,
                          proj_on_vpu=(D <= 8)),
        out_shape=jax.ShapeDtypeStruct((Bp, Hp), jnp.float32),
        grid_spec=pltpu.PrefetchScalarGridSpec(
            num_scalar_prefetch=0,
            grid=grid,
            in_specs=[
                pl.BlockSpec((1, tc * Bt, D), lambda b, t: (b, t, 0)),  # raw x slab
                _const_spec((D, 4 * Hp)),                               # W_ih^T
                _const_spec((Hp, 4 * Hp)),                              # W_hh^T
                _const_spec((1, 4 * Hp)),                               # fused bias
                pl.BlockSpec((Bt, Hp), lambda b, t: (b, 0)),            # h0 tile
                pl.BlockSpec((Bt, Hp), lambda b, t: (b, 0)),            # c0 tile
            ],
            out_specs=pl.BlockSpec((Bt, Hp), lambda b, t: (b, 0)),      # h_T tile
            scratch_shapes=[
                pltpu.VMEM((Bt, Hp), jnp.float32),            # h carry
                pltpu.VMEM((Bt, Hp), jnp.float32),            # c carry
                pltpu.VMEM((tc * Bt, 4 * Hp), jnp.float32),   # chunk pre-activations
            ],
        ),
        compiler_params=pltpu.CompilerParams(
            dimension_semantics=("parallel", "arbitrary"),
            vmem_limit_bytes=vmem_limit),
    )(x_g, wih_p, whh_p, bias_p, h0p, c0p)

    # fc stays in the wrapper so the kernel output is a lane-dense (Bp, Hp) slab.
    h_last = hT[:B, :H]
    return h_last @ W_fc.T.astype(jnp.float32) + b_fc.astype(jnp.float32)


# ---------------------------------------------------------------------------
# Pure-JAX reference (PyTorch LSTM semantics) for correctness check.
# ---------------------------------------------------------------------------
def protein_lstm_ref(x, params, h0, c0):
    W_ih, W_hh, b_ih, b_hh, W_fc, b_fc = params
    if x.ndim == 2:
        x = x[:, :, None]
    B, T, D = x.shape
    H = h0.shape[1]
    h, c = h0, c0
    for t in range(T):
        gates = x[:, t, :] @ W_ih.T + b_ih + h @ W_hh.T + b_hh
        i = jax.nn.sigmoid(gates[:, :H])
        f = jax.nn.sigmoid(gates[:, H:2 * H])
        g = jnp.tanh(gates[:, 2 * H:3 * H])
        o = jax.nn.sigmoid(gates[:, 3 * H:])
        c = f * c + i * g
        h = o * jnp.tanh(c)
    return h @ W_fc.T + b_fc


def _make_params(key, d_in, hidden):
    k1, k2, k3, k4, k5, k6 = jax.random.split(key, 6)
    s = 1.0 / jnp.sqrt(jnp.float32(hidden))
    W_ih = jax.random.uniform(k1, (4 * hidden, d_in), jnp.float32, -s, s)
    W_hh = jax.random.uniform(k2, (4 * hidden, hidden), jnp.float32, -s, s)
    b_ih = jax.random.uniform(k3, (4 * hidden,), jnp.float32, -s, s)
    b_hh = jax.random.uniform(k4, (4 * hidden,), jnp.float32, -s, s)
    W_fc = jax.random.uniform(k5, (1, hidden), jnp.float32, -s, s)
    b_fc = jax.random.uniform(k6, (1,), jnp.float32, -s, s)
    return (W_ih, W_hh, b_ih, b_hh, W_fc, b_fc)


if __name__ == "__main__":
    B, T, H = 2, 8, 32
    key = jax.random.PRNGKey(0)
    kp4, kp1, kp16, kx, kh, kc = jax.random.split(key, 6)

    # h0/c0 mimic torch.rand (uniform [0,1)) but are deterministic here.
    h0 = jax.random.uniform(kh, (B, H), jnp.float32)
    c0 = jax.random.uniform(kc, (B, H), jnp.float32)

    # --- case 1: input_size=4 (tiny-D VPU projection path) ---
    params4 = _make_params(kp4, 4, H)
    x4 = jax.random.normal(kx, (B, T, 4), jnp.float32)
    ref4 = protein_lstm_ref(x4, params4, h0, c0)

    out_f32 = jax.block_until_ready(
        protein_lstm_forward(x4, params4, h0, c0, mxu_dtype=jnp.float32))
    assert out_f32.shape == (B, 1)
    assert jnp.allclose(out_f32, ref4, atol=1e-4, rtol=1e-4), (out_f32, ref4)

    # Default bf16 MXU-operand path: loose sanity bound.
    out_bf16 = jax.block_until_ready(protein_lstm_forward(x4, params4, h0, c0))
    assert out_bf16.shape == (B, 1)
    assert jnp.allclose(out_bf16, ref4, atol=1e-1), (out_bf16, ref4)

    # Awkward chunking: T=8 with time_chunk=3 -> padded T=9, tail step masked.
    out_mask = jax.block_until_ready(
        protein_lstm_forward(x4, params4, h0, c0, mxu_dtype=jnp.float32,
                             time_chunk=3))
    assert jnp.allclose(out_mask, ref4, atol=1e-4, rtol=1e-4), (out_mask, ref4)

    # --- case 2: input_size=1 with 2-D x (module's unsqueeze path) ---
    params1 = _make_params(kp1, 1, H)
    x1 = jax.random.normal(kx, (B, T), jnp.float32)
    ref1 = protein_lstm_ref(x1, params1, h0, c0)
    out1 = jax.block_until_ready(
        protein_lstm_forward(x1, params1, h0, c0, mxu_dtype=jnp.float32))
    assert jnp.allclose(out1, ref1, atol=1e-4, rtol=1e-4), (out1, ref1)

    # --- case 3: input_size=16 (MXU chunk-projection GEMM path) ---
    params16 = _make_params(kp16, 16, H)
    x16 = jax.random.normal(kx, (B, T, 16), jnp.float32)
    ref16 = protein_lstm_ref(x16, params16, h0, c0)
    out16 = jax.block_until_ready(
        protein_lstm_forward(x16, params16, h0, c0, mxu_dtype=jnp.float32))
    assert jnp.allclose(out16, ref16, atol=1e-4, rtol=1e-4), (out16, ref16)

    print("KERNEL_OK")
</pallas_src>

<mosaic_0001>
module attributes {stable_mosaic.version = 11 : i64} {
  func.func @_lstm_kernel(%arg0: i32, %arg1: i32, %arg2: memref<1x64x4xf32, #tpu.memory_space<vmem>>, %arg3: memref<4x512xf32, #tpu.memory_space<vmem>>, %arg4: memref<128x512xf32, #tpu.memory_space<vmem>>, %arg5: memref<1x512xf32, #tpu.memory_space<vmem>>, %arg6: memref<8x128xf32, #tpu.memory_space<vmem>>, %arg7: memref<8x128xf32, #tpu.memory_space<vmem>>, %arg8: memref<8x128xf32, #tpu.memory_space<vmem>>, %arg9: memref<8x128xf32, #tpu.memory_space<vmem>>, %arg10: memref<8x128xf32, #tpu.memory_space<vmem>>, %arg11: memref<64x512xf32, #tpu.memory_space<vmem>>) attributes {dimension_semantics = [#tpu.dimension_semantics<parallel>, #tpu.dimension_semantics<arbitrary>], iteration_bounds = array<i64: 1, 1>, scalar_prefetch = 0 : i64, scratch_operands = 3 : i64, tpu.core_type = #tpu.core_type<tc>, window_params = [{transform_indices = @transform_0, window_bounds = array<i64: 1, 64, 4>}, {pipeline_mode = #tpu.pipeline_mode<synchronous>, transform_indices = @transform_1, window_bounds = array<i64: 4, 512>}, {pipeline_mode = #tpu.pipeline_mode<synchronous>, transform_indices = @transform_2, window_bounds = array<i64: 128, 512>}, {pipeline_mode = #tpu.pipeline_mode<synchronous>, transform_indices = @transform_3, window_bounds = array<i64: 1, 512>}, {transform_indices = @transform_4, window_bounds = array<i64: 8, 128>}, {transform_indices = @transform_5, window_bounds = array<i64: 8, 128>}, {transform_indices = @transform_6, window_bounds = array<i64: 8, 128>}]} {
    %c0_i32 = arith.constant 0 : i32
    %0 = arith.cmpi eq, %arg1, %c0_i32 : i32
    %1 = arith.extui %0 : i1 to i32
    %c0_i32_0 = arith.constant 0 : i32
    %2 = arith.cmpi ne, %1, %c0_i32_0 : i32
    scf.if %2 {
      %c0_117 = arith.constant 0 : index
      %c0_118 = arith.constant 0 : index
      %337 = vector.load %arg6[%c0_117, %c0_118] : memref<8x128xf32, #tpu.memory_space<vmem>>, vector<8x128xf32>
      %c0_119 = arith.constant 0 : index
      %c0_120 = arith.constant 0 : index
      %338 = vector.load %arg9[%c0_119, %c0_120] : memref<8x128xf32, #tpu.memory_space<vmem>>, vector<8x128xf32>
      tpu.vector_store %arg9[%c0_119, %c0_120], %337 {strides = array<i32>} : memref<8x128xf32, #tpu.memory_space<vmem>>, vector<8x128xf32>,
      %c0_121 = arith.constant 0 : index
      %c0_122 = arith.constant 0 : index
      %339 = vector.load %arg7[%c0_121, %c0_122] : memref<8x128xf32, #tpu.memory_space<vmem>>, vector<8x128xf32>
      %c0_123 = arith.constant 0 : index
      %c0_124 = arith.constant 0 : index
      %340 = vector.load %arg10[%c0_123, %c0_124] : memref<8x128xf32, #tpu.memory_space<vmem>>, vector<8x128xf32>
      tpu.vector_store %arg10[%c0_123, %c0_124], %339 {strides = array<i32>} : memref<8x128xf32, #tpu.memory_space<vmem>>, vector<8x128xf32>,
    } else {
    }
    %c0 = arith.constant 0 : index
    %c0_1 = arith.constant 0 : index
    %3 = vector.load %arg4[%c0, %c0_1] : memref<128x512xf32, #tpu.memory_space<vmem>>, vector<128x512xf32>
    %c0_2 = arith.constant 0 : index
    %c0_3 = arith.constant 0 : index
    %c0_4 = arith.constant 0 : index
    %4 = vector.load %arg2[%c0_2, %c0_3, %c0_4] : memref<1x64x4xf32, #tpu.memory_space<vmem>>, vector<1x64x4xf32>
    %5 = vector.shape_cast %4 : vector<1x64x4xf32> to vector<64x4xf32>
    %c0_5 = arith.constant 0 : index
    %c0_6 = arith.constant 0 : index
    %6 = vector.load %arg3[%c0_5, %c0_6] : memref<4x512xf32, #tpu.memory_space<vmem>>, vector<4x512xf32>
    %c0_7 = arith.constant 0 : index
    %c0_8 = arith.constant 0 : index
    %7 = vector.load %arg5[%c0_7, %c0_8] : memref<1x512xf32, #tpu.memory_space<vmem>>, vector<1x512xf32>
    %8 = vector.extract_strided_slice %5 {offsets = [0, 0], sizes = [64, 1], strides = [1, 1]} : vector<64x4xf32> to vector<64x1xf32>
    %9 = vector.extract_strided_slice %6 {offsets = [0, 0], sizes = [1, 512], strides = [1, 1]} : vector<4x512xf32> to vector<1x512xf32>
    %10 = vector.broadcast %8 : vector<64x1xf32> to vector<64x512xf32>
    %11 = vector.broadcast %9 : vector<1x512xf32> to vector<64x512xf32>
    %12 = arith.mulf %10, %11 : vector<64x512xf32>
    %13 = vector.broadcast %7 : vector<1x512xf32> to vector<64x512xf32>
    %14 = arith.addf %13, %12 : vector<64x512xf32>
    %15 = vector.extract_strided_slice %5 {offsets = [0, 1], sizes = [64, 1], strides = [1, 1]} : vector<64x4xf32> to vector<64x1xf32>
    %16 = vector.extract_strided_slice %6 {offsets = [1, 0], sizes = [1, 512], strides = [1, 1]} : vector<4x512xf32> to vector<1x512xf32>
    %17 = vector.broadcast %15 : vector<64x1xf32> to vector<64x512xf32>
    %18 = vector.broadcast %16 : vector<1x512xf32> to vector<64x512xf32>
    %19 = arith.mulf %17, %18 : vector<64x512xf32>
    %20 = arith.addf %14, %19 : vector<64x512xf32>
    %21 = vector.extract_strided_slice %5 {offsets = [0, 2], sizes = [64, 1], strides = [1, 1]} : vector<64x4xf32> to vector<64x1xf32>
    %22 = vector.extract_strided_slice %6 {offsets = [2, 0], sizes = [1, 512], strides = [1, 1]} : vector<4x512xf32> to vector<1x512xf32>
    %23 = vector.broadcast %21 : vector<64x1xf32> to vector<64x512xf32>
    %24 = vector.broadcast %22 : vector<1x512xf32> to vector<64x512xf32>
    %25 = arith.mulf %23, %24 : vector<64x512xf32>
    %26 = arith.addf %20, %25 : vector<64x512xf32>
    %27 = vector.extract_strided_slice %5 {offsets = [0, 3], sizes = [64, 1], strides = [1, 1]} : vector<64x4xf32> to vector<64x1xf32>
    %28 = vector.extract_strided_slice %6 {offsets = [3, 0], sizes = [1, 512], strides = [1, 1]} : vector<4x512xf32> to vector<1x512xf32>
    %29 = vector.broadcast %27 : vector<64x1xf32> to vector<64x512xf32>
    %30 = vector.broadcast %28 : vector<1x512xf32> to vector<64x512xf32>
    %31 = arith.mulf %29, %30 : vector<64x512xf32>
    %32 = arith.addf %26, %31 : vector<64x512xf32>
    %c0_9 = arith.constant 0 : index
    %c0_10 = arith.constant 0 : index
    %33 = vector.load %arg11[%c0_9, %c0_10] : memref<64x512xf32, #tpu.memory_space<vmem>>, vector<64x512xf32>
    tpu.vector_store %arg11[%c0_9, %c0_10], %32 {strides = array<i32>} : memref<64x512xf32, #tpu.memory_space<vmem>>, vector<64x512xf32>,
    %c0_11 = arith.constant 0 : index
    %c0_12 = arith.constant 0 : index
    %34 = vector.load %arg9[%c0_11, %c0_12] : memref<8x128xf32, #tpu.memory_space<vmem>>, vector<8x128xf32>
    %c0_13 = arith.constant 0 : index
    %c0_14 = arith.constant 0 : index
    %35 = vector.load %arg10[%c0_13, %c0_14] : memref<8x128xf32, #tpu.memory_space<vmem>>, vector<8x128xf32>
    %c0_i32_15 = arith.constant 0 : i32
    %c8_i32 = arith.constant 8 : i32
    %36 = arith.muli %c0_i32_15, %c8_i32 : i32
    %37 = tpu.assume_multiple %36, 8 : i32
    %38 = arith.index_cast %37 : i32 to index
    %c0_16 = arith.constant 0 : index
    %39 = vector.load %arg11[%38, %c0_16] : memref<64x512xf32, #tpu.memory_space<vmem>>, vector<8x512xf32>
    %cst = arith.constant dense<0.000000e+00> : vector<8x512xf32>
    %40 = tpu.matmul %34, %3, %cst {dimension_numbers = #tpu.dot_dimension_numbers<[1], [0], [0], [1], [0, 0, 1, 1], [], []>} : vector<8x128xf32>, vector<128x512xf32>, vector<8x512xf32> -> vector<8x512xf32>
    %41 = arith.addf %39, %40 : vector<8x512xf32>
    %42 = vector.extract_strided_slice %41 {offsets = [0, 0], sizes = [8, 128], strides = [1, 1]} : vector<8x512xf32> to vector<8x128xf32>
    %cst_17 = arith.constant 5.000000e-01 : f32
    %43 = vector.broadcast %cst_17 : f32 to vector<8x128xf32>
    %44 = arith.mulf %43, %42 : vector<8x128xf32>
    %45 = math.tanh %44 : vector<8x128xf32>
    %cst_18 = arith.constant 5.000000e-01 : f32
    %46 = vector.broadcast %cst_18 : f32 to vector<8x128xf32>
    %47 = arith.mulf %46, %45 : vector<8x128xf32>
    %cst_19 = arith.constant 5.000000e-01 : f32
    %48 = vector.broadcast %cst_19 : f32 to vector<8x128xf32>
    %49 = arith.addf %47, %48 : vector<8x128xf32>
    %50 = vector.extract_strided_slice %41 {offsets = [0, 128], sizes = [8, 128], strides = [1, 1]} : vector<8x512xf32> to vector<8x128xf32>
    %cst_20 = arith.constant 5.000000e-01 : f32
    %51 = vector.broadcast %cst_20 : f32 to vector<8x128xf32>
    %52 = arith.mulf %51, %50 : vector<8x128xf32>
    %53 = math.tanh %52 : vector<8x128xf32>
    %cst_21 = arith.constant 5.000000e-01 : f32
    %54 = vector.broadcast %cst_21 : f32 to vector<8x128xf32>
    %55 = arith.mulf %54, %53 : vector<8x128xf32>
    %cst_22 = arith.constant 5.000000e-01 : f32
    %56 = vector.broadcast %cst_22 : f32 to vector<8x128xf32>
    %57 = arith.addf %55, %56 : vector<8x128xf32>
    %58 = vector.extract_strided_slice %41 {offsets = [0, 256], sizes = [8, 128], strides = [1, 1]} : vector<8x512xf32> to vector<8x128xf32>
    %59 = math.tanh %58 : vector<8x128xf32>
    %60 = vector.extract_strided_slice %41 {offsets = [0, 384], sizes = [8, 128], strides = [1, 1]} : vector<8x512xf32> to vector<8x128xf32>
    %cst_23 = arith.constant 5.000000e-01 : f32
    %61 = vector.broadcast %cst_23 : f32 to vector<8x128xf32>
    %62 = arith.mulf %61, %60 : vector<8x128xf32>
    %63 = math.tanh %62 : vector<8x128xf32>
    %cst_24 = arith.constant 5.000000e-01 : f32
    %64 = vector.broadcast %cst_24 : f32 to vector<8x128xf32>
    %65 = arith.mulf %64, %63 : vector<8x128xf32>
    %cst_25 = arith.constant 5.000000e-01 : f32
    %66 = vector.broadcast %cst_25 : f32 to vector<8x128xf32>
    %67 = arith.addf %65, %66 : vector<8x128xf32>
    %68 = arith.mulf %57, %35 : vector<8x128xf32>
    %69 = arith.mulf %49, %59 : vector<8x128xf32>
    %70 = arith.addf %68, %69 : vector<8x128xf32>
    %71 = math.tanh %70 : vector<8x128xf32>
    %72 = arith.mulf %67, %71 : vector<8x128xf32>
    %c1_i32 = arith.constant 1 : i32
    %c8_i32_26 = arith.constant 8 : i32
    %73 = arith.muli %c1_i32, %c8_i32_26 : i32
    %74 = tpu.assume_multiple %73, 8 : i32
    %75 = arith.index_cast %74 : i32 to index
    %c0_27 = arith.constant 0 : index
    %76 = vector.load %arg11[%75, %c0_27] : memref<64x512xf32, #tpu.memory_space<vmem>>, vector<8x512xf32>
    %cst_28 = arith.constant dense<0.000000e+00> : vector<8x512xf32>
    %77 = tpu.matmul %72, %3, %cst_28 {dimension_numbers = #tpu.dot_dimension_numbers<[1], [0], [0], [1], [0, 0, 1, 1], [], []>} : vector<8x128xf32>, vector<128x512xf32>, vector<8x512xf32> -> vector<8x512xf32>
    %78 = arith.addf %76, %77 : vector<8x512xf32>
    %79 = vector.extract_strided_slice %78 {offsets = [0, 0], sizes = [8, 128], strides = [1, 1]} : vector<8x512xf32> to vector<8x128xf32>
    %cst_29 = arith.constant 5.000000e-01 : f32
    %80 = vector.broadcast %cst_29 : f32 to vector<8x128xf32>
    %81 = arith.mulf %80, %79 : vector<8x128xf32>
    %82 = math.tanh %81 : vector<8x128xf32>
    %cst_30 = arith.constant 5.000000e-01 : f32
    %83 = vector.broadcast %cst_30 : f32 to vector<8x128xf32>
    %84 = arith.mulf %83, %82 : vector<8x128xf32>
    %cst_31 = arith.constant 5.000000e-01 : f32
    %85 = vector.broadcast %cst_31 : f32 to vector<8x128xf32>
    %86 = arith.addf %84, %85 : vector<8x128xf32>
    %87 = vector.extract_strided_slice %78 {offsets = [0, 128], sizes = [8, 128], strides = [1, 1]} : vector<8x512xf32> to vector<8x128xf32>
    %cst_32 = arith.constant 5.000000e-01 : f32
    %88 = vector.broadcast %cst_32 : f32 to vector<8x128xf32>
    %89 = arith.mulf %88, %87 : vector<8x128xf32>
    %90 = math.tanh %89 : vector<8x128xf32>
    %cst_33 = arith.constant 5.000000e-01 : f32
    %91 = vector.broadcast %cst_33 : f32 to vector<8x128xf32>
    %92 = arith.mulf %91, %90 : vector<8x128xf32>
    %cst_34 = arith.constant 5.000000e-01 : f32
    %93 = vector.broadcast %cst_34 : f32 to vector<8x128xf32>
    %94 = arith.addf %92, %93 : vector<8x128xf32>
    %95 = vector.extract_strided_slice %78 {offsets = [0, 256], sizes = [8, 128], strides = [1, 1]} : vector<8x512xf32> to vector<8x128xf32>
    %96 = math.tanh %95 : vector<8x128xf32>
    %97 = vector.extract_strided_slice %78 {offsets = [0, 384], sizes = [8, 128], strides = [1, 1]} : vector<8x512xf32> to vector<8x128xf32>
    %cst_35 = arith.constant 5.000000e-01 : f32
    %98 = vector.broadcast %cst_35 : f32 to vector<8x128xf32>
    %99 = arith.mulf %98, %97 : vector<8x128xf32>
    %100 = math.tanh %99 : vector<8x128xf32>
    %cst_36 = arith.constant 5.000000e-01 : f32
    %101 = vector.broadcast %cst_36 : f32 to vector<8x128xf32>
    %102 = arith.mulf %101, %100 : vector<8x128xf32>
    %cst_37 = arith.constant 5.000000e-01 : f32
    %103 = vector.broadcast %cst_37 : f32 to vector<8x128xf32>
    %104 = arith.addf %102, %103 : vector<8x128xf32>
    %105 = arith.mulf %94, %70 : vector<8x128xf32>
    %106 = arith.mulf %86, %96 : vector<8x128xf32>
    %107 = arith.addf %105, %106 : vector<8x128xf32>
    %108 = math.tanh %107 : vector<8x128xf32>
    %109 = arith.mulf %104, %108 : vector<8x128xf32>
    %c2_i32 = arith.constant 2 : i32
    %c8_i32_38 = arith.constant 8 : i32
    %110 = arith.muli %c2_i32, %c8_i32_38 : i32
    %111 = tpu.assume_multiple %110, 8 : i32
    %112 = arith.index_cast %111 : i32 to index
    %c0_39 = arith.constant 0 : index
    %113 = vector.load %arg11[%112, %c0_39] : memref<64x512xf32, #tpu.memory_space<vmem>>, vector<8x512xf32>
    %cst_40 = arith.constant dense<0.000000e+00> : vector<8x512xf32>
    %114 = tpu.matmul %109, %3, %cst_40 {dimension_numbers = #tpu.dot_dimension_numbers<[1], [0], [0], [1], [0, 0, 1, 1], [], []>} : vector<8x128xf32>, vector<128x512xf32>, vector<8x512xf32> -> vector<8x512xf32>
    %115 = arith.addf %113, %114 : vector<8x512xf32>
    %116 = vector.extract_strided_slice %115 {offsets = [0, 0], sizes = [8, 128], strides = [1, 1]} : vector<8x512xf32> to vector<8x128xf32>
    %cst_41 = arith.constant 5.000000e-01 : f32
    %117 = vector.broadcast %cst_41 : f32 to vector<8x128xf32>
    %118 = arith.mulf %117, %116 : vector<8x128xf32>
    %119 = math.tanh %118 : vector<8x128xf32>
    %cst_42 = arith.constant 5.000000e-01 : f32
    %120 = vector.broadcast %cst_42 : f32 to vector<8x128xf32>
    %121 = arith.mulf %120, %119 : vector<8x128xf32>
    %cst_43 = arith.constant 5.000000e-01 : f32
    %122 = vector.broadcast %cst_43 : f32 to vector<8x128xf32>
    %123 = arith.addf %121, %122 : vector<8x128xf32>
    %124 = vector.extract_strided_slice %115 {offsets = [0, 128], sizes = [8, 128], strides = [1, 1]} : vector<8x512xf32> to vector<8x128xf32>
    %cst_44 = arith.constant 5.000000e-01 : f32
    %125 = vector.broadcast %cst_44 : f32 to vector<8x128xf32>
    %126 = arith.mulf %125, %124 : vector<8x128xf32>
    %127 = math.tanh %126 : vector<8x128xf32>
    %cst_45 = arith.constant 5.000000e-01 : f32
    %128 = vector.broadcast %cst_45 : f32 to vector<8x128xf32>
    %129 = arith.mulf %128, %127 : vector<8x128xf32>
    %cst_46 = arith.constant 5.000000e-01 : f32
    %130 = vector.broadcast %cst_46 : f32 to vector<8x128xf32>
    %131 = arith.addf %129, %130 : vector<8x128xf32>
    %132 = vector.extract_strided_slice %115 {offsets = [0, 256], sizes = [8, 128], strides = [1, 1]} : vector<8x512xf32> to vector<8x128xf32>
    %133 = math.tanh %132 : vector<8x128xf32>
    %134 = vector.extract_strided_slice %115 {offsets = [0, 384], sizes = [8, 128], strides = [1, 1]} : vector<8x512xf32> to vector<8x128xf32>
    %cst_47 = arith.constant 5.000000e-01 : f32
    %135 = vector.broadcast %cst_47 : f32 to vector<8x128xf32>
    %136 = arith.mulf %135, %134 : vector<8x128xf32>
    %137 = math.tanh %136 : vector<8x128xf32>
    %cst_48 = arith.constant 5.000000e-01 : f32
    %138 = vector.broadcast %cst_48 : f32 to vector<8x128xf32>
    %139 = arith.mulf %138, %137 : vector<8x128xf32>
    %cst_49 = arith.constant 5.000000e-01 : f32
    %140 = vector.broadcast %cst_49 : f32 to vector<8x128xf32>
    %141 = arith.addf %139, %140 : vector<8x128xf32>
    %142 = arith.mulf %131, %107 : vector<8x128xf32>
    %143 = arith.mulf %123, %133 : vector<8x128xf32>
    %144 = arith.addf %142, %143 : vector<8x128xf32>
    %145 = math.tanh %144 : vector<8x128xf32>
    %146 = arith.mulf %141, %145 : vector<8x128xf32>
    %c3_i32 = arith.constant 3 : i32
    %c8_i32_50 = arith.constant 8 : i32
    %147 = arith.muli %c3_i32, %c8_i32_50 : i32
    %148 = tpu.assume_multiple %147, 8 : i32
    %149 = arith.index_cast %148 : i32 to index
    %c0_51 = arith.constant 0 : index
    %150 = vector.load %arg11[%149, %c0_51] : memref<64x512xf32, #tpu.memory_space<vmem>>, vector<8x512xf32>
    %cst_52 = arith.constant dense<0.000000e+00> : vector<8x512xf32>
    %151 = tpu.matmul %146, %3, %cst_52 {dimension_numbers = #tpu.dot_dimension_numbers<[1], [0], [0], [1], [0, 0, 1, 1], [], []>} : vector<8x128xf32>, vector<128x512xf32>, vector<8x512xf32> -> vector<8x512xf32>
    %152 = arith.addf %150, %151 : vector<8x512xf32>
    %153 = vector.extract_strided_slice %152 {offsets = [0, 0], sizes = [8, 128], strides = [1, 1]} : vector<8x512xf32> to vector<8x128xf32>
    %cst_53 = arith.constant 5.000000e-01 : f32
    %154 = vector.broadcast %cst_53 : f32 to vector<8x128xf32>
    %155 = arith.mulf %154, %153 : vector<8x128xf32>
    %156 = math.tanh %155 : vector<8x128xf32>
    %cst_54 = arith.constant 5.000000e-01 : f32
    %157 = vector.broadcast %cst_54 : f32 to vector<8x128xf32>
    %158 = arith.mulf %157, %156 : vector<8x128xf32>
    %cst_55 = arith.constant 5.000000e-01 : f32
    %159 = vector.broadcast %cst_55 : f32 to vector<8x128xf32>
    %160 = arith.addf %158, %159 : vector<8x128xf32>
    %161 = vector.extract_strided_slice %152 {offsets = [0, 128], sizes = [8, 128], strides = [1, 1]} : vector<8x512xf32> to vector<8x128xf32>
    %cst_56 = arith.constant 5.000000e-01 : f32
    %162 = vector.broadcast %cst_56 : f32 to vector<8x128xf32>
    %163 = arith.mulf %162, %161 : vector<8x128xf32>
    %164 = math.tanh %163 : vector<8x128xf32>
    %cst_57 = arith.constant 5.000000e-01 : f32
    %165 = vector.broadcast %cst_57 : f32 to vector<8x128xf32>
    %166 = arith.mulf %165, %164 : vector<8x128xf32>
    %cst_58 = arith.constant 5.000000e-01 : f32
    %167 = vector.broadcast %cst_58 : f32 to vector<8x128xf32>
    %168 = arith.addf %166, %167 : vector<8x128xf32>
    %169 = vector.extract_strided_slice %152 {offsets = [0, 256], sizes = [8, 128], strides = [1, 1]} : vector<8x512xf32> to vector<8x128xf32>
    %170 = math.tanh %169 : vector<8x128xf32>
    %171 = vector.extract_strided_slice %152 {offsets = [0, 384], sizes = [8, 128], strides = [1, 1]} : vector<8x512xf32> to vector<8x128xf32>
    %cst_59 = arith.constant 5.000000e-01 : f32
    %172 = vector.broadcast %cst_59 : f32 to vector<8x128xf32>
    %173 = arith.mulf %172, %171 : vector<8x128xf32>
    %174 = math.tanh %173 : vector<8x128xf32>
    %cst_60 = arith.constant 5.000000e-01 : f32
    %175 = vector.broadcast %cst_60 : f32 to vector<8x128xf32>
    %176 = arith.mulf %175, %174 : vector<8x128xf32>
    %cst_61 = arith.constant 5.000000e-01 : f32
    %177 = vector.broadcast %cst_61 : f32 to vector<8x128xf32>
    %178 = arith.addf %176, %177 : vector<8x128xf32>
    %179 = arith.mulf %168, %144 : vector<8x128xf32>
    %180 = arith.mulf %160, %170 : vector<8x128xf32>
    %181 = arith.addf %179, %180 : vector<8x128xf32>
    %182 = math.tanh %181 : vector<8x128xf32>
    %183 = arith.mulf %178, %182 : vector<8x128xf32>
    %c4_i32 = arith.constant 4 : i32
    %c8_i32_62 = arith.constant 8 : i32
    %184 = arith.muli %c4_i32, %c8_i32_62 : i32
    %185 = tpu.assume_multiple %184, 8 : i32
    %186 = arith.index_cast %185 : i32 to index
    %c0_63 = arith.constant 0 : index
    %187 = vector.load %arg11[%186, %c0_63] : memref<64x512xf32, #tpu.memory_space<vmem>>, vector<8x512xf32>
    %cst_64 = arith.constant dense<0.000000e+00> : vector<8x512xf32>
    %188 = tpu.matmul %183, %3, %cst_64 {dimension_numbers = #tpu.dot_dimension_numbers<[1], [0], [0], [1], [0, 0, 1, 1], [], []>} : vector<8x128xf32>, vector<128x512xf32>, vector<8x512xf32> -> vector<8x512xf32>
    %189 = arith.addf %187, %188 : vector<8x512xf32>
    %190 = vector.extract_strided_slice %189 {offsets = [0, 0], sizes = [8, 128], strides = [1, 1]} : vector<8x512xf32> to vector<8x128xf32>
    %cst_65 = arith.constant 5.000000e-01 : f32
    %191 = vector.broadcast %cst_65 : f32 to vector<8x128xf32>
    %192 = arith.mulf %191, %190 : vector<8x128xf32>
    %193 = math.tanh %192 : vector<8x128xf32>
    %cst_66 = arith.constant 5.000000e-01 : f32
    %194 = vector.broadcast %cst_66 : f32 to vector<8x128xf32>
    %195 = arith.mulf %194, %193 : vector<8x128xf32>
    %cst_67 = arith.constant 5.000000e-01 : f32
    %196 = vector.broadcast %cst_67 : f32 to vector<8x128xf32>
    %197 = arith.addf %195, %196 : vector<8x128xf32>
    %198 = vector.extract_strided_slice %189 {offsets = [0, 128], sizes = [8, 128], strides = [1, 1]} : vector<8x512xf32> to vector<8x128xf32>
    %cst_68 = arith.constant 5.000000e-01 : f32
    %199 = vector.broadcast %cst_68 : f32 to vector<8x128xf32>
    %200 = arith.mulf %199, %198 : vector<8x128xf32>
    %201 = math.tanh %200 : vector<8x128xf32>
    %cst_69 = arith.constant 5.000000e-01 : f32
    %202 = vector.broadcast %cst_69 : f32 to vector<8x128xf32>
    %203 = arith.mulf %202, %201 : vector<8x128xf32>
    %cst_70 = arith.constant 5.000000e-01 : f32
    %204 = vector.broadcast %cst_70 : f32 to vector<8x128xf32>
    %205 = arith.addf %203, %204 : vector<8x128xf32>
    %206 = vector.extract_strided_slice %189 {offsets = [0, 256], sizes = [8, 128], strides = [1, 1]} : vector<8x512xf32> to vector<8x128xf32>
    %207 = math.tanh %206 : vector<8x128xf32>
    %208 = vector.extract_strided_slice %189 {offsets = [0, 384], sizes = [8, 128], strides = [1, 1]} : vector<8x512xf32> to vector<8x128xf32>
    %cst_71 = arith.constant 5.000000e-01 : f32
    %209 = vector.broadcast %cst_71 : f32 to vector<8x128xf32>
    %210 = arith.mulf %209, %208 : vector<8x128xf32>
    %211 = math.tanh %210 : vector<8x128xf32>
    %cst_72 = arith.constant 5.000000e-01 : f32
    %212 = vector.broadcast %cst_72 : f32 to vector<8x128xf32>
    %213 = arith.mulf %212, %211 : vector<8x128xf32>
    %cst_73 = arith.constant 5.000000e-01 : f32
    %214 = vector.broadcast %cst_73 : f32 to vector<8x128xf32>
    %215 = arith.addf %213, %214 : vector<8x128xf32>
    %216 = arith.mulf %205, %181 : vector<8x128xf32>
    %217 = arith.mulf %197, %207 : vector<8x128xf32>
    %218 = arith.addf %216, %217 : vector<8x128xf32>
    %219 = math.tanh %218 : vector<8x128xf32>
    %220 = arith.mulf %215, %219 : vector<8x128xf32>
    %c5_i32 = arith.constant 5 : i32
    %c8_i32_74 = arith.constant 8 : i32
    %221 = arith.muli %c5_i32, %c8_i32_74 : i32
    %222 = tpu.assume_multiple %221, 8 : i32
    %223 = arith.index_cast %222 : i32 to index
    %c0_75 = arith.constant 0 : index
    %224 = vector.load %arg11[%223, %c0_75] : memref<64x512xf32, #tpu.memory_space<vmem>>, vector<8x512xf32>
    %cst_76 = arith.constant dense<0.000000e+00> : vector<8x512xf32>
    %225 = tpu.matmul %220, %3, %cst_76 {dimension_numbers = #tpu.dot_dimension_numbers<[1], [0], [0], [1], [0, 0, 1, 1], [], []>} : vector<8x128xf32>, vector<128x512xf32>, vector<8x512xf32> -> vector<8x512xf32>
    %226 = arith.addf %224, %225 : vector<8x512xf32>
    %227 = vector.extract_strided_slice %226 {offsets = [0, 0], sizes = [8, 128], strides = [1, 1]} : vector<8x512xf32> to vector<8x128xf32>
    %cst_77 = arith.constant 5.000000e-01 : f32
    %228 = vector.broadcast %cst_77 : f32 to vector<8x128xf32>
    %229 = arith.mulf %228, %227 : vector<8x128xf32>
    %230 = math.tanh %229 : vector<8x128xf32>
    %cst_78 = arith.constant 5.000000e-01 : f32
    %231 = vector.broadcast %cst_78 : f32 to vector<8x128xf32>
    %232 = arith.mulf %231, %230 : vector<8x128xf32>
    %cst_79 = arith.constant 5.000000e-01 : f32
    %233 = vector.broadcast %cst_79 : f32 to vector<8x128xf32>
    %234 = arith.addf %232, %233 : vector<8x128xf32>
    %235 = vector.extract_strided_slice %226 {offsets = [0, 128], sizes = [8, 128], strides = [1, 1]} : vector<8x512xf32> to vector<8x128xf32>
    %cst_80 = arith.constant 5.000000e-01 : f32
    %236 = vector.broadcast %cst_80 : f32 to vector<8x128xf32>
    %237 = arith.mulf %236, %235 : vector<8x128xf32>
    %238 = math.tanh %237 : vector<8x128xf32>
    %cst_81 = arith.constant 5.000000e-01 : f32
    %239 = vector.broadcast %cst_81 : f32 to vector<8x128xf32>
    %240 = arith.mulf %239, %238 : vector<8x128xf32>
    %cst_82 = arith.constant 5.000000e-01 : f32
    %241 = vector.broadcast %cst_82 : f32 to vector<8x128xf32>
    %242 = arith.addf %240, %241 : vector<8x128xf32>
    %243 = vector.extract_strided_slice %226 {offsets = [0, 256], sizes = [8, 128], strides = [1, 1]} : vector<8x512xf32> to vector<8x128xf32>
    %244 = math.tanh %243 : vector<8x128xf32>
    %245 = vector.extract_strided_slice %226 {offsets = [0, 384], sizes = [8, 128], strides = [1, 1]} : vector<8x512xf32> to vector<8x128xf32>
    %cst_83 = arith.constant 5.000000e-01 : f32
    %246 = vector.broadcast %cst_83 : f32 to vector<8x128xf32>
    %247 = arith.mulf %246, %245 : vector<8x128xf32>
    %248 = math.tanh %247 : vector<8x128xf32>
    %cst_84 = arith.constant 5.000000e-01 : f32
    %249 = vector.broadcast %cst_84 : f32 to vector<8x128xf32>
    %250 = arith.mulf %249, %248 : vector<8x128xf32>
    %cst_85 = arith.constant 5.000000e-01 : f32
    %251 = vector.broadcast %cst_85 : f32 to vector<8x128xf32>
    %252 = arith.addf %250, %251 : vector<8x128xf32>
    %253 = arith.mulf %242, %218 : vector<8x128xf32>
    %254 = arith.mulf %234, %244 : vector<8x128xf32>
    %255 = arith.addf %253, %254 : vector<8x128xf32>
    %256 = math.tanh %255 : vector<8x128xf32>
    %257 = arith.mulf %252, %256 : vector<8x128xf32>
    %c6_i32 = arith.constant 6 : i32
    %c8_i32_86 = arith.constant 8 : i32
    %258 = arith.muli %c6_i32, %c8_i32_86 : i32
    %259 = tpu.assume_multiple %258, 8 : i32
    %260 = arith.index_cast %259 : i32 to index
    %c0_87 = arith.constant 0 : index
    %261 = vector.load %arg11[%260, %c0_87] : memref<64x512xf32, #tpu.memory_space<vmem>>, vector<8x512xf32>
    %cst_88 = arith.constant dense<0.000000e+00> : vector<8x512xf32>
    %262 = tpu.matmul %257, %3, %cst_88 {dimension_numbers = #tpu.dot_dimension_numbers<[1], [0], [0], [1], [0, 0, 1, 1], [], []>} : vector<8x128xf32>, vector<128x512xf32>, vector<8x512xf32> -> vector<8x512xf32>
    %263 = arith.addf %261, %262 : vector<8x512xf32>
    %264 = vector.extract_strided_slice %263 {offsets = [0, 0], sizes = [8, 128], strides = [1, 1]} : vector<8x512xf32> to vector<8x128xf32>
    %cst_89 = arith.constant 5.000000e-01 : f32
    %265 = vector.broadcast %cst_89 : f32 to vector<8x128xf32>
    %266 = arith.mulf %265, %264 : vector<8x128xf32>
    %267 = math.tanh %266 : vector<8x128xf32>
    %cst_90 = arith.constant 5.000000e-01 : f32
    %268 = vector.broadcast %cst_90 : f32 to vector<8x128xf32>
    %269 = arith.mulf %268, %267 : vector<8x128xf32>
    %cst_91 = arith.constant 5.000000e-01 : f32
    %270 = vector.broadcast %cst_91 : f32 to vector<8x128xf32>
    %271 = arith.addf %269, %270 : vector<8x128xf32>
    %272 = vector.extract_strided_slice %263 {offsets = [0, 128], sizes = [8, 128], strides = [1, 1]} : vector<8x512xf32> to vector<8x128xf32>
    %cst_92 = arith.constant 5.000000e-01 : f32
    %273 = vector.broadcast %cst_92 : f32 to vector<8x128xf32>
    %274 = arith.mulf %273, %272 : vector<8x128xf32>
    %275 = math.tanh %274 : vector<8x128xf32>
    %cst_93 = arith.constant 5.000000e-01 : f32
    %276 = vector.broadcast %cst_93 : f32 to vector<8x128xf32>
    %277 = arith.mulf %276, %275 : vector<8x128xf32>
    %cst_94 = arith.constant 5.000000e-01 : f32
    %278 = vector.broadcast %cst_94 : f32 to vector<8x128xf32>
    %279 = arith.addf %277, %278 : vector<8x128xf32>
    %280 = vector.extract_strided_slice %263 {offsets = [0, 256], sizes = [8, 128], strides = [1, 1]} : vector<8x512xf32> to vector<8x128xf32>
    %281 = math.tanh %280 : vector<8x128xf32>
    %282 = vector.extract_strided_slice %263 {offsets = [0, 384], sizes = [8, 128], strides = [1, 1]} : vector<8x512xf32> to vector<8x128xf32>
    %cst_95 = arith.constant 5.000000e-01 : f32
    %283 = vector.broadcast %cst_95 : f32 to vector<8x128xf32>
    %284 = arith.mulf %283, %282 : vector<8x128xf32>
    %285 = math.tanh %284 : vector<8x128xf32>
    %cst_96 = arith.constant 5.000000e-01 : f32
    %286 = vector.broadcast %cst_96 : f32 to vector<8x128xf32>
    %287 = arith.mulf %286, %285 : vector<8x128xf32>
    %cst_97 = arith.constant 5.000000e-01 : f32
    %288 = vector.broadcast %cst_97 : f32 to vector<8x128xf32>
    %289 = arith.addf %287, %288 : vector<8x128xf32>
    %290 = arith.mulf %279, %255 : vector<8x128xf32>
    %291 = arith.mulf %271, %281 : vector<8x128xf32>
    %292 = arith.addf %290, %291 : vector<8x128xf32>
    %293 = math.tanh %292 : vector<8x128xf32>
    %294 = arith.mulf %289, %293 : vector<8x128xf32>
    %c7_i32 = arith.constant 7 : i32
    %c8_i32_98 = arith.constant 8 : i32
    %295 = arith.muli %c7_i32, %c8_i32_98 : i32
    %296 = tpu.assume_multiple %295, 8 : i32
    %297 = arith.index_cast %296 : i32 to index
    %c0_99 = arith.constant 0 : index
    %298 = vector.load %arg11[%297, %c0_99] : memref<64x512xf32, #tpu.memory_space<vmem>>, vector<8x512xf32>
    %cst_100 = arith.constant dense<0.000000e+00> : vector<8x512xf32>
    %299 = tpu.matmul %294, %3, %cst_100 {dimension_numbers = #tpu.dot_dimension_numbers<[1], [0], [0], [1], [0, 0, 1, 1], [], []>} : vector<8x128xf32>, vector<128x512xf32>, vector<8x512xf32> -> vector<8x512xf32>
    %300 = arith.addf %298, %299 : vector<8x512xf32>
    %301 = vector.extract_strided_slice %300 {offsets = [0, 0], sizes = [8, 128], strides = [1, 1]} : vector<8x512xf32> to vector<8x128xf32>
    %cst_101 = arith.constant 5.000000e-01 : f32
    %302 = vector.broadcast %cst_101 : f32 to vector<8x128xf32>
    %303 = arith.mulf %302, %301 : vector<8x128xf32>
    %304 = math.tanh %303 : vector<8x128xf32>
    %cst_102 = arith.constant 5.000000e-01 : f32
    %305 = vector.broadcast %cst_102 : f32 to vector<8x128xf32>
    %306 = arith.mulf %305, %304 : vector<8x128xf32>
    %cst_103 = arith.constant 5.000000e-01 : f32
    %307 = vector.broadcast %cst_103 : f32 to vector<8x128xf32>
    %308 = arith.addf %306, %307 : vector<8x128xf32>
    %309 = vector.extract_strided_slice %300 {offsets = [0, 128], sizes = [8, 128], strides = [1, 1]} : vector<8x512xf32> to vector<8x128xf32>
    %cst_104 = arith.constant 5.000000e-01 : f32
    %310 = vector.broadcast %cst_104 : f32 to vector<8x128xf32>
    %311 = arith.mulf %310, %309 : vector<8x128xf32>
    %312 = math.tanh %311 : vector<8x128xf32>
    %cst_105 = arith.constant 5.000000e-01 : f32
    %313 = vector.broadcast %cst_105 : f32 to vector<8x128xf32>
    %314 = arith.mulf %313, %312 : vector<8x128xf32>
    %cst_106 = arith.constant 5.000000e-01 : f32
    %315 = vector.broadcast %cst_106 : f32 to vector<8x128xf32>
    %316 = arith.addf %314, %315 : vector<8x128xf32>
    %317 = vector.extract_strided_slice %300 {offsets = [0, 256], sizes = [8, 128], strides = [1, 1]} : vector<8x512xf32> to vector<8x128xf32>
    %318 = math.tanh %317 : vector<8x128xf32>
    %319 = vector.extract_strided_slice %300 {offsets = [0, 384], sizes = [8, 128], strides = [1, 1]} : vector<8x512xf32> to vector<8x128xf32>
    %cst_107 = arith.constant 5.000000e-01 : f32
    %320 = vector.broadcast %cst_107 : f32 to vector<8x128xf32>
    %321 = arith.mulf %320, %319 : vector<8x128xf32>
    %322 = math.tanh %321 : vector<8x128xf32>
    %cst_108 = arith.constant 5.000000e-01 : f32
    %323 = vector.broadcast %cst_108 : f32 to vector<8x128xf32>
    %324 = arith.mulf %323, %322 : vector<8x128xf32>
    %cst_109 = arith.constant 5.000000e-01 : f32
    %325 = vector.broadcast %cst_109 : f32 to vector<8x128xf32>
    %326 = arith.addf %324, %325 : vector<8x128xf32>
    %327 = arith.mulf %316, %292 : vector<8x128xf32>
    %328 = arith.mulf %308, %318 : vector<8x128xf32>
    %329 = arith.addf %327, %328 : vector<8x128xf32>
    %330 = math.tanh %329 : vector<8x128xf32>
    %331 = arith.mulf %326, %330 : vector<8x128xf32>
    %c8_i32_110 = arith.constant 8 : i32
    %c0_111 = arith.constant 0 : index
    %c0_112 = arith.constant 0 : index
    %332 = vector.load %arg9[%c0_111, %c0_112] : memref<8x128xf32, #tpu.memory_space<vmem>>, vector<8x128xf32>
    tpu.vector_store %arg9[%c0_111, %c0_112], %331 {strides = array<i32>} : memref<8x128xf32, #tpu.memory_space<vmem>>, vector<8x128xf32>,
    %c0_113 = arith.constant 0 : index
    %c0_114 = arith.constant 0 : index
    %333 = vector.load %arg10[%c0_113, %c0_114] : memref<8x128xf32, #tpu.memory_space<vmem>>, vector<8x128xf32>
    tpu.vector_store %arg10[%c0_113, %c0_114], %329 {strides = array<i32>} : memref<8x128xf32, #tpu.memory_space<vmem>>, vector<8x128xf32>,
    %c0_i32_115 = arith.constant 0 : i32
    %334 = arith.cmpi eq, %arg1, %c0_i32_115 : i32
    %335 = arith.extui %334 : i1 to i32
    %c0_i32_116 = arith.constant 0 : i32
    %336 = arith.cmpi ne, %335, %c0_i32_116 : i32
    scf.if %336 {
      %c0_117 = arith.constant 0 : index
      %c0_118 = arith.constant 0 : index
      %337 = vector.load %arg8[%c0_117, %c0_118] : memref<8x128xf32, #tpu.memory_space<vmem>>, vector<8x128xf32>
      tpu.vector_store %arg8[%c0_117, %c0_118], %331 {strides = array<i32>} : memref<8x128xf32, #tpu.memory_space<vmem>>, vector<8x128xf32>,
    } else {
    }
    return
  }
  func.func @transform_0(%arg0: i32, %arg1: i32) -> (i32, i32, i32) {
    %c0_i32 = arith.constant 0 : i32
    %c0_i32_0 = arith.constant 0 : i32
    return %arg0, %arg1, %c0_i32 : i32, i32, i32
  }
  func.func @transform_1(%arg0: i32, %arg1: i32) -> (i32, i32) {
    %c0_i32 = arith.constant 0 : i32
    %c0_i32_0 = arith.constant 0 : i32
    %c0_i32_1 = arith.constant 0 : i32
    return %c0_i32, %c0_i32_0 : i32, i32
  }
  func.func @transform_2(%arg0: i32, %arg1: i32) -> (i32, i32) {
    %c0_i32 = arith.constant 0 : i32
    %c0_i32_0 = arith.constant 0 : i32
    %c0_i32_1 = arith.constant 0 : i32
    return %c0_i32, %c0_i32_0 : i32, i32
  }
  func.func @transform_3(%arg0: i32, %arg1: i32) -> (i32, i32) {
    %c0_i32 = arith.constant 0 : i32
    %c0_i32_0 = arith.constant 0 : i32
    %c0_i32_1 = arith.constant 0 : i32
    return %c0_i32, %c0_i32_0 : i32, i32
  }
  func.func @transform_4(%arg0: i32, %arg1: i32) -> (i32, i32) {
    %c0_i32 = arith.constant 0 : i32
    %c0_i32_0 = arith.constant 0 : i32
    return %arg0, %c0_i32 : i32, i32
  }
  func.func @transform_5(%arg0: i32, %arg1: i32) -> (i32, i32) {
    %c0_i32 = arith.constant 0 : i32
    %c0_i32_0 = arith.constant 0 : i32
    return %arg0, %c0_i32 : i32, i32
  }
  func.func @transform_6(%arg0: i32, %arg1: i32) -> (i32, i32) {
    %c0_i32 = arith.constant 0 : i32
    %c0_i32_0 = arith.constant 0 : i32
    return %arg0, %c0_i32 : i32, i32
  }
}

</mosaic_0001>

<bundles_post_ra>
// kernel: tpu_custom_call.1
= control target key start
LH: loop header
LB: loop body
LE: loop exit
PB: predicated region body
PF: predicated region fallthrough
CT: control target
= control target key end

     0   :  { %11 = vsyncpa [#allocation6], 0  ;;  %s3499_s0 = inlined_call_operand.vmem [shape: f32[1,64,4], index: 0, kind: input, shape index: {}]   ;;  %s3500_s1 = inlined_call_operand.vmem [shape: f32[4,512], index: 1, kind: input, shape index: {}]   ;;  %s3501_s2 = inlined_call_operand.hbm [shape: f32[128,512], index: 2, kind: input, shape index: {}]   ;;  %s3502_s3 = inlined_call_operand.vmem [shape: f32[1,512], index: 3, kind: input, shape index: {}]   ;;  %s3503_s4 = inlined_call_operand.vmem [shape: f32[8,128], index: 4, kind: input, shape index: {}]   ;;  %s3504_s5 = inlined_call_operand.vmem [shape: f32[8,128], index: 5, kind: input, shape index: {}]   ;;  %s3505_s6 = inlined_call_operand.hbm [shape: f32[8,128], index: 6, kind: output, shape index: {}]  }
   0x1   :  { %12 = vsyncpa [#allocation7], 0  ;;  %s2338_s21 = smov [#allocation5]  }
   0x2   :  { %s22_s22 = sshll.u32 %s2338_s21, 4  ;;  %s23_s22 = int_to_ptr.vmem [resolvable:$true] %s22_s22 }
   0x3   :  { %s2302_s23 = scalar_lea.vmem %s23_s22, 8192  ;;  %p2307_p1 = scmp.lt.s32.totalorder %s23_s22, %s23_s22 }
   0x4   :  { %p2303_p0 = scmp.ne.s32.totalorder %s23_s22, %s2302_s23  ;;  %p2308_p2 = scmp.lt.s32.totalorder %s2302_s23, %s2302_s23 }
   0x6   :  { %p2309_p3 = por %p2308_p2, %p2307_p1 }
   0x8   :  { %p2310_p4 = pnand %p2309_p3, %p2303_p0 }
   0xa   :  { %2313 = shalt.err (!%p2310_p4)
}
   0xb   :  { %s2339_s24 = smov 512   ;;  %s2340_s25 = smov 32  }
   0xc   :  { %28 = dma.hbm_to_vmem [thread:$0]  %s3501_s2, 8192, %s23_s22, [#allocation6], %s2339_s24, %s2339_s24, %s2340_s25  }
   0xd   :  { %2334 = dma.done.wait [#allocation6], 8192  }
   0xe   :  { %2335 = vsyncadd [#allocation6], 4294959104  ;;  %v3506_v0 = vmov 0.0   ;;  %v3508_v1 = vmov 2   ;;  %v3510_v2 = vmov 0   ;;  %v2389_v3 = vld [vmem:[#allocation5 + $0x1e8] sm:$0xff] }
   0xf   :  { %785 = vmatprep.mubr.f32.mxu0 %v3506_v0  ;;  %856 = vmatprep.mubr.f32.mxu1 %v3506_v0  ;;  %3712 = vst [vmem:[#allocation11_spill] sm:$0xff] %v2389_v3  ;;  %v2391_v4 = vld [vmem:[#allocation5 + $0x1f8] sm:$0xff]  ;;  %v2393_v5 = vld [vmem:[#allocation5 + $0x1e0] sm:$0xff]  ;;  %v2397_v6 = vld [vmem:[#allocation5 + $0x1f0] sm:$0xff] }
  0x10   :  { %2121 = vset.pattern.permute.xlu1 %v3508_v1  ;;  %2119 = vset.pattern.permute.xlu0 %v3510_v2  ;;  %3713 = vst [vmem:[#allocation12_spill] sm:$0xff] %v2391_v4  ;;  %v2399_v7 = vld [vmem:[#allocation5 + $0x1c8] sm:$0xff]  ;;  %v2401_v8 = vld [vmem:[#allocation5 + $0x1d8] sm:$0xff]  ;;  %v2405_v9 = vld [vmem:[#allocation5 + $0x1c0] sm:$0xff] }
  0x11   :  { %721 = vmatprep.subr.mxu0 %v2389_v3  ;;  %792 = vmatprep.subr.mxu1 %v2391_v4  ;;  %v2407_v10 = vld [vmem:[#allocation5 + $0x1d0] sm:$0xff]  ;;  %v2409_v11 = vld [vmem:[#allocation5 + $0x1a8] sm:$0xff]  ;;  %v2413_v12 = vld [vmem:[#allocation5 + $0x1b8] sm:$0xff] }
  0x12   :  { %722 = vmatpush1.msra.mxu0 %v2393_v5  ;;  %793 = vmatpush1.msra.mxu1 %v2397_v6  ;;  %v2415_v13 = vld [vmem:[#allocation5 + $0x1a0] sm:$0xff]  ;;  %v2417_v14 = vld [vmem:[#allocation5 + $0x1b0] sm:$0xff]  ;;  %v2421_v15 = vld [vmem:[#allocation5 + $0x188] sm:$0xff] }
  0x13   :  { %723 = vmatprep.subr.mxu0 %v2399_v7  ;;  %794 = vmatprep.subr.mxu1 %v2401_v8  ;;  %v2423_v16 = vld [vmem:[#allocation5 + $0x198] sm:$0xff]  ;;  %v2427_v17 = vld [vmem:[#allocation5 + $0x180] sm:$0xff]  ;;  %v2429_v18 = vld [vmem:[#allocation5 + $0x190] sm:$0xff] }
  0x14   :  { %724 = vmatpush1.msra.mxu0 %v2405_v9  ;;  %795 = vmatpush1.msra.mxu1 %v2407_v10  ;;  %v2433_v19 = vld [vmem:[#allocation5 + $0x168] sm:$0xff]  ;;  %v2435_v20 = vld [vmem:[#allocation5 + $0x178] sm:$0xff]  ;;  %v2439_v21 = vld [vmem:[#allocation5 + $0x160] sm:$0xff] }
  0x15   :  { %725 = vmatprep.subr.mxu0 %v2409_v11  ;;  %796 = vmatprep.subr.mxu1 %v2413_v12  ;;  %v2441_v22 = vld [vmem:[#allocation5 + $0x170] sm:$0xff]  ;;  %v2445_v23 = vld [vmem:[#allocation5 + $0x148] sm:$0xff]  ;;  %v2447_v24 = vld [vmem:[#allocation5 + $0x158] sm:$0xff] }
  0x16   :  { %726 = vmatpush1.msra.mxu0 %v2415_v13  ;;  %797 = vmatpush1.msra.mxu1 %v2417_v14  ;;  %v2451_v25 = vld [vmem:[#allocation5 + $0x140] sm:$0xff]  ;;  %v2453_v26 = vld [vmem:[#allocation5 + $0x150] sm:$0xff]  ;;  %v2457_v27 = vld [vmem:[#allocation5 + $0x128] sm:$0xff] }
  0x17   :  { %727 = vmatprep.subr.mxu0 %v2421_v15  ;;  %798 = vmatprep.subr.mxu1 %v2423_v16  ;;  %v2459_v28 = vld [vmem:[#allocation5 + $0x138] sm:$0xff]  ;;  %v2463_v29 = vld [vmem:[#allocation5 + $0x120] sm:$0xff]  ;;  %v2465_v30 = vld [vmem:[#allocation5 + $0x130] sm:$0xff] }
  0x18   :  { %728 = vmatpush1.msra.mxu0 %v2427_v17  ;;  %799 = vmatpush1.msra.mxu1 %v2429_v18  ;;  %v2469_v31 = vld [vmem:[#allocation5 + $0x108] sm:$0xff]  ;;  %v2471_v32 = vld [vmem:[#allocation5 + $0x118] sm:$0xff]  ;;  %v2475_v33 = vld [vmem:[#allocation5 + $0x100] sm:$0xff] }
  0x19   :  { %729 = vmatprep.subr.mxu0 %v2433_v19  ;;  %800 = vmatprep.subr.mxu1 %v2435_v20  ;;  %3714 = vst [vmem:[#allocation13_spill] sm:$0xff] %v2471_v32  ;;  %3715 = vst [vmem:[#allocation14_spill] sm:$0xff] %v2475_v33  ;;  %v2477_v34 = vld [vmem:[#allocation5 + $0x110] sm:$0xff]  ;;  %v2481_v35 = vld [vmem:[#allocation5 + $0xe8] sm:$0xff] }
  0x1a   :  { %730 = vmatpush1.msra.mxu0 %v2439_v21  ;;  %801 = vmatpush1.msra.mxu1 %v2441_v22  ;;  %3716 = vst [vmem:[#allocation15_spill] sm:$0xff] %v2477_v34  ;;  %3717 = vst [vmem:[#allocation16_spill] sm:$0xff] %v2481_v35  ;;  %v2483_v36 = vld [vmem:[#allocation5 + $0xf8] sm:$0xff]  ;;  %v2487_v37 = vld [vmem:[#allocation5 + $0xe0] sm:$0xff] }
  0x1b   :  { %731 = vmatprep.subr.mxu0 %v2445_v23  ;;  %802 = vmatprep.subr.mxu1 %v2447_v24  ;;  %3718 = vst [vmem:[#allocation17_spill] sm:$0xff] %v2483_v36  ;;  %3719 = vst [vmem:[#allocation18_spill] sm:$0xff] %v2487_v37  ;;  %v2489_v38 = vld [vmem:[#allocation5 + $0xf0] sm:$0xff]  ;;  %v2493_v39 = vld [vmem:[#allocation5 + $0xc8] sm:$0xff] }
  0x1c   :  { %732 = vmatpush1.msra.mxu0 %v2451_v25  ;;  %803 = vmatpush1.msra.mxu1 %v2453_v26  ;;  %3720 = vst [vmem:[#allocation19_spill] sm:$0xff] %v2489_v38  ;;  %3721 = vst [vmem:[#allocation20_spill] sm:$0xff] %v2493_v39  ;;  %v2495_v40 = vld [vmem:[#allocation5 + $0xd8] sm:$0xff]  ;;  %v2499_v41 = vld [vmem:[#allocation5 + $0xc0] sm:$0xff] }
  0x1d   :  { %733 = vmatprep.subr.mxu0 %v2457_v27  ;;  %804 = vmatprep.subr.mxu1 %v2459_v28  ;;  %3722 = vst [vmem:[#allocation21_spill] sm:$0xff] %v2495_v40  ;;  %3723 = vst [vmem:[#allocation22_spill] sm:$0xff] %v2499_v41  ;;  %v2501_v42 = vld [vmem:[#allocation5 + $0xd0] sm:$0xff]  ;;  %v2505_v43 = vld [vmem:[#allocation5 + $0xa8] sm:$0xff] }
  0x1e   :  { %734 = vmatpush1.msra.mxu0 %v2463_v29  ;;  %805 = vmatpush1.msra.mxu1 %v2465_v30  ;;  %3724 = vst [vmem:[#allocation23_spill] sm:$0xff] %v2501_v42  ;;  %3725 = vst [vmem:[#allocation24_spill] sm:$0xff] %v2505_v43  ;;  %v2507_v44 = vld [vmem:[#allocation5 + $0xb8] sm:$0xff]  ;;  %v2511_v45 = vld [vmem:[#allocation5 + $0xa0] sm:$0xff] }
  0x1f   :  { %735 = vmatprep.subr.mxu0 %v2469_v31  ;;  %806 = vmatprep.subr.mxu1 %v2471_v32  ;;  %3726 = vst [vmem:[#allocation25_spill] sm:$0xff] %v2507_v44  ;;  %3727 = vst [vmem:[#allocation26_spill] sm:$0xff] %v2511_v45  ;;  %v2513_v46 = vld [vmem:[#allocation5 + $0xb0] sm:$0xff]  ;;  %v2517_v47 = vld [vmem:[#allocation5 + $0x88] sm:$0xff] }
  0x20   :  { %736 = vmatpush1.msra.mxu0 %v2475_v33  ;;  %807 = vmatpush1.msra.mxu1 %v2477_v34  ;;  %3728 = vst [vmem:[#allocation27_spill] sm:$0xff] %v2513_v46  ;;  %3729 = vst [vmem:[#allocation28_spill] sm:$0xff] %v2517_v47  ;;  %v2519_v48 = vld [vmem:[#allocation5 + $0x98] sm:$0xff]  ;;  %v2523_v49 = vld [vmem:[#allocation5 + $0x80] sm:$0xff] }
  0x21   :  { %737 = vmatprep.subr.mxu0 %v2481_v35  ;;  %808 = vmatprep.subr.mxu1 %v2483_v36  ;;  %3730 = vst [vmem:[#allocation29_spill] sm:$0xff] %v2519_v48  ;;  %3731 = vst [vmem:[#allocation30_spill] sm:$0xff] %v2523_v49  ;;  %v2525_v50 = vld [vmem:[#allocation5 + $0x90] sm:$0xff]  ;;  %v2529_v51 = vld [vmem:[#allocation5 + $0x68] sm:$0xff] }
  0x22   :  { %738 = vmatpush1.msra.mxu0 %v2487_v37  ;;  %809 = vmatpush1.msra.mxu1 %v2489_v38  ;;  %3732 = vst [vmem:[#allocation31_spill] sm:$0xff] %v2525_v50  ;;  %3733 = vst [vmem:[#allocation32_spill] sm:$0xff] %v2529_v51  ;;  %v2531_v52 = vld [vmem:[#allocation5 + $0x78] sm:$0xff]  ;;  %v2535_v53 = vld [vmem:[#allocation5 + $0x60] sm:$0xff] }
  0x23   :  { %739 = vmatprep.subr.mxu0 %v2493_v39  ;;  %810 = vmatprep.subr.mxu1 %v2495_v40  ;;  %3734 = vst [vmem:[#allocation33_spill] sm:$0xff] %v2531_v52  ;;  %3735 = vst [vmem:[#allocation34_spill] sm:$0xff] %v2535_v53  ;;  %v2537_v54 = vld [vmem:[#allocation5 + $0x70] sm:$0xff]  ;;  %v2541_v55 = vld [vmem:[#allocation5 + $0x48] sm:$0xff] }
  0x24   :  { %740 = vmatpush1.msra.mxu0 %v2499_v41  ;;  %811 = vmatpush1.msra.mxu1 %v2501_v42  ;;  %3736 = vst [vmem:[#allocation35_spill] sm:$0xff] %v2537_v54  ;;  %3737 = vst [vmem:[#allocation36_spill] sm:$0xff] %v2541_v55  ;;  %v2543_v56 = vld [vmem:[#allocation5 + $0x58] sm:$0xff]  ;;  %v2547_v57 = vld [vmem:[#allocation5 + $0x40] sm:$0xff] }
  0x25   :  { %741 = vmatprep.subr.mxu0 %v2505_v43  ;;  %812 = vmatprep.subr.mxu1 %v2507_v44  ;;  %3738 = vst [vmem:[#allocation37_spill] sm:$0xff] %v2543_v56  ;;  %3739 = vst [vmem:[#allocation38_spill] sm:$0xff] %v2547_v57  ;;  %v2549_v58 = vld [vmem:[#allocation5 + $0x50] sm:$0xff]  ;;  %v2553_v59 = vld [vmem:[#allocation5 + $0x28] sm:$0xff] }
  0x26   :  { %742 = vmatpush1.msra.mxu0 %v2511_v45  ;;  %813 = vmatpush1.msra.mxu1 %v2513_v46  ;;  %3740 = vst [vmem:[#allocation39_spill] sm:$0xff] %v2549_v58  ;;  %3741 = vst [vmem:[#allocation40_spill] sm:$0xff] %v2553_v59  ;;  %v2555_v60 = vld [vmem:[#allocation5 + $0x38] sm:$0xff]  ;;  %v2559_v61 = vld [vmem:[#allocation5 + $0x20] sm:$0xff] }
  0x27   :  { %743 = vmatprep.subr.mxu0 %v2517_v47  ;;  %814 = vmatprep.subr.mxu1 %v2519_v48  ;;  %3742 = vst [vmem:[#allocation41_spill] sm:$0xff] %v2555_v60  ;;  %3743 = vst [vmem:[#allocation42_spill] sm:$0xff] %v2559_v61  ;;  %v2561_v62 = vld [vmem:[#allocation5 + $0x30] sm:$0xff]  ;;  %v2565_v63 = vld [vmem:[#allocation5 + $0x8] sm:$0xff] }
  0x28   :  { %744 = vmatpush1.msra.mxu0 %v2523_v49  ;;  %815 = vmatpush1.msra.mxu1 %v2525_v50  ;;  %3744 = vst [vmem:[#allocation43_spill] sm:$0xff] %v2561_v62  ;;  %3745 = vst [vmem:[#allocation44_spill] sm:$0xff] %v2565_v63  ;;  %v2567_v0 = vld [vmem:[#allocation5 + $0x18] sm:$0xff]  ;;  %v2571_v1 = vld [vmem:[#allocation5] sm:$0xff] }
  0x29   :  { %745 = vmatprep.subr.mxu0 %v2529_v51  ;;  %816 = vmatprep.subr.mxu1 %v2531_v52  ;;  %3746 = vst [vmem:[#allocation45_spill] sm:$0xff] %v2567_v0  ;;  %3747 = vst [vmem:[#allocation46_spill] sm:$0xff] %v2571_v1  ;;  %v2573_v2 = vld [vmem:[#allocation5 + $0x10] sm:$0xff] }
  0x2a   :  { %746 = vmatpush1.msra.mxu0 %v2535_v53  ;;  %817 = vmatpush1.msra.mxu1 %v2537_v54  ;;  %3748 = vst [vmem:[#allocation47_spill] sm:$0xff] %v2573_v2 }
  0x2b   :  { %747 = vmatprep.subr.mxu0 %v2541_v55  ;;  %818 = vmatprep.subr.mxu1 %v2543_v56 }
  0x2c   :  { %748 = vmatpush1.msra.mxu0 %v2547_v57  ;;  %819 = vmatpush1.msra.mxu1 %v2549_v58  ;;  %v42_v58 = vld [vmem:[%s3503_s4] sm:$0xff] }
  0x2d   :  { %749 = vmatprep.subr.mxu0 %v2553_v59  ;;  %820 = vmatprep.subr.mxu1 %v2555_v60  ;;  %v110_v60 = vld [vmem:[%s3499_s0] sm:$0xff] }
  0x2e   :  { %750 = vmatpush1.msra.mxu0 %v2559_v61  ;;  %821 = vmatpush1.msra.mxu1 %v2561_v62 }
  0x2f   :  { %751 = vmatprep.subr.mxu0 %v2565_v63  ;;  %822 = vmatprep.subr.mxu1 %v2567_v0  ;;  %v3520_v0 = vmov 3  }
  0x30   :  { %752 = vmatpush1.msra.mxu0 %v2571_v1  ;;  %823 = vmatpush1.msra.mxu1 %v2573_v2  ;;  %v3522_v1 = vmov 1  }
  0x31   :  { %786 = vmatmul.mubr.f32.vlgmr.msra.gmra.mxu0 %v42_v58  ;;  %857 = vmatmul.mubr.f32.vlgmr.msra.gmra.mxu1 %v42_v58  ;;  %v111_v58 = vld [vmem:[%s3499_s0 + $0x8] sm:$0xff] }
  0x32   :  { %417 = vperm.xlu1 %2121, %v110_v60   ;;  %123 = vperm.xlu0 %2119, %v110_v60  }
  0x33   :  { %892 = vmatprep.subr.mxu0 %v2389_v3  ;;  %963 = vmatprep.subr.mxu1 %v2391_v4 }
  0x34   :  { %893 = vmatpush1.msra.mxu0 %v2393_v5  ;;  %964 = vmatpush1.msra.mxu1 %v2397_v6 }
  0x35   :  { %894 = vmatprep.subr.mxu0 %v2399_v7  ;;  %965 = vmatprep.subr.mxu1 %v2401_v8 }
  0x36   :  { %2122 = vset.pattern.permute.xlu1 %v3520_v0  ;;  %2120 = vset.pattern.permute.xlu0 %v3522_v1  ;;  %v3749_v0 = vmov 0   ;;  %v3751_v1 = vmov 2  }
  0x37   :  { %549 = vperm.xlu1 %2122, %v110_v60   ;;  %285 = vperm.xlu0 %2120, %v110_v60   ;;  %v3750_v60 = vmov 3  }
  0x38   :  { %895 = vmatpush1.msra.mxu0 %v2405_v9  ;;  %966 = vmatpush1.msra.mxu1 %v2407_v10 }
  0x39   :  { %896 = vmatprep.subr.mxu0 %v2409_v11  ;;  %967 = vmatprep.subr.mxu1 %v2413_v12 }
  0x3a   :  { %897 = vmatpush1.msra.mxu0 %v2415_v13  ;;  %968 = vmatpush1.msra.mxu1 %v2417_v14 }
  0x3b   :  { %2123 = vset.pattern.permute.xlu1 %v3749_v0  ;;  %289 = vperm.xlu0 %2120, %v111_v58  }
  0x3c   :  { %128 = vperm.xlu1 %2123, %v111_v58   ;;  %898 = vmatprep.subr.mxu0 %v2421_v15 }
  0x3d   :  { %969 = vmatprep.subr.mxu1 %v2423_v16  ;;  %899 = vmatpush1.msra.mxu0 %v2427_v17 }
  0x3e   :  { %970 = vmatpush1.msra.mxu1 %v2429_v18  ;;  %900 = vmatprep.subr.mxu0 %v2433_v19 }
  0x3f   :  { %2125 = vset.pattern.permute.xlu0 %v3750_v60  ;;  %971 = vmatprep.subr.mxu1 %v2435_v20  ;;  %v3753_v60 = vld [vmem:[#allocation41_spill] sm:$0xff] }
  0x40   :  { %2124 = vset.pattern.permute.xlu1 %v3751_v1  ;;  %553 = vperm.xlu0 %2125, %v111_v58  }
  0x41   :  { %421 = vperm.xlu1 %2124, %v111_v58   ;;  %901 = vmatpush1.msra.mxu0 %v2439_v21  ;;  %v3752_v58 = vld [vmem:[#allocation39_spill] sm:$0xff] }
  0x42   :  { %972 = vmatpush1.msra.mxu1 %v2441_v22  ;;  %902 = vmatprep.subr.mxu0 %v2445_v23 }
  0x43   :  { %973 = vmatprep.subr.mxu1 %v2447_v24  ;;  %903 = vmatpush1.msra.mxu0 %v2451_v25 }
  0x44   :  { %974 = vmatpush1.msra.mxu1 %v2453_v26  ;;  %904 = vmatprep.subr.mxu0 %v2457_v27 }
  0x45   :  { %975 = vmatprep.subr.mxu1 %v2459_v28  ;;  %905 = vmatpush1.msra.mxu0 %v2463_v29 }
  0x46   :  { %976 = vmatpush1.msra.mxu1 %v2465_v30  ;;  %906 = vmatprep.subr.mxu0 %v2469_v31 }
  0x47   :  { %977 = vmatprep.subr.mxu1 %v2471_v32  ;;  %907 = vmatpush1.msra.mxu0 %v2475_v33 }
  0x48   :  { %978 = vmatpush1.msra.mxu1 %v2477_v34  ;;  %908 = vmatprep.subr.mxu0 %v2481_v35 }
  0x49   :  { %979 = vmatprep.subr.mxu1 %v2483_v36  ;;  %909 = vmatpush1.msra.mxu0 %v2487_v37 }
  0x4a   :  { %980 = vmatpush1.msra.mxu1 %v2489_v38  ;;  %910 = vmatprep.subr.mxu0 %v2493_v39 }
  0x4b   :  { %981 = vmatprep.subr.mxu1 %v2495_v40  ;;  %911 = vmatpush1.msra.mxu0 %v2499_v41 }
  0x4c   :  { %982 = vmatpush1.msra.mxu1 %v2501_v42  ;;  %912 = vmatprep.subr.mxu0 %v2505_v43 }
  0x4d   :  { %983 = vmatprep.subr.mxu1 %v2507_v44  ;;  %913 = vmatpush1.msra.mxu0 %v2511_v45 }
  0x4e   :  { %984 = vmatpush1.msra.mxu1 %v2513_v46  ;;  %914 = vmatprep.subr.mxu0 %v2517_v47 }
  0x4f   :  { %985 = vmatprep.subr.mxu1 %v2519_v48  ;;  %915 = vmatpush1.msra.mxu0 %v2523_v49 }
  0x50   :  { %986 = vmatpush1.msra.mxu1 %v2525_v50  ;;  %916 = vmatprep.subr.mxu0 %v2529_v51 }
  0x51   :  { %987 = vmatprep.subr.mxu1 %v2531_v52  ;;  %917 = vmatpush1.msra.mxu0 %v2535_v53  ;;  %v3754_v53 = vld [vmem:[#allocation45_spill] sm:$0xff] }
  0x52   :  { %988 = vmatpush1.msra.mxu1 %v2537_v54  ;;  %918 = vmatprep.subr.mxu0 %v2541_v55  ;;  %v3755_v54 = vld [vmem:[#allocation46_spill] sm:$0xff]  ;;  %v3756_v55 = vmov 0.0  }
  0x53   :  { %989 = vmatprep.subr.mxu1 %v2543_v56  ;;  %919 = vmatpush1.msra.mxu0 %v2547_v57 }
  0x54   :  { %990 = vmatpush1.msra.mxu1 %v3752_v58  ;;  %920 = vmatprep.subr.mxu0 %v2553_v59 }
  0x55   :  { %991 = vmatprep.subr.mxu1 %v3753_v60  ;;  %921 = vmatpush1.msra.mxu0 %v2559_v61 }
  0x56   :  { %992 = vmatpush1.msra.mxu1 %v2561_v62  ;;  %922 = vmatprep.subr.mxu0 %v2565_v63  ;;  %v163_v62 = vlaneseq }
  0x57   :  { %993 = vmatprep.subr.mxu1 %v3754_v53  ;;  %923 = vmatpush1.msra.mxu0 %v3755_v54  ;;  %v118_v54 = vld [vmem:[%s3500_s1] sm:$0xff] }
  0x58   :  { %956 = vmatprep.mubr.f32.mxu0 %v3756_v55  ;;  %994 = vmatpush1.msra.mxu1 %v2573_v2  ;;  %v2665_v63 = vshrl.u32 %v163_v62, 7 }
  0x59   :  { %1027 = vmatprep.mubr.f32.mxu1 %v3756_v55  ;;  %1063 = vmatprep.subr.mxu0 %v2389_v3 }
  0x5a   :  { %1134 = vmatprep.subr.mxu1 %v2391_v4  ;;  %2126 = vset.pattern.permute.xlu1 %v3749_v0  ;;  %v165_v53 = vsub.s32 0, %v2665_v63  ;;  %v169_v55 = vsub.s32 4, %v2665_v63  ;;  %v238_v3 = vsub.s32 1, %v2665_v63  ;;  %v2676_v0 = vld [vmem:[%s3500_s1 + $0x8] sm:$0xff]  ;;  %v120_v4 = vld [vmem:[%s3502_s3] sm:$0xf] }
  0x5b   :  { %2128 = vset.pattern.permute.xlu0 %v3751_v1  ;;  %v2679_v1 = vsub.s32 2, %v2665_v63  ;;  %v322_v58 = vsub.s32 5, %v2665_v63  ;;  %v454_v57 = vsub.s32 6, %v2665_v63  ;;  %v586_v40 = vsub.s32 7, %v2665_v63 }
  0x5c   :  { %v166_v2 = vrot.slane %v118_v54, %v165_v53  ;;  %v170_v61 = vrot.slane %v118_v54, %v169_v55  ;;  %v319_v59 = vrot.slane %v118_v54, %v238_v3  ;;  %v174_v56 = vrot.slane %v2676_v0, %v165_v53 }
  0x5d   :  { %v451_v52 = vrot.slane %v118_v54, %v2679_v1  ;;  %v2690_v51 = vrot.slane %v120_v4, %v165_v53  ;;  %v323_v48 = vrot.slane %v118_v54, %v322_v58  ;;  %v455_v45 = vrot.slane %v118_v54, %v454_v57 }
  0x5e   :  { %v2684_v60 = vrot.slane %v166_v2, %v165_v53  ;;  %v2692_v50 = vrot.slane %v170_v61, %v165_v53  ;;  %v2695_v47 = vrot.slane %v319_v59, %v238_v3  ;;  %v246_v2 = vsub.s32 3, %v2665_v63 }
  0x5f   :  { %3758 = vst [vmem:[#allocation49_spill] sm:$0xff] %v2690_v51  ;;  %v2698_v44 = vrot.slane %v174_v56, %v165_v53  ;;  %v327_v43 = vrot.slane %v2676_v0, %v238_v3  ;;  %v2702_v42 = vrot.slane %v451_v52, %v2679_v1  ;;  %v2704_v41 = vrot.slane %v120_v4, %v238_v3 }
  0x60   :  { %3757 = vst [vmem:[#allocation48_spill] sm:$0xff] %v2684_v60  ;;  %3759 = vst [vmem:[#allocation50_spill] sm:$0xff] %v2692_v50  ;;  %v583_v61 = vrot.slane %v118_v54, %v246_v2  ;;  %v2709_v39 = vrot.slane %v323_v48, %v238_v3  ;;  %v459_v56 = vrot.slane %v2676_v0, %v2679_v1 }
  0x61   :  { %3760 = vst [vmem:[#allocation51_spill] sm:$0xff] %v2695_v47  ;;  %3761 = vst [vmem:[#allocation52_spill] sm:$0xff] %v2698_v44  ;;  %v178_v52 = vrot.slane %v2676_v0, %v169_v55  ;;  %v2716_v36 = vrot.slane %v120_v4, %v2679_v1  ;;  %v2719_v63 = vrot.slane %v327_v43, %v238_v3 }
  0x62   :  { %3762 = vst [vmem:[#allocation53_spill] sm:$0xff] %v2702_v42  ;;  %3763 = vst [vmem:[#allocation54_spill] sm:$0xff] %v2704_v41  ;;  %v2724_v48 = vrot.slane %v583_v61, %v246_v2  ;;  %v2730_v33 = vrot.slane %v459_v56, %v2679_v1  ;;  %v463_v56 = vrot.slane %v2676_v0, %v454_v57 }
  0x63   :  { %3764 = vst [vmem:[#allocation55_spill] sm:$0xff] %v2709_v39  ;;  %3765 = vst [vmem:[#allocation56_spill] sm:$0xff] %v2716_v36  ;;  %v2733_v43 = vrot.slane %v178_v52, %v165_v53 }
  0x64   :  { %3766 = vst [vmem:[#allocation57_spill] sm:$0xff] %v2719_v63  ;;  %3768 = vst [vmem:[#allocation59_spill] sm:$0xff] %v2724_v48 }
  0x65   :  { %3769 = vst [vmem:[#allocation60_spill] sm:$0xff] %v2730_v33 }
  0xad   :  { %v124_v62 = vpop.permute.xlu0 %123  ;;  %v418_v37 = vpop.permute.xlu1 %417 }
  0xae   :  { %v199_v49 = vmul.f32 %v2684_v60, %v124_v62  ;;  %v200_v60 = vmul.f32 %v2692_v50, %v124_v62  ;;  %v201_v35 = vmul.f32 %v2698_v44, %v124_v62  ;;  %v2722_v50 = vrot.slane %v455_v45, %v2679_v1 }
  0xaf   :  { %v331_v44 = vrot.slane %v2676_v0, %v322_v58  ;;  %v2743_v58 = vrot.slane %v120_v4, %v246_v2  ;;  %v202_v52 = vmul.f32 %v2733_v43, %v124_v62 }
  0xb0   :  { %v252_v59 = vadd.f32 %v2690_v51, %v199_v49  ;;  %3767 = vst [vmem:[#allocation58_spill] sm:$0xff] %v2722_v50  ;;  %v587_v49 = vrot.slane %v118_v54, %v586_v40  ;;  %v253_v51 = vadd.f32 %v2704_v41, %v200_v60  ;;  %v254_v45 = vadd.f32 %v2716_v36, %v201_v35 }
  0xb1   :  { %v591_v54 = vrot.slane %v2676_v0, %v246_v2  ;;  %v485_v60 = vmul.f32 %v2722_v50, %v418_v37  ;;  %v2745_v53 = vrot.slane %v331_v44, %v238_v3  ;;  %v486_v35 = vmul.f32 %v2730_v33, %v418_v37 }
  0xb2   :  { %v286_v46 = vpop.permute.xlu0 %285  ;;  %v550_v32 = vpop.permute.xlu1 %549  ;;  %v255_v4 = vadd.f32 %v2743_v58, %v202_v52 }
  0xb3   :  { %v352_v38 = vmul.f32 %v2695_v47, %v286_v46  ;;  %v484_v47 = vmul.f32 %v2702_v42, %v418_v37  ;;  %v353_v34 = vmul.f32 %v2709_v39, %v286_v46  ;;  %v354_v61 = vmul.f32 %v2719_v63, %v286_v46 }
  0xb4   :  { %v2738_v42 = vrot.slane %v587_v49, %v246_v2  ;;  %v2749_v36 = vrot.slane %v591_v54, %v246_v2  ;;  %v355_v3 = vmul.f32 %v2745_v53, %v286_v46 }
  0xb5   :  { %v384_v55 = vadd.f32 %v352_v38, %v252_v59  ;;  %v616_v38 = vmul.f32 %v2724_v48, %v550_v32  ;;  %v385_v59 = vadd.f32 %v353_v34, %v253_v51  ;;  %v386_v63 = vadd.f32 %v354_v61, %v254_v45 }
  0xb6   :  { %v595_v34 = vrot.slane %v2676_v0, %v586_v40  ;;  %v618_v51 = vmul.f32 %v2749_v36, %v550_v32 }
  0xb7   :  { %v516_v39 = vadd.f32 %v484_v47, %v384_v55  ;;  %v517_v41 = vadd.f32 %v485_v60, %v385_v59  ;;  %v617_v47 = vmul.f32 %v2738_v42, %v550_v32  ;;  %v2753_v55 = vrot.slane %v463_v56, %v2679_v1 }
  0xb8   :  { %v518_v44 = vadd.f32 %v486_v35, %v386_v63  ;;  %v2760_v54 = vrot.slane %v595_v34, %v246_v2  ;;  %v387_v59 = vadd.f32 %v355_v3, %v255_v4  ;;  %v44_v4 = vld [vmem:[%s3504_s5] sm:$0xff] }
  0xb9   :  { %v648_v49 = vadd.f32 %v616_v38, %v516_v39  ;;  %v649_v45 = vadd.f32 %v617_v47, %v517_v41  ;;  %v487_v39 = vmul.f32 %v2753_v55, %v418_v37 }
  0xba   :  { %v650_v1 = vadd.f32 %v618_v51, %v518_v44  ;;  %v619_v63 = vmul.f32 %v2760_v54, %v550_v32 }
  0xbb   :  { %v519_v46 = vadd.f32 %v487_v39, %v387_v59  ;;  %v3771_v59 = vld [vmem:[#allocation14_spill] sm:$0xff] }
  0xbd   :  { %v651_v41 = vadd.f32 %v619_v63, %v519_v46  ;;  %v3775_v46 = vld [vmem:[#allocation18_spill] sm:$0xff]  ;;  %v3776_v63 = vld [vmem:[#allocation19_spill] sm:$0xff] }
  0xf1   :  { %v787_v57 = vpop.f32.mrf.mxu0  ;;  %v858_v0 = vpop.f32.mrf.mxu1 }
  0xf2   :  { %v863_v62 = vadd.f32 %v787_v57, %v648_v49  ;;  %v865_v56 = vadd.f32 %v858_v0, %v650_v1  ;;  %v3772_v0 = vld [vmem:[#allocation15_spill] sm:$0xff] }
  0xf3   :  { %v789_v61 = vpop.f32.mrf.mxu0  ;;  %v860_v35 = vpop.f32.mrf.mxu1 }
  0xf4   :  { %v867_v60 = vmul.f32 0.5, %v863_v62  ;;  %v864_v38 = vadd.f32 %v789_v61, %v649_v45  ;;  %v866_v52 = vadd.f32 %v860_v35, %v651_v41  ;;  %v3777_v35 = vld [vmem:[#allocation20_spill] sm:$0xff]  ;;  %v3778_v41 = vld [vmem:[#allocation21_spill] sm:$0xff] }
  0xf6   :  { %2150 = vtanh.f32 %v867_v60  ;;  %v871_v40 = vmul.f32 0.5, %v864_v38  ;;  %v876_v37 = vmul.f32 0.5, %v866_v52  ;;  %v3770_v38 = vld [vmem:[#allocation13_spill] sm:$0xff]  ;;  %v3779_v52 = vld [vmem:[#allocation22_spill] sm:$0xff] }
  0xf8   :  { %2152 = vtanh.f32 %v871_v40  ;;  %v3773_v40 = vld [vmem:[#allocation16_spill] sm:$0xff] }
  0xf9   :  { %2154 = vtanh.f32 %v865_v56  ;;  %v3774_v56 = vld [vmem:[#allocation17_spill] sm:$0xff] }
  0xfa   :  { %2156 = vtanh.f32 %v876_v37  ;;  %v3780_v37 = vld [vmem:[#allocation23_spill] sm:$0xff] }
 0x103   :  { %v2151_v49 = vpop.eup %2150 }
 0x104   :  { %v869_v2 = vmul.f32 0.5, %v2151_v49  ;;  %v3781_v49 = vld [vmem:[#allocation24_spill] sm:$0xff] }
 0x105   :  { %v2153_v47 = vpop.eup %2152 }
 0x106   :  { %v870_v34 = vadd.f32 0.5, %v869_v2  ;;  %v873_v44 = vmul.f32 0.5, %v2153_v47  ;;  %v2155_v51 = vpop.eup %2154  ;;  %v3782_v2 = vld [vmem:[#allocation25_spill] sm:$0xff]  ;;  %v3783_v47 = vld [vmem:[#allocation26_spill] sm:$0xff] }
 0x107   :  { %v2157_v45 = vpop.eup %2156 }
 0x108   :  { %v874_v3 = vadd.f32 0.5, %v873_v44  ;;  %v881_v62 = vmul.f32 %v2155_v51, %v870_v34  ;;  %v878_v39 = vmul.f32 0.5, %v2157_v45  ;;  %v3784_v34 = vld [vmem:[#allocation27_spill] sm:$0xff]  ;;  %v3785_v44 = vld [vmem:[#allocation28_spill] sm:$0xff]  ;;  %v3791_v45 = vld [vmem:[#allocation34_spill] sm:$0xff] }
 0x109   :  { %v3788_v51 = vld [vmem:[#allocation31_spill] sm:$0xff] }
 0x10a   :  { %v880_v57 = vmul.f32 %v874_v3, %v44_v4  ;;  %v879_v61 = vadd.f32 0.5, %v878_v39  ;;  %v3786_v4 = vld [vmem:[#allocation29_spill] sm:$0xff]  ;;  %v3787_v3 = vld [vmem:[#allocation30_spill] sm:$0xff]  ;;  %v3792_v39 = vld [vmem:[#allocation35_spill] sm:$0xff] }
 0x10c   :  { %v2766_v32 = vadd.f32 %v881_v62, %v880_v57  ;;  %v3789_v57 = vld [vmem:[#allocation32_spill] sm:$0xff]  ;;  %v3790_v62 = vld [vmem:[#allocation33_spill] sm:$0xff] }
 0x10e   :  { %2158 = vtanh.f32 %v2766_v32 }
 0x11b   :  { %v2159_v60 = vpop.eup %2158 }
 0x11c   :  { %v884_v1 = vmul.f32 %v2159_v60, %v879_v61  ;;  %v3793_v61 = vld [vmem:[#allocation36_spill] sm:$0xff]  ;;  %v3794_v60 = vld [vmem:[#allocation37_spill] sm:$0xff] }
 0x11e   :  { %957 = vmatmul.mubr.f32.vlgmr.msra.gmra.mxu0 %v884_v1  ;;  %1028 = vmatmul.mubr.f32.vlgmr.msra.gmra.mxu1 %v884_v1  ;;  %v3795_v1 = vld [vmem:[#allocation38_spill] sm:$0xff] }
 0x11f   :  { %1064 = vmatpush1.msra.mxu0 %v2393_v5  ;;  %1135 = vmatpush1.msra.mxu1 %v2397_v6 }
 0x120   :  { %1065 = vmatprep.subr.mxu0 %v2399_v7  ;;  %1136 = vmatprep.subr.mxu1 %v2401_v8 }
 0x121   :  { %1066 = vmatpush1.msra.mxu0 %v2405_v9  ;;  %1137 = vmatpush1.msra.mxu1 %v2407_v10 }
 0x122   :  { %1067 = vmatprep.subr.mxu0 %v2409_v11  ;;  %1138 = vmatprep.subr.mxu1 %v2413_v12 }
 0x123   :  { %1068 = vmatpush1.msra.mxu0 %v2415_v13  ;;  %1139 = vmatpush1.msra.mxu1 %v2417_v14 }
 0x124   :  { %1069 = vmatprep.subr.mxu0 %v2421_v15  ;;  %1140 = vmatprep.subr.mxu1 %v2423_v16 }
 0x125   :  { %1070 = vmatpush1.msra.mxu0 %v2427_v17  ;;  %1141 = vmatpush1.msra.mxu1 %v2429_v18 }
 0x126   :  { %1071 = vmatprep.subr.mxu0 %v2433_v19  ;;  %1142 = vmatprep.subr.mxu1 %v2435_v20 }
 0x127   :  { %1072 = vmatpush1.msra.mxu0 %v2439_v21  ;;  %1143 = vmatpush1.msra.mxu1 %v2441_v22 }
 0x128   :  { %1073 = vmatprep.subr.mxu0 %v2445_v23  ;;  %1144 = vmatprep.subr.mxu1 %v2447_v24 }
 0x129   :  { %1074 = vmatpush1.msra.mxu0 %v2451_v25  ;;  %1145 = vmatpush1.msra.mxu1 %v2453_v26 }
 0x12a   :  { %1075 = vmatprep.subr.mxu0 %v2457_v27  ;;  %1146 = vmatprep.subr.mxu1 %v2459_v28 }
 0x12b   :  { %1076 = vmatpush1.msra.mxu0 %v2463_v29  ;;  %1147 = vmatpush1.msra.mxu1 %v2465_v30 }
 0x12c   :  { %1077 = vmatprep.subr.mxu0 %v2469_v31  ;;  %1148 = vmatprep.subr.mxu1 %v3770_v38 }
 0x12d   :  { %1078 = vmatpush1.msra.mxu0 %v3771_v59  ;;  %1149 = vmatpush1.msra.mxu1 %v3772_v0 }
 0x12e   :  { %1079 = vmatprep.subr.mxu0 %v3773_v40  ;;  %1150 = vmatprep.subr.mxu1 %v3774_v56  ;;  %v3819_v56 = vld [vmem:[#allocation56_spill] sm:$0xff]  ;;  %v3820_v40 = vld [vmem:[#allocation57_spill] sm:$0xff] }
 0x12f   :  { %1080 = vmatpush1.msra.mxu0 %v3775_v46  ;;  %1151 = vmatpush1.msra.mxu1 %v3776_v63 }
 0x130   :  { %1081 = vmatprep.subr.mxu0 %v3777_v35  ;;  %1152 = vmatprep.subr.mxu1 %v3778_v41  ;;  %v3817_v35 = vld [vmem:[#allocation55_spill] sm:$0xff] }
 0x131   :  { %1082 = vmatpush1.msra.mxu0 %v3779_v52  ;;  %1153 = vmatpush1.msra.mxu1 %v3780_v37  ;;  %v3815_v37 = vld [vmem:[#allocation52_spill] sm:$0xff] }
 0x132   :  { %1083 = vmatprep.subr.mxu0 %v3781_v49  ;;  %1154 = vmatprep.subr.mxu1 %v3782_v2 }
 0x133   :  { %1084 = vmatpush1.msra.mxu0 %v3783_v47  ;;  %1155 = vmatpush1.msra.mxu1 %v3784_v34  ;;  %v3814_v47 = vld [vmem:[#allocation51_spill] sm:$0xff] }
 0x134   :  { %1085 = vmatprep.subr.mxu0 %v3785_v44  ;;  %1156 = vmatprep.subr.mxu1 %v3786_v4  ;;  %v3796_v44 = vld [vmem:[#allocation39_spill] sm:$0xff]  ;;  %v3797_v4 = vld [vmem:[#allocation40_spill] sm:$0xff] }
 0x135   :  { %1086 = vmatpush1.msra.mxu0 %v3787_v3  ;;  %1157 = vmatpush1.msra.mxu1 %v3788_v51  ;;  %v3798_v3 = vld [vmem:[#allocation41_spill] sm:$0xff]  ;;  %v3799_v51 = vld [vmem:[#allocation42_spill] sm:$0xff] }
 0x136   :  { %1087 = vmatprep.subr.mxu0 %v3789_v57  ;;  %1158 = vmatprep.subr.mxu1 %v3790_v62  ;;  %v3800_v57 = vld [vmem:[#allocation43_spill] sm:$0xff]  ;;  %v3801_v62 = vld [vmem:[#allocation44_spill] sm:$0xff] }
 0x137   :  { %1088 = vmatpush1.msra.mxu0 %v3791_v45  ;;  %1159 = vmatpush1.msra.mxu1 %v3792_v39  ;;  %v3802_v45 = vld [vmem:[#allocation45_spill] sm:$0xff]  ;;  %v3803_v39 = vld [vmem:[#allocation46_spill] sm:$0xff] }
 0x138   :  { %1089 = vmatprep.subr.mxu0 %v3793_v61  ;;  %1160 = vmatprep.subr.mxu1 %v3794_v60  ;;  %v3804_v61 = vmov 0.0   ;;  %v3805_v60 = vld [vmem:[#allocation47_spill] sm:$0xff] }
 0x139   :  { %1090 = vmatpush1.msra.mxu0 %v3795_v1  ;;  %1161 = vmatpush1.msra.mxu1 %v3796_v44  ;;  %v3806_v44 = vld [vmem:[#allocation11_spill] sm:$0xff]  ;;  %v3813_v1 = vld [vmem:[#allocation49_spill] sm:$0xff] }
 0x13a   :  { %1091 = vmatprep.subr.mxu0 %v3797_v4  ;;  %1162 = vmatprep.subr.mxu1 %v3798_v3  ;;  %v3807_v4 = vld [vmem:[#allocation12_spill] sm:$0xff] }
 0x13b   :  { %1092 = vmatpush1.msra.mxu0 %v3799_v51  ;;  %1163 = vmatpush1.msra.mxu1 %v3800_v57  ;;  %v112_v57 = vld [vmem:[%s3499_s0 + $0x10] sm:$0xff]  ;;  %v3812_v51 = vld [vmem:[#allocation50_spill] sm:$0xff] }
 0x13c   :  { %1093 = vmatprep.subr.mxu0 %v3801_v62  ;;  %1164 = vmatprep.subr.mxu1 %v3802_v45  ;;  %v3808_v62 = vmov 1  }
 0x13d   :  { %1094 = vmatpush1.msra.mxu0 %v3803_v39  ;;  %1127 = vmatprep.mubr.f32.mxu0 %v3804_v61  ;;  %v3809_v39 = vmov 3  }
 0x13e   :  { %1165 = vmatpush1.msra.mxu1 %v3805_v60  ;;  %1198 = vmatprep.mubr.f32.mxu1 %v3804_v61  ;;  %v3810_v60 = vmov 0   ;;  %v129_v61 = vpop.permute.xlu1 %128 }
 0x13f   :  { %1234 = vmatprep.subr.mxu0 %v3806_v44  ;;  %1305 = vmatprep.subr.mxu1 %v3807_v4  ;;  %v3811_v44 = vld [vmem:[#allocation48_spill] sm:$0xff]  ;;  %v290_v4 = vpop.permute.xlu0 %289  ;;  %v204_v3 = vmul.f32 %v3812_v51, %v129_v61  ;;  %v205_v52 = vmul.f32 %v3815_v37, %v129_v61 }
 0x140   :  { %133 = vperm.xlu1 %2126, %v112_v57   ;;  %425 = vperm.xlu0 %2128, %v112_v57   ;;  %v203_v45 = vmul.f32 %v3811_v44, %v129_v61  ;;  %v356_v2 = vmul.f32 %v3814_v47, %v290_v4  ;;  %v358_v0 = vmul.f32 %v3820_v40, %v290_v4 }
 0x141   :  { %v258_v44 = vadd.f32 %v3819_v56, %v205_v52  ;;  %v206_v47 = vmul.f32 %v2733_v43, %v129_v61  ;;  %v359_v52 = vmul.f32 %v2745_v53, %v290_v4 }
 0x142   :  { %v256_v34 = vadd.f32 %v3813_v1, %v203_v45  ;;  %v422_v49 = vpop.permute.xlu1 %421 }
 0x143   :  { %v554_v46 = vpop.permute.xlu0 %553  ;;  %v489_v51 = vmul.f32 %v2722_v50, %v422_v49  ;;  %v491_v61 = vmul.f32 %v2753_v55, %v422_v49 }
 0x144   :  { %2127 = vset.pattern.permute.xlu1 %v3808_v62  ;;  %2131 = vset.pattern.permute.xlu0 %v3808_v62  ;;  %v3816_v62 = vld [vmem:[#allocation54_spill] sm:$0xff]  ;;  %v620_v37 = vmul.f32 %v2724_v48, %v554_v46 }
 0x145   :  { %293 = vperm.xlu1 %2127, %v112_v57   ;;  %v257_v41 = vadd.f32 %v3816_v62, %v204_v3  ;;  %v490_v3 = vmul.f32 %v2730_v33, %v422_v49  ;;  %v390_v62 = vadd.f32 %v358_v0, %v258_v44 }
 0x147   :  { %v522_v50 = vadd.f32 %v490_v3, %v390_v62 }
 0x149   :  { %2129 = vset.pattern.permute.xlu1 %v3809_v39  ;;  %v357_v39 = vmul.f32 %v3817_v35, %v290_v4 }
 0x14a   :  { %557 = vperm.xlu1 %2129, %v112_v57   ;;  %v3818_v57 = vld [vmem:[#allocation53_spill] sm:$0xff] }
 0x14b   :  { %v488_v63 = vmul.f32 %v3818_v57, %v422_v49  ;;  %v389_v45 = vadd.f32 %v357_v39, %v257_v41  ;;  %v621_v57 = vmul.f32 %v2738_v42, %v554_v46  ;;  %v622_v41 = vmul.f32 %v2749_v36, %v554_v46 }
 0x14d   :  { %v521_v35 = vadd.f32 %v489_v51, %v389_v45  ;;  %v654_v44 = vadd.f32 %v622_v41, %v522_v50 }
 0x14e   :  { %2130 = vset.pattern.permute.xlu1 %v3810_v60  ;;  %v388_v60 = vadd.f32 %v356_v2, %v256_v34  ;;  %v259_v2 = vadd.f32 %v2743_v58, %v206_v47 }
 0x14f   :  { %v653_v39 = vadd.f32 %v621_v57, %v521_v35 }
 0x150   :  { %v520_v1 = vadd.f32 %v488_v63, %v388_v60  ;;  %v391_v0 = vadd.f32 %v359_v52, %v259_v2 }
 0x152   :  { %v652_v34 = vadd.f32 %v620_v37, %v520_v1  ;;  %v523_v4 = vadd.f32 %v491_v61, %v391_v0  ;;  %v623_v37 = vmul.f32 %v2760_v54, %v554_v46  ;;  %v3851_v0 = vld [vmem:[#allocation45_spill] sm:$0xff] }
 0x154   :  { %v655_v62 = vadd.f32 %v623_v37, %v523_v4  ;;  %v2933_v4 = vld [vmem:[#allocation5 + $0x1f8] sm:$0xff] }
 0x155   :  { %3856 = vst [vmem:[#allocation14_spill] sm:$0xff] %v2933_v4  ;;  %v113_v37 = vld [vmem:[%s3499_s0 + $0x18] sm:$0xff] }
 0x156   :  { %138 = vperm.xlu1 %2130, %v113_v37   ;;  %297 = vperm.xlu0 %2131, %v113_v37  }
 0x1de   :  { %v958_v40 = vpop.f32.mrf.mxu0  ;;  %v1029_v51 = vpop.f32.mrf.mxu1 }
 0x1df   :  { %v1034_v56 = vadd.f32 %v958_v40, %v652_v34  ;;  %v1036_v47 = vadd.f32 %v1029_v51, %v654_v44  ;;  %v3852_v51 = vld [vmem:[#allocation46_spill] sm:$0xff]  ;;  %v3853_v44 = vmov 0.0  }
 0x1e0   :  { %v960_v63 = vpop.f32.mrf.mxu0  ;;  %v1031_v40 = vpop.f32.mrf.mxu1 }
 0x1e1   :  { %v1038_v60 = vmul.f32 0.5, %v1034_v56  ;;  %v1035_v33 = vadd.f32 %v960_v63, %v653_v39  ;;  %v1037_v1 = vadd.f32 %v1031_v40, %v655_v62  ;;  %v3857_v40 = vmov 2  }
 0x1e2   :  { %2132 = vset.pattern.permute.xlu1 %v3857_v40  ;;  %v3858_v62 = vmov 0  }
 0x1e3   :  { %2160 = vtanh.f32 %v1038_v60  ;;  %v1042_v45 = vmul.f32 0.5, %v1035_v33  ;;  %v1047_v35 = vmul.f32 0.5, %v1037_v1  ;;  %2134 = vset.pattern.permute.xlu0 %v3858_v62  ;;  %429 = vperm.xlu1 %2132, %v113_v37   ;;  %v3859_v1 = vmov 3  }
 0x1e5   :  { %2162 = vtanh.f32 %v1042_v45  ;;  %v3854_v45 = vld [vmem:[#allocation47_spill] sm:$0xff] }
 0x1e6   :  { %2164 = vtanh.f32 %v1036_v47  ;;  %v2930_v47 = vld [vmem:[#allocation5 + $0x1e8] sm:$0xff] }
 0x1e7   :  { %2166 = vtanh.f32 %v1047_v35  ;;  %3855 = vst [vmem:[#allocation13_spill] sm:$0xff] %v2930_v47  ;;  %2133 = vset.pattern.permute.xlu1 %v3859_v1  ;;  %v3860_v35 = vmov 1  }
 0x1e8   :  { %561 = vperm.xlu1 %2133, %v113_v37  }
 0x1ec   :  { %2135 = vset.pattern.permute.xlu1 %v3860_v35  ;;  %v3075_v35 = vld [vmem:[#allocation5 + $0xc0] sm:$0xff] }
 0x1f0   :  { %v2161_v57 = vpop.eup %2160 }
 0x1f1   :  { %v1040_v3 = vmul.f32 0.5, %v2161_v57  ;;  %v134_v57 = vpop.permute.xlu1 %133 }
 0x1f2   :  { %v2163_v49 = vpop.eup %2162 }
 0x1f3   :  { %v1041_v56 = vadd.f32 0.5, %v1040_v3  ;;  %v1044_v34 = vmul.f32 0.5, %v2163_v49  ;;  %v2165_v52 = vpop.eup %2164  ;;  %v3861_v3 = vld [vmem:[#allocation48_spill] sm:$0xff] }
 0x1f4   :  { %v2167_v46 = vpop.eup %2166  ;;  %v207_v49 = vmul.f32 %v3861_v3, %v134_v57 }
 0x1f5   :  { %v1045_v2 = vadd.f32 0.5, %v1044_v34  ;;  %v1052_v50 = vmul.f32 %v2165_v52, %v1041_v56  ;;  %v1049_v39 = vmul.f32 0.5, %v2167_v46  ;;  %v294_v56 = vpop.permute.xlu1 %293  ;;  %v3862_v34 = vld [vmem:[#allocation50_spill] sm:$0xff]  ;;  %v3863_v52 = vld [vmem:[#allocation49_spill] sm:$0xff] }
 0x1f7   :  { %v1051_v33 = vmul.f32 %v1045_v2, %v2766_v32  ;;  %v1050_v63 = vadd.f32 0.5, %v1049_v39  ;;  %v3848_v32 = vld [vmem:[#allocation42_spill] sm:$0xff]  ;;  %v208_v2 = vmul.f32 %v3862_v34, %v134_v57  ;;  %v426_v39 = vpop.permute.xlu0 %425 }
 0x1f9   :  { %v2863_v41 = vadd.f32 %v1052_v50, %v1051_v33  ;;  %v260_v33 = vadd.f32 %v3863_v52, %v207_v49  ;;  %v3864_v50 = vld [vmem:[#allocation51_spill] sm:$0xff] }
 0x1fa   :  { %v360_v46 = vmul.f32 %v3864_v50, %v294_v56 }
 0x1fb   :  { %2168 = vtanh.f32 %v2863_v41 }
 0x208   :  { %v2169_v61 = vpop.eup %2168 }
 0x209   :  { %v1055_v60 = vmul.f32 %v2169_v61, %v1050_v63  ;;  %v3865_v63 = vld [vmem:[#allocation52_spill] sm:$0xff] }
 0x20a   :  { %v209_v61 = vmul.f32 %v3865_v63, %v134_v57 }
 0x20b   :  { %1128 = vmatmul.mubr.f32.vlgmr.msra.gmra.mxu0 %v1055_v60  ;;  %1199 = vmatmul.mubr.f32.vlgmr.msra.gmra.mxu1 %v1055_v60  ;;  %v3866_v60 = vld [vmem:[#allocation54_spill] sm:$0xff] }
 0x20c   :  { %1235 = vmatpush1.msra.mxu0 %v2393_v5  ;;  %1306 = vmatpush1.msra.mxu1 %v2397_v6  ;;  %v3821_v5 = vld [vmem:[#allocation15_spill] sm:$0xff]  ;;  %v3822_v6 = vld [vmem:[#allocation16_spill] sm:$0xff] }
 0x20d   :  { %1236 = vmatprep.subr.mxu0 %v2399_v7  ;;  %1307 = vmatprep.subr.mxu1 %v2401_v8  ;;  %v3823_v7 = vld [vmem:[#allocation17_spill] sm:$0xff]  ;;  %v3824_v8 = vld [vmem:[#allocation18_spill] sm:$0xff] }
 0x20e   :  { %1237 = vmatpush1.msra.mxu0 %v2405_v9  ;;  %1308 = vmatpush1.msra.mxu1 %v2407_v10  ;;  %v3825_v9 = vld [vmem:[#allocation19_spill] sm:$0xff]  ;;  %v3826_v10 = vld [vmem:[#allocation20_spill] sm:$0xff] }
 0x20f   :  { %1238 = vmatprep.subr.mxu0 %v2409_v11  ;;  %1309 = vmatprep.subr.mxu1 %v2413_v12  ;;  %v3827_v11 = vld [vmem:[#allocation21_spill] sm:$0xff]  ;;  %v3828_v12 = vld [vmem:[#allocation22_spill] sm:$0xff] }
 0x210   :  { %1239 = vmatpush1.msra.mxu0 %v2415_v13  ;;  %1310 = vmatpush1.msra.mxu1 %v2417_v14  ;;  %v3829_v13 = vld [vmem:[#allocation23_spill] sm:$0xff]  ;;  %v3830_v14 = vld [vmem:[#allocation24_spill] sm:$0xff]  ;;  %3881 = vst [vmem:[#allocation21_spill] sm:$0xff] %v3075_v35 }
 0x211   :  { %1240 = vmatprep.subr.mxu0 %v2421_v15  ;;  %1311 = vmatprep.subr.mxu1 %v2423_v16  ;;  %v3831_v15 = vld [vmem:[#allocation25_spill] sm:$0xff]  ;;  %v3832_v16 = vld [vmem:[#allocation26_spill] sm:$0xff] }
 0x212   :  { %1241 = vmatpush1.msra.mxu0 %v2427_v17  ;;  %1312 = vmatpush1.msra.mxu1 %v2429_v18  ;;  %v3833_v17 = vld [vmem:[#allocation27_spill] sm:$0xff]  ;;  %v3834_v18 = vld [vmem:[#allocation28_spill] sm:$0xff] }
 0x213   :  { %1242 = vmatprep.subr.mxu0 %v2433_v19  ;;  %1313 = vmatprep.subr.mxu1 %v2435_v20  ;;  %v3835_v19 = vld [vmem:[#allocation29_spill] sm:$0xff]  ;;  %v3836_v20 = vld [vmem:[#allocation30_spill] sm:$0xff] }
 0x214   :  { %1243 = vmatpush1.msra.mxu0 %v2439_v21  ;;  %1314 = vmatpush1.msra.mxu1 %v2441_v22  ;;  %v3837_v21 = vld [vmem:[#allocation31_spill] sm:$0xff]  ;;  %v3838_v22 = vld [vmem:[#allocation32_spill] sm:$0xff] }
 0x215   :  { %1244 = vmatprep.subr.mxu0 %v2445_v23  ;;  %1315 = vmatprep.subr.mxu1 %v2447_v24  ;;  %v3839_v23 = vld [vmem:[#allocation33_spill] sm:$0xff]  ;;  %v3840_v24 = vld [vmem:[#allocation34_spill] sm:$0xff] }
 0x216   :  { %1245 = vmatpush1.msra.mxu0 %v2451_v25  ;;  %1316 = vmatpush1.msra.mxu1 %v2453_v26  ;;  %v3841_v25 = vld [vmem:[#allocation35_spill] sm:$0xff]  ;;  %v3842_v26 = vld [vmem:[#allocation36_spill] sm:$0xff] }
 0x217   :  { %1246 = vmatprep.subr.mxu0 %v2457_v27  ;;  %1317 = vmatprep.subr.mxu1 %v2459_v28  ;;  %v3843_v27 = vld [vmem:[#allocation37_spill] sm:$0xff]  ;;  %v3844_v28 = vld [vmem:[#allocation38_spill] sm:$0xff] }
 0x218   :  { %1247 = vmatpush1.msra.mxu0 %v2463_v29  ;;  %1318 = vmatpush1.msra.mxu1 %v2465_v30  ;;  %v3845_v29 = vld [vmem:[#allocation39_spill] sm:$0xff]  ;;  %v3846_v30 = vld [vmem:[#allocation40_spill] sm:$0xff] }
 0x219   :  { %1248 = vmatprep.subr.mxu0 %v2469_v31  ;;  %1319 = vmatprep.subr.mxu1 %v3770_v38  ;;  %v3847_v31 = vld [vmem:[#allocation41_spill] sm:$0xff]  ;;  %v3849_v38 = vld [vmem:[#allocation43_spill] sm:$0xff] }
 0x21a   :  { %1249 = vmatpush1.msra.mxu0 %v3771_v59  ;;  %1320 = vmatpush1.msra.mxu1 %v3821_v5  ;;  %v3850_v59 = vld [vmem:[#allocation44_spill] sm:$0xff]  ;;  %v261_v5 = vadd.f32 %v3866_v60, %v208_v2 }
 0x21b   :  { %1250 = vmatprep.subr.mxu0 %v3822_v6  ;;  %1321 = vmatprep.subr.mxu1 %v3823_v7  ;;  %v3867_v6 = vld [vmem:[#allocation55_spill] sm:$0xff] }
 0x21c   :  { %1251 = vmatpush1.msra.mxu0 %v3824_v8  ;;  %1322 = vmatpush1.msra.mxu1 %v3825_v9  ;;  %v361_v7 = vmul.f32 %v3867_v6, %v294_v56  ;;  %v3868_v8 = vld [vmem:[#allocation53_spill] sm:$0xff] }
 0x21d   :  { %1252 = vmatprep.subr.mxu0 %v3826_v10  ;;  %1323 = vmatprep.subr.mxu1 %v3827_v11  ;;  %v492_v9 = vmul.f32 %v3868_v8, %v426_v39  ;;  %v392_v10 = vadd.f32 %v360_v46, %v260_v33  ;;  %v558_v11 = vpop.permute.xlu1 %557 }
 0x21e   :  { %1253 = vmatpush1.msra.mxu0 %v3828_v12  ;;  %1324 = vmatpush1.msra.mxu1 %v3829_v13  ;;  %v3869_v12 = vld [vmem:[#allocation56_spill] sm:$0xff] }
 0x21f   :  { %1254 = vmatprep.subr.mxu0 %v3830_v14  ;;  %1325 = vmatprep.subr.mxu1 %v3831_v15  ;;  %v262_v13 = vadd.f32 %v3869_v12, %v209_v61  ;;  %v3870_v14 = vld [vmem:[#allocation57_spill] sm:$0xff]  ;;  %v627_v61 = vmul.f32 %v2760_v54, %v558_v11 }
 0x220   :  { %1255 = vmatpush1.msra.mxu0 %v3832_v16  ;;  %1326 = vmatpush1.msra.mxu1 %v3833_v17  ;;  %v362_v15 = vmul.f32 %v3870_v14, %v294_v56  ;;  %v3871_v16 = vld [vmem:[#allocation58_spill] sm:$0xff] }
 0x221   :  { %1256 = vmatprep.subr.mxu0 %v3834_v18  ;;  %1327 = vmatprep.subr.mxu1 %v3835_v19  ;;  %v493_v17 = vmul.f32 %v3871_v16, %v426_v39  ;;  %v393_v18 = vadd.f32 %v361_v7, %v261_v5  ;;  %v210_v19 = vmul.f32 %v2733_v43, %v134_v57 }
 0x222   :  { %1257 = vmatpush1.msra.mxu0 %v3836_v20  ;;  %1328 = vmatpush1.msra.mxu1 %v3837_v21  ;;  %v524_v20 = vadd.f32 %v492_v9, %v392_v10  ;;  %v624_v21 = vmul.f32 %v2724_v48, %v558_v11 }
 0x223   :  { %1258 = vmatprep.subr.mxu0 %v3838_v22  ;;  %1329 = vmatprep.subr.mxu1 %v3839_v23  ;;  %v3872_v22 = vld [vmem:[#allocation60_spill] sm:$0xff] }
 0x224   :  { %1259 = vmatpush1.msra.mxu0 %v3840_v24  ;;  %1330 = vmatpush1.msra.mxu1 %v3841_v25  ;;  %v494_v23 = vmul.f32 %v3872_v22, %v426_v39  ;;  %v394_v24 = vadd.f32 %v362_v15, %v262_v13  ;;  %v525_v25 = vadd.f32 %v493_v17, %v393_v18 }
 0x225   :  { %1260 = vmatprep.subr.mxu0 %v3842_v26  ;;  %1331 = vmatprep.subr.mxu1 %v3843_v27  ;;  %v625_v26 = vmul.f32 %v2738_v42, %v558_v11  ;;  %v263_v27 = vadd.f32 %v2743_v58, %v210_v19 }
 0x226   :  { %1261 = vmatpush1.msra.mxu0 %v3844_v28  ;;  %1332 = vmatpush1.msra.mxu1 %v3845_v29  ;;  %v363_v28 = vmul.f32 %v2745_v53, %v294_v56  ;;  %v656_v29 = vadd.f32 %v624_v21, %v524_v20 }
 0x227   :  { %1262 = vmatprep.subr.mxu0 %v3846_v30  ;;  %1333 = vmatprep.subr.mxu1 %v3847_v31 }
 0x228   :  { %1263 = vmatpush1.msra.mxu0 %v3848_v32  ;;  %1334 = vmatpush1.msra.mxu1 %v3849_v38  ;;  %v526_v32 = vadd.f32 %v494_v23, %v394_v24  ;;  %v626_v38 = vmul.f32 %v2749_v36, %v558_v11  ;;  %v395_v57 = vadd.f32 %v363_v28, %v263_v27 }
 0x229   :  { %1264 = vmatprep.subr.mxu0 %v3850_v59  ;;  %1335 = vmatprep.subr.mxu1 %v3851_v0  ;;  %v657_v59 = vadd.f32 %v625_v26, %v525_v25 }
 0x22a   :  { %1265 = vmatpush1.msra.mxu0 %v3852_v51  ;;  %1298 = vmatprep.mubr.f32.mxu0 %v3853_v44  ;;  %v495_v51 = vmul.f32 %v2753_v55, %v426_v39  ;;  %v658_v2 = vadd.f32 %v626_v38, %v526_v32  ;;  %v2979_v32 = vld [vmem:[#allocation5 + $0x1c0] sm:$0xff]  ;;  %v2982_v38 = vld [vmem:[#allocation5 + $0x1d0] sm:$0xff] }
 0x22b   :  { %1336 = vmatpush1.msra.mxu1 %v3854_v45  ;;  %1369 = vmatprep.mubr.f32.mxu1 %v3853_v44 }
 0x22c   :  { %1405 = vmatprep.subr.mxu0 %v2930_v47  ;;  %1476 = vmatprep.subr.mxu1 %v2933_v4  ;;  %v527_v56 = vadd.f32 %v495_v51, %v395_v57  ;;  %v2991_v51 = vld [vmem:[#allocation5 + $0x1a0] sm:$0xff]  ;;  %v3000_v57 = vld [vmem:[#allocation5 + $0x198] sm:$0xff] }
 0x22e   :  { %v659_v7 = vadd.f32 %v627_v61, %v527_v56  ;;  %v3015_v56 = vld [vmem:[#allocation5 + $0x160] sm:$0xff]  ;;  %v3018_v61 = vld [vmem:[#allocation5 + $0x170] sm:$0xff] }
 0x2cb   :  { %v1129_v30 = vpop.f32.mrf.mxu0  ;;  %v1200_v49 = vpop.f32.mrf.mxu1 }
 0x2cc   :  { %v1205_v31 = vadd.f32 %v1129_v30, %v656_v29  ;;  %v1207_v46 = vadd.f32 %v1200_v49, %v658_v2  ;;  %v2967_v29 = vld [vmem:[#allocation5 + $0x1e0] sm:$0xff]  ;;  %v2970_v30 = vld [vmem:[#allocation5 + $0x1f0] sm:$0xff] }
 0x2cd   :  { %v1131_v0 = vpop.f32.mrf.mxu0  ;;  %v1202_v5 = vpop.f32.mrf.mxu1  ;;  %v3003_v49 = vld [vmem:[#allocation5 + $0x180] sm:$0xff]  ;;  %v3006_v2 = vld [vmem:[#allocation5 + $0x190] sm:$0xff] }
 0x2ce   :  { %v1209_v45 = vmul.f32 0.5, %v1205_v31  ;;  %v1206_v37 = vadd.f32 %v1131_v0, %v657_v59  ;;  %v1208_v9 = vadd.f32 %v1202_v5, %v659_v7  ;;  %v2976_v31 = vld [vmem:[#allocation5 + $0x1d8] sm:$0xff]  ;;  %v2985_v59 = vld [vmem:[#allocation5 + $0x1a8] sm:$0xff] }
 0x2cf   :  { %v2988_v0 = vld [vmem:[#allocation5 + $0x1b8] sm:$0xff]  ;;  %v3021_v5 = vld [vmem:[#allocation5 + $0x148] sm:$0xff] }
 0x2d0   :  { %2170 = vtanh.f32 %v1209_v45  ;;  %v1213_v33 = vmul.f32 0.5, %v1206_v37  ;;  %v1218_v10 = vmul.f32 0.5, %v1208_v9  ;;  %v2994_v45 = vld [vmem:[#allocation5 + $0x1b0] sm:$0xff]  ;;  %v2997_v37 = vld [vmem:[#allocation5 + $0x188] sm:$0xff]  ;;  %v3024_v7 = vld [vmem:[#allocation5 + $0x158] sm:$0xff] }
 0x2d1   :  { %v3027_v9 = vld [vmem:[#allocation5 + $0x140] sm:$0xff] }
 0x2d2   :  { %2172 = vtanh.f32 %v1213_v33  ;;  %v3009_v33 = vld [vmem:[#allocation5 + $0x168] sm:$0xff] }
 0x2d3   :  { %2174 = vtanh.f32 %v1207_v46  ;;  %v3012_v46 = vld [vmem:[#allocation5 + $0x178] sm:$0xff] }
 0x2d4   :  { %2176 = vtanh.f32 %v1218_v10  ;;  %v3030_v10 = vld [vmem:[#allocation5 + $0x150] sm:$0xff] }
 0x2dd   :  { %v2171_v13 = vpop.eup %2170 }
 0x2de   :  { %v1211_v15 = vmul.f32 0.5, %v2171_v13  ;;  %v3033_v13 = vld [vmem:[#allocation5 + $0x128] sm:$0xff] }
 0x2df   :  { %v2173_v39 = vpop.eup %2172 }
 0x2e0   :  { %v1212_v17 = vadd.f32 0.5, %v1211_v15  ;;  %v1215_v18 = vmul.f32 0.5, %v2173_v39  ;;  %v2175_v20 = vpop.eup %2174  ;;  %v3036_v15 = vld [vmem:[#allocation5 + $0x138] sm:$0xff]  ;;  %v3039_v39 = vld [vmem:[#allocation5 + $0x120] sm:$0xff] }
 0x2e1   :  { %v2177_v11 = vpop.eup %2176 }
 0x2e2   :  { %v1216_v19 = vadd.f32 0.5, %v1215_v18  ;;  %v1223_v23 = vmul.f32 %v2175_v20, %v1212_v17  ;;  %v1220_v25 = vmul.f32 0.5, %v2177_v11  ;;  %v3042_v17 = vld [vmem:[#allocation5 + $0x130] sm:$0xff]  ;;  %v3045_v18 = vld [vmem:[#allocation5 + $0x108] sm:$0xff]  ;;  %v3051_v20 = vld [vmem:[#allocation5 + $0x100] sm:$0xff] }
 0x2e3   :  { %3873 = vst [vmem:[#allocation11_spill] sm:$0xff] %v3051_v20  ;;  %v3060_v11 = vld [vmem:[#allocation5 + $0xf8] sm:$0xff] }
 0x2e4   :  { %v1222_v21 = vmul.f32 %v1216_v19, %v2863_v41  ;;  %v1221_v26 = vadd.f32 0.5, %v1220_v25  ;;  %v2973_v41 = vld [vmem:[#allocation5 + $0x1c8] sm:$0xff]  ;;  %v3048_v19 = vld [vmem:[#allocation5 + $0x118] sm:$0xff]  ;;  %3876 = vst [vmem:[#allocation16_spill] sm:$0xff] %v3060_v11  ;;  %v3063_v25 = vld [vmem:[#allocation5 + $0xe0] sm:$0xff] }
 0x2e5   :  { %3877 = vst [vmem:[#allocation17_spill] sm:$0xff] %v3063_v25 }
 0x2e6   :  { %v2964_v24 = vadd.f32 %v1223_v23, %v1222_v21  ;;  %v3054_v21 = vld [vmem:[#allocation5 + $0x110] sm:$0xff]  ;;  %v3057_v23 = vld [vmem:[#allocation5 + $0xe8] sm:$0xff] }
 0x2e7   :  { %3874 = vst [vmem:[#allocation12_spill] sm:$0xff] %v3054_v21  ;;  %3875 = vst [vmem:[#allocation15_spill] sm:$0xff] %v3057_v23 }
 0x2e8   :  { %2178 = vtanh.f32 %v2964_v24 }
 0x2f5   :  { %v2179_v27 = vpop.eup %2178 }
 0x2f6   :  { %v1226_v28 = vmul.f32 %v2179_v27, %v1221_v26  ;;  %v3066_v26 = vld [vmem:[#allocation5 + $0xf0] sm:$0xff]  ;;  %v3069_v27 = vld [vmem:[#allocation5 + $0xc8] sm:$0xff] }
 0x2f7   :  { %3878 = vst [vmem:[#allocation18_spill] sm:$0xff] %v3066_v26  ;;  %3879 = vst [vmem:[#allocation19_spill] sm:$0xff] %v3069_v27 }
 0x2f8   :  { %1299 = vmatmul.mubr.f32.vlgmr.msra.gmra.mxu0 %v1226_v28  ;;  %1370 = vmatmul.mubr.f32.vlgmr.msra.gmra.mxu1 %v1226_v28  ;;  %v3072_v28 = vld [vmem:[#allocation5 + $0xd8] sm:$0xff] }
 0x2f9   :  { %1406 = vmatpush1.msra.mxu0 %v2967_v29  ;;  %1477 = vmatpush1.msra.mxu1 %v2970_v30  ;;  %3880 = vst [vmem:[#allocation20_spill] sm:$0xff] %v3072_v28 }
 0x2fa   :  { %1407 = vmatprep.subr.mxu0 %v2973_v41  ;;  %1478 = vmatprep.subr.mxu1 %v2976_v31 }
 0x2fb   :  { %1408 = vmatpush1.msra.mxu0 %v2979_v32  ;;  %1479 = vmatpush1.msra.mxu1 %v2982_v38 }
 0x2fc   :  { %1409 = vmatprep.subr.mxu0 %v2985_v59  ;;  %1480 = vmatprep.subr.mxu1 %v2988_v0 }
 0x2fd   :  { %1410 = vmatpush1.msra.mxu0 %v2991_v51  ;;  %1481 = vmatpush1.msra.mxu1 %v2994_v45 }
 0x2fe   :  { %1411 = vmatprep.subr.mxu0 %v2997_v37  ;;  %1482 = vmatprep.subr.mxu1 %v3000_v57 }
 0x2ff   :  { %1412 = vmatpush1.msra.mxu0 %v3003_v49  ;;  %1483 = vmatpush1.msra.mxu1 %v3006_v2 }
 0x300   :  { %1413 = vmatprep.subr.mxu0 %v3009_v33  ;;  %1484 = vmatprep.subr.mxu1 %v3012_v46 }
 0x301   :  { %1414 = vmatpush1.msra.mxu0 %v3015_v56  ;;  %1485 = vmatpush1.msra.mxu1 %v3018_v61 }
 0x302   :  { %1415 = vmatprep.subr.mxu0 %v3021_v5  ;;  %1486 = vmatprep.subr.mxu1 %v3024_v7 }
 0x303   :  { %1416 = vmatpush1.msra.mxu0 %v3027_v9  ;;  %1487 = vmatpush1.msra.mxu1 %v3030_v10 }
 0x304   :  { %1417 = vmatprep.subr.mxu0 %v3033_v13  ;;  %1488 = vmatprep.subr.mxu1 %v3036_v15 }
 0x305   :  { %1418 = vmatpush1.msra.mxu0 %v3039_v39  ;;  %1489 = vmatpush1.msra.mxu1 %v3042_v17 }
 0x306   :  { %1419 = vmatprep.subr.mxu0 %v3045_v18  ;;  %1490 = vmatprep.subr.mxu1 %v3048_v19 }
 0x307   :  { %1420 = vmatpush1.msra.mxu0 %v3051_v20  ;;  %1491 = vmatpush1.msra.mxu1 %v3054_v21 }
 0x308   :  { %1421 = vmatprep.subr.mxu0 %v3057_v23  ;;  %1492 = vmatprep.subr.mxu1 %v3060_v11  ;;  %v3078_v11 = vld [vmem:[#allocation5 + $0xd0] sm:$0xff] }
 0x309   :  { %1422 = vmatpush1.msra.mxu0 %v3063_v25  ;;  %1493 = vmatpush1.msra.mxu1 %v3066_v26  ;;  %3882 = vst [vmem:[#allocation22_spill] sm:$0xff] %v3078_v11  ;;  %v3081_v25 = vld [vmem:[#allocation5 + $0xa8] sm:$0xff]  ;;  %v3084_v26 = vld [vmem:[#allocation5 + $0xb8] sm:$0xff] }
 0x30a   :  { %1423 = vmatprep.subr.mxu0 %v3069_v27  ;;  %1494 = vmatprep.subr.mxu1 %v3072_v28  ;;  %3883 = vst [vmem:[#allocation23_spill] sm:$0xff] %v3081_v25  ;;  %3884 = vst [vmem:[#allocation24_spill] sm:$0xff] %v3084_v26  ;;  %v3087_v27 = vld [vmem:[#allocation5 + $0xa0] sm:$0xff]  ;;  %v3090_v28 = vld [vmem:[#allocation5 + $0xb0] sm:$0xff] }
 0x30b   :  { %1424 = vmatpush1.msra.mxu0 %v3075_v35  ;;  %1495 = vmatpush1.msra.mxu1 %v3078_v11  ;;  %3885 = vst [vmem:[#allocation25_spill] sm:$0xff] %v3087_v27  ;;  %3886 = vst [vmem:[#allocation26_spill] sm:$0xff] %v3090_v28  ;;  %v3093_v35 = vld [vmem:[#allocation5 + $0x88] sm:$0xff]  ;;  %v3096_v11 = vld [vmem:[#allocation5 + $0x98] sm:$0xff] }
 0x30c   :  { %1425 = vmatprep.subr.mxu0 %v3081_v25  ;;  %1496 = vmatprep.subr.mxu1 %v3084_v26  ;;  %3887 = vst [vmem:[#allocation27_spill] sm:$0xff] %v3093_v35  ;;  %3888 = vst [vmem:[#allocation28_spill] sm:$0xff] %v3096_v11  ;;  %v3099_v25 = vld [vmem:[#allocation5 + $0x80] sm:$0xff]  ;;  %v3102_v26 = vld [vmem:[#allocation5 + $0x90] sm:$0xff] }
 0x30d   :  { %1426 = vmatpush1.msra.mxu0 %v3087_v27  ;;  %1497 = vmatpush1.msra.mxu1 %v3090_v28  ;;  %3889 = vst [vmem:[#allocation29_spill] sm:$0xff] %v3099_v25  ;;  %3890 = vst [vmem:[#allocation30_spill] sm:$0xff] %v3102_v26  ;;  %v3105_v27 = vld [vmem:[#allocation5 + $0x68] sm:$0xff]  ;;  %v3108_v28 = vld [vmem:[#allocation5 + $0x78] sm:$0xff] }
 0x30e   :  { %1427 = vmatprep.subr.mxu0 %v3093_v35  ;;  %1498 = vmatprep.subr.mxu1 %v3096_v11  ;;  %3891 = vst [vmem:[#allocation31_spill] sm:$0xff] %v3105_v27  ;;  %3892 = vst [vmem:[#allocation32_spill] sm:$0xff] %v3108_v28  ;;  %v3111_v35 = vld [vmem:[#allocation5 + $0x60] sm:$0xff]  ;;  %v3114_v11 = vld [vmem:[#allocation5 + $0x70] sm:$0xff] }
 0x30f   :  { %1428 = vmatpush1.msra.mxu0 %v3099_v25  ;;  %1499 = vmatpush1.msra.mxu1 %v3102_v26  ;;  %3893 = vst [vmem:[#allocation33_spill] sm:$0xff] %v3111_v35  ;;  %3894 = vst [vmem:[#allocation34_spill] sm:$0xff] %v3114_v11  ;;  %v3117_v25 = vld [vmem:[#allocation5 + $0x48] sm:$0xff]  ;;  %v3120_v26 = vld [vmem:[#allocation5 + $0x58] sm:$0xff] }
 0x310   :  { %1429 = vmatprep.subr.mxu0 %v3105_v27  ;;  %1500 = vmatprep.subr.mxu1 %v3108_v28  ;;  %3895 = vst [vmem:[#allocation35_spill] sm:$0xff] %v3117_v25  ;;  %3896 = vst [vmem:[#allocation36_spill] sm:$0xff] %v3120_v26  ;;  %v3123_v27 = vld [vmem:[#allocation5 + $0x40] sm:$0xff]  ;;  %v3126_v28 = vld [vmem:[#allocation5 + $0x50] sm:$0xff] }
 0x311   :  { %1430 = vmatpush1.msra.mxu0 %v3111_v35  ;;  %1501 = vmatpush1.msra.mxu1 %v3114_v11  ;;  %3897 = vst [vmem:[#allocation37_spill] sm:$0xff] %v3123_v27  ;;  %3898 = vst [vmem:[#allocation38_spill] sm:$0xff] %v3126_v28  ;;  %v3129_v35 = vld [vmem:[#allocation5 + $0x28] sm:$0xff]  ;;  %v3132_v11 = vld [vmem:[#allocation5 + $0x38] sm:$0xff] }
 0x312   :  { %1431 = vmatprep.subr.mxu0 %v3117_v25  ;;  %1502 = vmatprep.subr.mxu1 %v3120_v26  ;;  %3899 = vst [vmem:[#allocation39_spill] sm:$0xff] %v3129_v35  ;;  %3900 = vst [vmem:[#allocation40_spill] sm:$0xff] %v3132_v11  ;;  %v3135_v25 = vld [vmem:[#allocation5 + $0x20] sm:$0xff]  ;;  %v3138_v26 = vld [vmem:[#allocation5 + $0x30] sm:$0xff] }
 0x313   :  { %1432 = vmatpush1.msra.mxu0 %v3123_v27  ;;  %1503 = vmatpush1.msra.mxu1 %v3126_v28  ;;  %3901 = vst [vmem:[#allocation41_spill] sm:$0xff] %v3135_v25  ;;  %3902 = vst [vmem:[#allocation42_spill] sm:$0xff] %v3138_v26  ;;  %v3141_v27 = vld [vmem:[#allocation5 + $0x8] sm:$0xff]  ;;  %v3144_v28 = vld [vmem:[#allocation5 + $0x18] sm:$0xff] }
 0x314   :  { %1433 = vmatprep.subr.mxu0 %v3129_v35  ;;  %1504 = vmatprep.subr.mxu1 %v3132_v11  ;;  %3903 = vst [vmem:[#allocation43_spill] sm:$0xff] %v3141_v27  ;;  %3904 = vst [vmem:[#allocation44_spill] sm:$0xff] %v3144_v28  ;;  %v3147_v35 = vld [vmem:[#allocation5] sm:$0xff]  ;;  %v3151_v11 = vld [vmem:[#allocation5 + $0x10] sm:$0xff] }
 0x315   :  { %1434 = vmatpush1.msra.mxu0 %v3135_v25  ;;  %1505 = vmatpush1.msra.mxu1 %v3138_v26  ;;  %3905 = vst [vmem:[#allocation45_spill] sm:$0xff] %v3147_v35  ;;  %3906 = vst [vmem:[#allocation46_spill] sm:$0xff] %v3151_v11 }
 0x316   :  { %1435 = vmatprep.subr.mxu0 %v3141_v27  ;;  %1506 = vmatprep.subr.mxu1 %v3144_v28  ;;  %v114_v28 = vld [vmem:[%s3499_s0 + $0x20] sm:$0xff] }
 0x317   :  { %1436 = vmatpush1.msra.mxu0 %v3147_v35  ;;  %1469 = vmatprep.mubr.f32.mxu0 %v3853_v44 }
 0x318   :  { %1507 = vmatpush1.msra.mxu1 %v3151_v11  ;;  %1540 = vmatprep.mubr.f32.mxu1 %v3853_v44  ;;  %v139_v11 = vpop.permute.xlu1 %138 }
 0x319   :  { %1576 = vmatprep.subr.mxu0 %v2930_v47  ;;  %1647 = vmatprep.subr.mxu1 %v2933_v4  ;;  %v211_v47 = vmul.f32 %v3861_v3, %v139_v11  ;;  %v298_v4 = vpop.permute.xlu0 %297  ;;  %v212_v44 = vmul.f32 %v3862_v34, %v139_v11  ;;  %v213_v25 = vmul.f32 %v3865_v63, %v139_v11 }
 0x31a   :  { %301 = vperm.xlu1 %2135, %v114_v28   ;;  %143 = vperm.xlu0 %2134, %v114_v28   ;;  %v364_v26 = vmul.f32 %v3864_v50, %v298_v4  ;;  %v366_v34 = vmul.f32 %v3870_v14, %v298_v4 }
 0x31b   :  { %v264_v27 = vadd.f32 %v3863_v52, %v211_v47  ;;  %v266_v3 = vadd.f32 %v3869_v12, %v213_v25  ;;  %v214_v47 = vmul.f32 %v2733_v43, %v139_v11  ;;  %v367_v25 = vmul.f32 %v2745_v53, %v298_v4 }
 0x31c   :  { %v430_v35 = vpop.permute.xlu1 %429 }
 0x31d   :  { %v497_v21 = vmul.f32 %v3871_v16, %v430_v35 }
 0x31e   :  { %2136 = vset.pattern.permute.xlu1 %v3857_v40  ;;  %2137 = vset.pattern.permute.xlu0 %v3859_v1  ;;  %v265_v1 = vadd.f32 %v3866_v60, %v212_v44  ;;  %v498_v44 = vmul.f32 %v3872_v22, %v430_v35  ;;  %v398_v60 = vadd.f32 %v366_v34, %v266_v3 }
 0x31f   :  { %433 = vperm.xlu1 %2136, %v114_v28   ;;  %565 = vperm.xlu0 %2137, %v114_v28   ;;  %v365_v28 = vmul.f32 %v3867_v6, %v298_v4 }
 0x320   :  { %v562_v23 = vpop.permute.xlu1 %561  ;;  %v530_v14 = vadd.f32 %v498_v44, %v398_v60 }
 0x321   :  { %v397_v20 = vadd.f32 %v365_v28, %v265_v1  ;;  %v628_v63 = vmul.f32 %v2724_v48, %v562_v23  ;;  %v630_v1 = vmul.f32 %v2749_v36, %v562_v23 }
 0x323   :  { %2138 = vset.pattern.permute.xlu1 %v3858_v62  ;;  %2140 = vset.pattern.permute.xlu0 %v3857_v40  ;;  %v496_v62 = vmul.f32 %v3868_v8, %v430_v35  ;;  %v396_v40 = vadd.f32 %v364_v26, %v264_v27  ;;  %v529_v6 = vadd.f32 %v497_v21, %v397_v20 }
 0x324   :  { %v629_v8 = vmul.f32 %v2738_v42, %v562_v23  ;;  %v267_v26 = vadd.f32 %v2743_v58, %v214_v47  ;;  %v662_v20 = vadd.f32 %v630_v1, %v530_v14 }
 0x325   :  { %v528_v52 = vadd.f32 %v496_v62, %v396_v40  ;;  %v499_v62 = vmul.f32 %v2753_v55, %v430_v35 }
 0x326   :  { %v661_v11 = vadd.f32 %v629_v8, %v529_v6  ;;  %v399_v3 = vadd.f32 %v367_v25, %v267_v26 }
 0x327   :  { %v660_v27 = vadd.f32 %v628_v63, %v528_v52  ;;  %v631_v52 = vmul.f32 %v2760_v54, %v562_v23 }
 0x328   :  { %v531_v4 = vadd.f32 %v499_v62, %v399_v3  ;;  %v3908_v3 = vld [vmem:[#allocation12_spill] sm:$0xff] }
 0x32a   :  { %v663_v60 = vadd.f32 %v631_v52, %v531_v4  ;;  %v3913_v4 = vld [vmem:[#allocation19_spill] sm:$0xff]  ;;  %v3914_v52 = vld [vmem:[#allocation20_spill] sm:$0xff] }
 0x3b8   :  { %v1300_v16 = vpop.f32.mrf.mxu0  ;;  %v1371_v34 = vpop.f32.mrf.mxu1 }
 0x3b9   :  { %v1376_v12 = vadd.f32 %v1300_v16, %v660_v27  ;;  %v1378_v47 = vadd.f32 %v1371_v34, %v662_v20  ;;  %v3909_v34 = vld [vmem:[#allocation15_spill] sm:$0xff]  ;;  %v3910_v20 = vld [vmem:[#allocation16_spill] sm:$0xff] }
 0x3ba   :  { %v1302_v40 = vpop.f32.mrf.mxu0  ;;  %v1373_v63 = vpop.f32.mrf.mxu1 }
 0x3bb   :  { %v1380_v28 = vmul.f32 0.5, %v1376_v12  ;;  %v1377_v22 = vadd.f32 %v1302_v40, %v661_v11  ;;  %v1379_v16 = vadd.f32 %v1373_v63, %v663_v60  ;;  %v3915_v63 = vld [vmem:[#allocation21_spill] sm:$0xff]  ;;  %v3916_v60 = vld [vmem:[#allocation22_spill] sm:$0xff] }
 0x3bd   :  { %2180 = vtanh.f32 %v1380_v28  ;;  %v1384_v21 = vmul.f32 0.5, %v1377_v22  ;;  %v1389_v6 = vmul.f32 0.5, %v1379_v16  ;;  %v3917_v16 = vld [vmem:[#allocation23_spill] sm:$0xff] }
 0x3bf   :  { %2182 = vtanh.f32 %v1384_v21  ;;  %v3911_v21 = vld [vmem:[#allocation17_spill] sm:$0xff] }
 0x3c0   :  { %2184 = vtanh.f32 %v1378_v47  ;;  %v3912_v47 = vld [vmem:[#allocation18_spill] sm:$0xff] }
 0x3c1   :  { %2186 = vtanh.f32 %v1389_v6  ;;  %v3918_v6 = vld [vmem:[#allocation24_spill] sm:$0xff] }
 0x3ca   :  { %v2181_v8 = vpop.eup %2180 }
 0x3cb   :  { %v1382_v44 = vmul.f32 0.5, %v2181_v8  ;;  %v3919_v8 = vld [vmem:[#allocation25_spill] sm:$0xff] }
 0x3cc   :  { %v2183_v35 = vpop.eup %2182 }
 0x3cd   :  { %v1383_v12 = vadd.f32 0.5, %v1382_v44  ;;  %v1386_v27 = vmul.f32 0.5, %v2183_v35  ;;  %v2185_v25 = vpop.eup %2184  ;;  %v3920_v44 = vld [vmem:[#allocation26_spill] sm:$0xff]  ;;  %v3921_v35 = vld [vmem:[#allocation27_spill] sm:$0xff] }
 0x3ce   :  { %v2187_v23 = vpop.eup %2186 }
 0x3cf   :  { %v1387_v26 = vadd.f32 0.5, %v1386_v27  ;;  %v1394_v22 = vmul.f32 %v2185_v25, %v1383_v12  ;;  %v1391_v11 = vmul.f32 0.5, %v2187_v23  ;;  %v3922_v12 = vld [vmem:[#allocation28_spill] sm:$0xff]  ;;  %v3923_v27 = vld [vmem:[#allocation29_spill] sm:$0xff]  ;;  %v3925_v25 = vld [vmem:[#allocation31_spill] sm:$0xff] }
 0x3d0   :  { %v3928_v23 = vld [vmem:[#allocation34_spill] sm:$0xff] }
 0x3d1   :  { %v1393_v14 = vmul.f32 %v1387_v26, %v2964_v24  ;;  %v1392_v40 = vadd.f32 0.5, %v1391_v11  ;;  %v3907_v24 = vld [vmem:[#allocation11_spill] sm:$0xff]  ;;  %v3924_v26 = vld [vmem:[#allocation30_spill] sm:$0xff] }
 0x3d2   :  { %v3929_v11 = vld [vmem:[#allocation35_spill] sm:$0xff] }
 0x3d3   :  { %v3185_v1 = vadd.f32 %v1394_v22, %v1393_v14  ;;  %v3926_v14 = vld [vmem:[#allocation32_spill] sm:$0xff]  ;;  %v3927_v22 = vld [vmem:[#allocation33_spill] sm:$0xff] }
 0x3d5   :  { %2188 = vtanh.f32 %v3185_v1 }
 0x3e2   :  { %v2189_v62 = vpop.eup %2188 }
 0x3e3   :  { %v1397_v28 = vmul.f32 %v2189_v62, %v1392_v40  ;;  %v3930_v40 = vld [vmem:[#allocation36_spill] sm:$0xff]  ;;  %v3931_v62 = vld [vmem:[#allocation37_spill] sm:$0xff] }
 0x3e5   :  { %1470 = vmatmul.mubr.f32.vlgmr.msra.gmra.mxu0 %v1397_v28  ;;  %1541 = vmatmul.mubr.f32.vlgmr.msra.gmra.mxu1 %v1397_v28  ;;  %v3932_v28 = vld [vmem:[#allocation38_spill] sm:$0xff] }
 0x3e6   :  { %1577 = vmatpush1.msra.mxu0 %v2967_v29  ;;  %1648 = vmatpush1.msra.mxu1 %v2970_v30 }
 0x3e7   :  { %1578 = vmatprep.subr.mxu0 %v2973_v41  ;;  %1649 = vmatprep.subr.mxu1 %v2976_v31 }
 0x3e8   :  { %1579 = vmatpush1.msra.mxu0 %v2979_v32  ;;  %1650 = vmatpush1.msra.mxu1 %v2982_v38 }
 0x3e9   :  { %1580 = vmatprep.subr.mxu0 %v2985_v59  ;;  %1651 = vmatprep.subr.mxu1 %v2988_v0 }
 0x3ea   :  { %1581 = vmatpush1.msra.mxu0 %v2991_v51  ;;  %1652 = vmatpush1.msra.mxu1 %v2994_v45 }
 0x3eb   :  { %1582 = vmatprep.subr.mxu0 %v2997_v37  ;;  %1653 = vmatprep.subr.mxu1 %v3000_v57 }
 0x3ec   :  { %1583 = vmatpush1.msra.mxu0 %v3003_v49  ;;  %1654 = vmatpush1.msra.mxu1 %v3006_v2 }
 0x3ed   :  { %1584 = vmatprep.subr.mxu0 %v3009_v33  ;;  %1655 = vmatprep.subr.mxu1 %v3012_v46 }
 0x3ee   :  { %1585 = vmatpush1.msra.mxu0 %v3015_v56  ;;  %1656 = vmatpush1.msra.mxu1 %v3018_v61 }
 0x3ef   :  { %1586 = vmatprep.subr.mxu0 %v3021_v5  ;;  %1657 = vmatprep.subr.mxu1 %v3024_v7 }
 0x3f0   :  { %1587 = vmatpush1.msra.mxu0 %v3027_v9  ;;  %1658 = vmatpush1.msra.mxu1 %v3030_v10 }
 0x3f1   :  { %1588 = vmatprep.subr.mxu0 %v3033_v13  ;;  %1659 = vmatprep.subr.mxu1 %v3036_v15 }
 0x3f2   :  { %1589 = vmatpush1.msra.mxu0 %v3039_v39  ;;  %1660 = vmatpush1.msra.mxu1 %v3042_v17 }
 0x3f3   :  { %1590 = vmatprep.subr.mxu0 %v3045_v18  ;;  %1661 = vmatprep.subr.mxu1 %v3048_v19 }
 0x3f4   :  { %1591 = vmatpush1.msra.mxu0 %v3907_v24  ;;  %1662 = vmatpush1.msra.mxu1 %v3908_v3  ;;  %v3957_v3 = vld [vmem:[#allocation60_spill] sm:$0xff] }
 0x3f5   :  { %1592 = vmatprep.subr.mxu0 %v3909_v34  ;;  %1663 = vmatprep.subr.mxu1 %v3910_v20 }
 0x3f6   :  { %1593 = vmatpush1.msra.mxu0 %v3911_v21  ;;  %1664 = vmatpush1.msra.mxu1 %v3912_v47  ;;  %v3954_v47 = vld [vmem:[#allocation57_spill] sm:$0xff] }
 0x3f7   :  { %1594 = vmatprep.subr.mxu0 %v3913_v4  ;;  %1665 = vmatprep.subr.mxu1 %v3914_v52 }
 0x3f8   :  { %1595 = vmatpush1.msra.mxu0 %v3915_v63  ;;  %1666 = vmatpush1.msra.mxu1 %v3916_v60  ;;  %v3952_v63 = vld [vmem:[#allocation54_spill] sm:$0xff] }
 0x3f9   :  { %1596 = vmatprep.subr.mxu0 %v3917_v16  ;;  %1667 = vmatprep.subr.mxu1 %v3918_v6  ;;  %v3950_v6 = vld [vmem:[#allocation52_spill] sm:$0xff] }
 0x3fa   :  { %1597 = vmatpush1.msra.mxu0 %v3919_v8  ;;  %1668 = vmatpush1.msra.mxu1 %v3920_v44 }
 0x3fb   :  { %1598 = vmatprep.subr.mxu0 %v3921_v35  ;;  %1669 = vmatprep.subr.mxu1 %v3922_v12  ;;  %v3933_v12 = vld [vmem:[#allocation39_spill] sm:$0xff]  ;;  %v3949_v35 = vld [vmem:[#allocation49_spill] sm:$0xff] }
 0x3fc   :  { %1599 = vmatpush1.msra.mxu0 %v3923_v27  ;;  %1670 = vmatpush1.msra.mxu1 %v3924_v26  ;;  %v3934_v27 = vld [vmem:[#allocation40_spill] sm:$0xff]  ;;  %v3935_v26 = vld [vmem:[#allocation41_spill] sm:$0xff] }
 0x3fd   :  { %1600 = vmatprep.subr.mxu0 %v3925_v25  ;;  %1671 = vmatprep.subr.mxu1 %v3926_v14  ;;  %v3936_v25 = vld [vmem:[#allocation42_spill] sm:$0xff]  ;;  %v3937_v14 = vld [vmem:[#allocation43_spill] sm:$0xff] }
 0x3fe   :  { %1601 = vmatpush1.msra.mxu0 %v3927_v22  ;;  %1672 = vmatpush1.msra.mxu1 %v3928_v23  ;;  %v3938_v22 = vld [vmem:[#allocation44_spill] sm:$0xff]  ;;  %v3939_v23 = vld [vmem:[#allocation45_spill] sm:$0xff] }
 0x3ff   :  { %1602 = vmatprep.subr.mxu0 %v3929_v11  ;;  %1673 = vmatprep.subr.mxu1 %v3930_v40  ;;  %v3940_v11 = vmov 0.0   ;;  %v3941_v40 = vld [vmem:[#allocation46_spill] sm:$0xff] }
 0x400   :  { %1603 = vmatpush1.msra.mxu0 %v3931_v62  ;;  %1674 = vmatpush1.msra.mxu1 %v3932_v28  ;;  %v3942_v28 = vld [vmem:[#allocation13_spill] sm:$0xff] }
 0x401   :  { %1604 = vmatprep.subr.mxu0 %v3933_v12  ;;  %1675 = vmatprep.subr.mxu1 %v3934_v27  ;;  %v3943_v12 = vld [vmem:[#allocation14_spill] sm:$0xff] }
 0x402   :  { %1605 = vmatpush1.msra.mxu0 %v3935_v26  ;;  %1676 = vmatpush1.msra.mxu1 %v3936_v25  ;;  %v115_v25 = vld [vmem:[%s3499_s0 + $0x28] sm:$0xff]  ;;  %v3948_v27 = vld [vmem:[#allocation50_spill] sm:$0xff] }
 0x403   :  { %1606 = vmatprep.subr.mxu0 %v3937_v14  ;;  %1677 = vmatprep.subr.mxu1 %v3938_v22  ;;  %v3944_v14 = vmov 1   ;;  %v3947_v22 = vld [vmem:[#allocation48_spill] sm:$0xff] }
 0x404   :  { %1607 = vmatpush1.msra.mxu0 %v3939_v23  ;;  %1640 = vmatprep.mubr.f32.mxu0 %v3940_v11  ;;  %v3945_v23 = vmov 3  }
 0x405   :  { %1678 = vmatpush1.msra.mxu1 %v3941_v40  ;;  %1711 = vmatprep.mubr.f32.mxu1 %v3940_v11  ;;  %v3946_v40 = vmov 0   ;;  %v144_v11 = vpop.permute.xlu0 %143 }
 0x406   :  { %1747 = vmatprep.subr.mxu0 %v3942_v28  ;;  %1818 = vmatprep.subr.mxu1 %v3943_v12  ;;  %v302_v28 = vpop.permute.xlu1 %301  ;;  %v215_v12 = vmul.f32 %v3947_v22, %v144_v11  ;;  %v216_v62 = vmul.f32 %v3948_v27, %v144_v11  ;;  %v217_v16 = vmul.f32 %v3950_v6, %v144_v11  ;;  %v3955_v22 = vld [vmem:[#allocation56_spill] sm:$0xff] }
 0x407   :  { %148 = vperm.xlu1 %2138, %v115_v25   ;;  %437 = vperm.xlu0 %2140, %v115_v25   ;;  %v368_v26 = vmul.f32 %v3864_v50, %v302_v28  ;;  %v370_v21 = vmul.f32 %v3954_v47, %v302_v28  ;;  %v3956_v50 = vld [vmem:[#allocation58_spill] sm:$0xff]  ;;  %v218_v6 = vmul.f32 %v2733_v43, %v144_v11 }
 0x408   :  { %v268_v44 = vadd.f32 %v3949_v35, %v215_v12  ;;  %v270_v20 = vadd.f32 %v3955_v22, %v217_v16 }
 0x409   :  { %v566_v4 = vpop.permute.xlu0 %565  ;;  %v271_v47 = vadd.f32 %v2743_v58, %v218_v6 }
 0x40a   :  { %v434_v8 = vpop.permute.xlu1 %433  ;;  %v632_v12 = vmul.f32 %v2724_v48, %v566_v4  ;;  %v402_v24 = vadd.f32 %v370_v21, %v270_v20 }
 0x40b   :  { %2139 = vset.pattern.permute.xlu1 %v3944_v14  ;;  %2143 = vset.pattern.permute.xlu0 %v3944_v14  ;;  %v3951_v14 = vld [vmem:[#allocation55_spill] sm:$0xff]  ;;  %v501_v34 = vmul.f32 %v3956_v50, %v434_v8  ;;  %v634_v50 = vmul.f32 %v2749_v36, %v566_v4 }
 0x40c   :  { %305 = vperm.xlu1 %2139, %v115_v25   ;;  %v369_v60 = vmul.f32 %v3951_v14, %v302_v28  ;;  %v502_v14 = vmul.f32 %v3957_v3, %v434_v8 }
 0x40e   :  { %v534_v16 = vadd.f32 %v502_v14, %v402_v24  ;;  %v635_v24 = vmul.f32 %v2760_v54, %v566_v4 }
 0x410   :  { %2141 = vset.pattern.permute.xlu1 %v3945_v23  ;;  %v269_v23 = vadd.f32 %v3952_v63, %v216_v62  ;;  %v666_v3 = vadd.f32 %v634_v50, %v534_v16 }
 0x411   :  { %569 = vperm.xlu1 %2141, %v115_v25   ;;  %v3953_v25 = vld [vmem:[#allocation53_spill] sm:$0xff] }
 0x412   :  { %v500_v52 = vmul.f32 %v3953_v25, %v434_v8  ;;  %v401_v35 = vadd.f32 %v369_v60, %v269_v23  ;;  %v503_v60 = vmul.f32 %v2753_v55, %v434_v8 }
 0x414   :  { %v533_v63 = vadd.f32 %v501_v34, %v401_v35 }
 0x415   :  { %2142 = vset.pattern.permute.xlu1 %v3946_v40  ;;  %v400_v40 = vadd.f32 %v368_v26, %v268_v44  ;;  %v633_v44 = vmul.f32 %v2738_v42, %v566_v4  ;;  %v371_v26 = vmul.f32 %v2745_v53, %v302_v28 }
 0x417   :  { %v532_v27 = vadd.f32 %v500_v52, %v400_v40  ;;  %v665_v48 = vadd.f32 %v633_v44, %v533_v63  ;;  %v403_v21 = vadd.f32 %v371_v26, %v271_v47 }
 0x419   :  { %v664_v62 = vadd.f32 %v632_v12, %v532_v27  ;;  %v535_v28 = vadd.f32 %v503_v60, %v403_v21  ;;  %v3960_v21 = vld [vmem:[#allocation15_spill] sm:$0xff] }
 0x41b   :  { %v667_v14 = vadd.f32 %v635_v24, %v535_v28  ;;  %v3964_v28 = vld [vmem:[#allocation19_spill] sm:$0xff]  ;;  %v3965_v24 = vld [vmem:[#allocation20_spill] sm:$0xff] }
 0x4a5   :  { %v1471_v52 = vpop.f32.mrf.mxu0  ;;  %v1542_v34 = vpop.f32.mrf.mxu1 }
 0x4a6   :  { %v1547_v40 = vadd.f32 %v1471_v52, %v664_v62  ;;  %v1549_v27 = vadd.f32 %v1542_v34, %v666_v3  ;;  %v3961_v34 = vld [vmem:[#allocation16_spill] sm:$0xff] }
 0x4a7   :  { %v1473_v23 = vpop.f32.mrf.mxu0  ;;  %v1544_v6 = vpop.f32.mrf.mxu1 }
 0x4a8   :  { %v1551_v11 = vmul.f32 0.5, %v1547_v40  ;;  %v1548_v20 = vadd.f32 %v1473_v23, %v665_v48  ;;  %v1550_v12 = vadd.f32 %v1544_v6, %v667_v14  ;;  %v3966_v6 = vld [vmem:[#allocation21_spill] sm:$0xff]  ;;  %v3967_v14 = vld [vmem:[#allocation22_spill] sm:$0xff] }
 0x4aa   :  { %2190 = vtanh.f32 %v1551_v11  ;;  %v1555_v35 = vmul.f32 0.5, %v1548_v20  ;;  %v1560_v63 = vmul.f32 0.5, %v1550_v12  ;;  %v3959_v20 = vld [vmem:[#allocation12_spill] sm:$0xff]  ;;  %v3968_v12 = vld [vmem:[#allocation23_spill] sm:$0xff] }
 0x4ac   :  { %2192 = vtanh.f32 %v1555_v35  ;;  %v3962_v35 = vld [vmem:[#allocation17_spill] sm:$0xff] }
 0x4ad   :  { %2194 = vtanh.f32 %v1549_v27  ;;  %v3963_v27 = vld [vmem:[#allocation18_spill] sm:$0xff] }
 0x4ae   :  { %2196 = vtanh.f32 %v1560_v63  ;;  %v3969_v63 = vld [vmem:[#allocation24_spill] sm:$0xff] }
 0x4b7   :  { %v2191_v62 = vpop.eup %2190 }
 0x4b8   :  { %v1553_v8 = vmul.f32 0.5, %v2191_v62  ;;  %v3970_v62 = vld [vmem:[#allocation25_spill] sm:$0xff] }
 0x4b9   :  { %v2193_v44 = vpop.eup %2192 }
 0x4ba   :  { %v1554_v52 = vadd.f32 0.5, %v1553_v8  ;;  %v1557_v50 = vmul.f32 0.5, %v2193_v44  ;;  %v2195_v47 = vpop.eup %2194  ;;  %v3971_v8 = vld [vmem:[#allocation26_spill] sm:$0xff]  ;;  %v3972_v44 = vld [vmem:[#allocation27_spill] sm:$0xff] }
 0x4bb   :  { %v2197_v4 = vpop.eup %2196 }
 0x4bc   :  { %v1558_v48 = vadd.f32 0.5, %v1557_v50  ;;  %v1565_v3 = vmul.f32 %v2195_v47, %v1554_v52  ;;  %v1562_v40 = vmul.f32 0.5, %v2197_v4  ;;  %v3973_v52 = vld [vmem:[#allocation28_spill] sm:$0xff]  ;;  %v3974_v50 = vld [vmem:[#allocation29_spill] sm:$0xff]  ;;  %v3976_v47 = vld [vmem:[#allocation31_spill] sm:$0xff] }
 0x4bd   :  { %v3979_v4 = vld [vmem:[#allocation34_spill] sm:$0xff] }
 0x4be   :  { %v1564_v26 = vmul.f32 %v1558_v48, %v3185_v1  ;;  %v1563_v60 = vadd.f32 0.5, %v1562_v40  ;;  %v3958_v1 = vld [vmem:[#allocation11_spill] sm:$0xff]  ;;  %v3975_v48 = vld [vmem:[#allocation30_spill] sm:$0xff] }
 0x4bf   :  { %v3980_v40 = vld [vmem:[#allocation35_spill] sm:$0xff] }
 0x4c0   :  { %v3282_v16 = vadd.f32 %v1565_v3, %v1564_v26  ;;  %v3977_v26 = vld [vmem:[#allocation32_spill] sm:$0xff]  ;;  %v3978_v3 = vld [vmem:[#allocation33_spill] sm:$0xff] }
 0x4c2   :  { %2198 = vtanh.f32 %v3282_v16 }
 0x4cf   :  { %v2199_v23 = vpop.eup %2198 }
 0x4d0   :  { %v1568_v11 = vmul.f32 %v2199_v23, %v1563_v60  ;;  %v3981_v60 = vld [vmem:[#allocation36_spill] sm:$0xff]  ;;  %v3982_v23 = vld [vmem:[#allocation37_spill] sm:$0xff] }
 0x4d2   :  { %1641 = vmatmul.mubr.f32.vlgmr.msra.gmra.mxu0 %v1568_v11  ;;  %1712 = vmatmul.mubr.f32.vlgmr.msra.gmra.mxu1 %v1568_v11  ;;  %v3983_v11 = vld [vmem:[#allocation38_spill] sm:$0xff] }
 0x4d3   :  { %1748 = vmatpush1.msra.mxu0 %v2967_v29  ;;  %1819 = vmatpush1.msra.mxu1 %v2970_v30 }
 0x4d4   :  { %1749 = vmatprep.subr.mxu0 %v2973_v41  ;;  %1820 = vmatprep.subr.mxu1 %v2976_v31 }
 0x4d5   :  { %1750 = vmatpush1.msra.mxu0 %v2979_v32  ;;  %1821 = vmatpush1.msra.mxu1 %v2982_v38 }
 0x4d6   :  { %1751 = vmatprep.subr.mxu0 %v2985_v59  ;;  %1822 = vmatprep.subr.mxu1 %v2988_v0 }
 0x4d7   :  { %1752 = vmatpush1.msra.mxu0 %v2991_v51  ;;  %1823 = vmatpush1.msra.mxu1 %v2994_v45 }
 0x4d8   :  { %1753 = vmatprep.subr.mxu0 %v2997_v37  ;;  %1824 = vmatprep.subr.mxu1 %v3000_v57 }
 0x4d9   :  { %1754 = vmatpush1.msra.mxu0 %v3003_v49  ;;  %1825 = vmatpush1.msra.mxu1 %v3006_v2 }
 0x4da   :  { %1755 = vmatprep.subr.mxu0 %v3009_v33  ;;  %1826 = vmatprep.subr.mxu1 %v3012_v46 }
 0x4db   :  { %1756 = vmatpush1.msra.mxu0 %v3015_v56  ;;  %1827 = vmatpush1.msra.mxu1 %v3018_v61 }
 0x4dc   :  { %1757 = vmatprep.subr.mxu0 %v3021_v5  ;;  %1828 = vmatprep.subr.mxu1 %v3024_v7 }
 0x4dd   :  { %1758 = vmatpush1.msra.mxu0 %v3027_v9  ;;  %1829 = vmatpush1.msra.mxu1 %v3030_v10 }
 0x4de   :  { %1759 = vmatprep.subr.mxu0 %v3033_v13  ;;  %1830 = vmatprep.subr.mxu1 %v3036_v15 }
 0x4df   :  { %1760 = vmatpush1.msra.mxu0 %v3039_v39  ;;  %1831 = vmatpush1.msra.mxu1 %v3042_v17 }
 0x4e0   :  { %1761 = vmatprep.subr.mxu0 %v3045_v18  ;;  %1832 = vmatprep.subr.mxu1 %v3048_v19 }
 0x4e1   :  { %1762 = vmatpush1.msra.mxu0 %v3958_v1  ;;  %1833 = vmatpush1.msra.mxu1 %v3959_v20  ;;  %v4009_v20 = vld [vmem:[#allocation60_spill] sm:$0xff] }
 0x4e2   :  { %1763 = vmatprep.subr.mxu0 %v3960_v21  ;;  %1834 = vmatprep.subr.mxu1 %v3961_v34  ;;  %v4008_v21 = vld [vmem:[#allocation59_spill] sm:$0xff] }
 0x4e3   :  { %1764 = vmatpush1.msra.mxu0 %v3962_v35  ;;  %1835 = vmatpush1.msra.mxu1 %v3963_v27  ;;  %v4006_v27 = vld [vmem:[#allocation57_spill] sm:$0xff] }
 0x4e4   :  { %1765 = vmatprep.subr.mxu0 %v3964_v28  ;;  %1836 = vmatprep.subr.mxu1 %v3965_v24  ;;  %v4005_v24 = vld [vmem:[#allocation55_spill] sm:$0xff] }
 0x4e5   :  { %1766 = vmatpush1.msra.mxu0 %v3966_v6  ;;  %1837 = vmatpush1.msra.mxu1 %v3967_v14 }
 0x4e6   :  { %1767 = vmatprep.subr.mxu0 %v3968_v12  ;;  %1838 = vmatprep.subr.mxu1 %v3969_v63  ;;  %v438_v12 = vpop.permute.xlu0 %437 }
 0x4e7   :  { %1768 = vmatpush1.msra.mxu0 %v3970_v62  ;;  %1839 = vmatpush1.msra.mxu1 %v3971_v8  ;;  %v4002_v62 = vld [vmem:[#allocation51_spill] sm:$0xff] }
 0x4e8   :  { %1769 = vmatprep.subr.mxu0 %v3972_v44  ;;  %1840 = vmatprep.subr.mxu1 %v3973_v52  ;;  %v3984_v52 = vld [vmem:[#allocation39_spill] sm:$0xff]  ;;  %v4001_v44 = vld [vmem:[#allocation49_spill] sm:$0xff] }
 0x4e9   :  { %1770 = vmatpush1.msra.mxu0 %v3974_v50  ;;  %1841 = vmatpush1.msra.mxu1 %v3975_v48  ;;  %v3985_v50 = vld [vmem:[#allocation40_spill] sm:$0xff]  ;;  %v3986_v48 = vld [vmem:[#allocation41_spill] sm:$0xff] }
 0x4ea   :  { %1771 = vmatprep.subr.mxu0 %v3976_v47  ;;  %1842 = vmatprep.subr.mxu1 %v3977_v26  ;;  %v3987_v47 = vld [vmem:[#allocation42_spill] sm:$0xff]  ;;  %v3988_v26 = vld [vmem:[#allocation43_spill] sm:$0xff] }
 0x4eb   :  { %1772 = vmatpush1.msra.mxu0 %v3978_v3  ;;  %1843 = vmatpush1.msra.mxu1 %v3979_v4  ;;  %v3989_v3 = vld [vmem:[#allocation44_spill] sm:$0xff]  ;;  %v3990_v4 = vld [vmem:[#allocation45_spill] sm:$0xff] }
 0x4ec   :  { %1773 = vmatprep.subr.mxu0 %v3980_v40  ;;  %1844 = vmatprep.subr.mxu1 %v3981_v60  ;;  %v3991_v40 = vmov 0.0   ;;  %v3992_v60 = vld [vmem:[#allocation46_spill] sm:$0xff] }
 0x4ed   :  { %1774 = vmatpush1.msra.mxu0 %v3982_v23  ;;  %1845 = vmatpush1.msra.mxu1 %v3983_v11  ;;  %v3993_v11 = vld [vmem:[#allocation13_spill] sm:$0xff] }
 0x4ee   :  { %1775 = vmatprep.subr.mxu0 %v3984_v52  ;;  %1846 = vmatprep.subr.mxu1 %v3985_v50  ;;  %v3994_v52 = vld [vmem:[#allocation14_spill] sm:$0xff] }
 0x4ef   :  { %1776 = vmatpush1.msra.mxu0 %v3986_v48  ;;  %1847 = vmatpush1.msra.mxu1 %v3987_v47  ;;  %v116_v47 = vld [vmem:[%s3499_s0 + $0x30] sm:$0xff]  ;;  %v4000_v50 = vld [vmem:[#allocation50_spill] sm:$0xff] }
 0x4f0   :  { %1777 = vmatprep.subr.mxu0 %v3988_v26  ;;  %1848 = vmatprep.subr.mxu1 %v3989_v3  ;;  %v3995_v26 = vmov 2   ;;  %v3996_v3 = vmov 0  }
 0x4f1   :  { %1778 = vmatpush1.msra.mxu0 %v3990_v4  ;;  %1811 = vmatprep.mubr.f32.mxu0 %v3991_v40  ;;  %v3997_v4 = vmov 3  }
 0x4f2   :  { %1849 = vmatpush1.msra.mxu1 %v3992_v60  ;;  %1882 = vmatprep.mubr.f32.mxu1 %v3991_v40  ;;  %v3998_v60 = vmov 1   ;;  %v149_v40 = vpop.permute.xlu1 %148 }
 0x4f3   :  { %1918 = vmatprep.subr.mxu0 %v3993_v11  ;;  %1989 = vmatprep.subr.mxu1 %v3994_v52  ;;  %v3999_v11 = vld [vmem:[#allocation48_spill] sm:$0xff]  ;;  %v220_v23 = vmul.f32 %v4000_v50, %v149_v40  ;;  %v4007_v50 = vld [vmem:[#allocation58_spill] sm:$0xff] }
 0x4f4   :  { %153 = vperm.xlu1 %2142, %v116_v47   ;;  %309 = vperm.xlu0 %2143, %v116_v47   ;;  %v219_v48 = vmul.f32 %v3999_v11, %v149_v40  ;;  %v505_v34 = vmul.f32 %v4007_v50, %v438_v12 }
 0x4f6   :  { %v306_v52 = vpop.permute.xlu1 %305  ;;  %v272_v8 = vadd.f32 %v4001_v44, %v219_v48 }
 0x4f7   :  { %v372_v63 = vmul.f32 %v4002_v62, %v306_v52  ;;  %v374_v35 = vmul.f32 %v4006_v27, %v306_v52  ;;  %v222_v62 = vmul.f32 %v2733_v43, %v149_v40 }
 0x4f8   :  { %2144 = vset.pattern.permute.xlu1 %v3995_v26  ;;  %2146 = vset.pattern.permute.xlu0 %v3996_v3  ;;  %v4003_v26 = vld [vmem:[#allocation52_spill] sm:$0xff]  ;;  %v4004_v3 = vld [vmem:[#allocation54_spill] sm:$0xff] }
 0x4f9   :  { %441 = vperm.xlu1 %2144, %v116_v47   ;;  %v221_v14 = vmul.f32 %v4003_v26, %v149_v40  ;;  %v273_v6 = vadd.f32 %v4004_v3, %v220_v23  ;;  %v506_v23 = vmul.f32 %v4009_v20, %v438_v12 }
 0x4fa   :  { %v570_v28 = vpop.permute.xlu1 %569 }
 0x4fb   :  { %v274_v11 = vadd.f32 %v3955_v22, %v221_v14  ;;  %v636_v26 = vmul.f32 %v4008_v21, %v570_v28  ;;  %v375_v14 = vmul.f32 %v2745_v53, %v306_v52 }
 0x4fd   :  { %2145 = vset.pattern.permute.xlu1 %v3997_v4  ;;  %v373_v4 = vmul.f32 %v4005_v24, %v306_v52  ;;  %v406_v3 = vadd.f32 %v374_v35, %v274_v11 }
 0x4fe   :  { %573 = vperm.xlu1 %2145, %v116_v47   ;;  %v504_v47 = vmul.f32 %v3953_v25, %v438_v12  ;;  %v637_v25 = vmul.f32 %v2738_v42, %v570_v28 }
 0x4ff   :  { %v405_v48 = vadd.f32 %v373_v4, %v273_v6  ;;  %v538_v50 = vadd.f32 %v506_v23, %v406_v3  ;;  %v638_v6 = vmul.f32 %v2749_v36, %v570_v28 }
 0x501   :  { %v537_v24 = vadd.f32 %v505_v34, %v405_v48  ;;  %v670_v11 = vadd.f32 %v638_v6, %v538_v50 }
 0x502   :  { %2147 = vset.pattern.permute.xlu1 %v3998_v60  ;;  %v404_v60 = vadd.f32 %v372_v63, %v272_v8  ;;  %v275_v63 = vadd.f32 %v2743_v58, %v222_v62 }
 0x503   :  { %v669_v4 = vadd.f32 %v637_v25, %v537_v24 }
 0x504   :  { %v536_v44 = vadd.f32 %v504_v47, %v404_v60  ;;  %v507_v47 = vmul.f32 %v2753_v55, %v438_v12  ;;  %v407_v35 = vadd.f32 %v375_v14, %v275_v63 }
 0x506   :  { %v668_v8 = vadd.f32 %v636_v26, %v536_v44  ;;  %v539_v52 = vadd.f32 %v507_v47, %v407_v35  ;;  %v639_v44 = vmul.f32 %v2760_v54, %v570_v28  ;;  %v4040_v35 = vld [vmem:[#allocation44_spill] sm:$0xff] }
 0x508   :  { %v671_v26 = vadd.f32 %v639_v44, %v539_v52  ;;  %v4044_v52 = vmov 2   ;;  %v4045_v44 = vmov 3  }
 0x592   :  { %v1642_v27 = vpop.f32.mrf.mxu0  ;;  %v1713_v34 = vpop.f32.mrf.mxu1 }
 0x593   :  { %v1718_v22 = vadd.f32 %v1642_v27, %v668_v8  ;;  %v1720_v62 = vadd.f32 %v1713_v34, %v670_v11  ;;  %v4041_v34 = vld [vmem:[#allocation45_spill] sm:$0xff]  ;;  %v4042_v11 = vmov 0.0  }
 0x594   :  { %v1644_v40 = vpop.f32.mrf.mxu0  ;;  %v1715_v27 = vpop.f32.mrf.mxu1 }
 0x595   :  { %v1722_v60 = vmul.f32 0.5, %v1718_v22  ;;  %v1719_v20 = vadd.f32 %v1644_v40, %v669_v4  ;;  %v1721_v3 = vadd.f32 %v1715_v27, %v671_v26  ;;  %v154_v27 = vpop.permute.xlu1 %153  ;;  %v4046_v26 = vld [vmem:[#allocation48_spill] sm:$0xff] }
 0x597   :  { %2200 = vtanh.f32 %v1722_v60  ;;  %v1726_v48 = vmul.f32 0.5, %v1719_v20  ;;  %v1731_v25 = vmul.f32 0.5, %v1721_v3  ;;  %v223_v3 = vmul.f32 %v4046_v26, %v154_v27 }
 0x599   :  { %2202 = vtanh.f32 %v1726_v48  ;;  %v4043_v48 = vld [vmem:[#allocation46_spill] sm:$0xff] }
 0x59a   :  { %2204 = vtanh.f32 %v1720_v62  ;;  %v117_v62 = vld [vmem:[%s3499_s0 + $0x38] sm:$0xff]  ;;  %s2346_s0 = smov [#allocation8]  }
 0x59b   :  { %2206 = vtanh.f32 %v1731_v25  ;;  %313 = vperm.xlu1 %2147, %v117_v62   ;;  %158 = vperm.xlu0 %2146, %v117_v62   ;;  %v310_v25 = vpop.permute.xlu0 %309  ;;  %s2094_s25 = sshll.u32 %s2346_s0, 4  ;;  %s2095_s25 = int_to_ptr.vmem [resolvable:$true] %s2094_s25 }
 0x59c   :  { %s2314_s26 = scalar_lea.vmem %s2095_s25, 128  ;;  %p2319_p6 = scmp.lt.s32.totalorder %s2095_s25, %s2095_s25 }
 0x59d   :  { %p2315_p5 = scmp.ne.s32.totalorder %s2095_s25, %s2314_s26  ;;  %p2320_p7 = scmp.lt.s32.totalorder %s2314_s26, %s2314_s26 }
 0x59f   :  { %2148 = vset.pattern.permute.xlu1 %v4044_v52  ;;  %2149 = vset.pattern.permute.xlu0 %v4045_v44  ;;  %p2321_p8 = por %p2320_p7, %p2319_p6 }
 0x5a0   :  { %445 = vperm.xlu1 %2148, %v117_v62   ;;  %577 = vperm.xlu0 %2149, %v117_v62  }
 0x5a1   :  { %p2322_p9 = pnand %p2321_p8, %p2315_p5 }
 0x5a4   :  { %v2201_v24 = vpop.eup %2200 }
 0x5a5   :  { %v1724_v23 = vmul.f32 0.5, %v2201_v24  ;;  %v4047_v24 = vld [vmem:[#allocation50_spill] sm:$0xff] }
 0x5a6   :  { %v2203_v12 = vpop.eup %2202 }
 0x5a7   :  { %v1725_v22 = vadd.f32 0.5, %v1724_v23  ;;  %v1728_v8 = vmul.f32 0.5, %v2203_v12  ;;  %v2205_v14 = vpop.eup %2204  ;;  %v224_v23 = vmul.f32 %v4047_v24, %v154_v27  ;;  %v442_v12 = vpop.permute.xlu1 %441 }
 0x5a8   :  { %v2207_v28 = vpop.eup %2206 }
 0x5a9   :  { %v1729_v63 = vadd.f32 0.5, %v1728_v8  ;;  %v1736_v50 = vmul.f32 %v2205_v14, %v1725_v22  ;;  %v1733_v4 = vmul.f32 0.5, %v2207_v28  ;;  %v4048_v22 = vld [vmem:[#allocation49_spill] sm:$0xff]  ;;  %v4051_v28 = vld [vmem:[#allocation54_spill] sm:$0xff] }
 0x5aa   :  { %v276_v8 = vadd.f32 %v4048_v22, %v223_v3 }
 0x5ab   :  { %v1735_v20 = vmul.f32 %v1729_v63, %v3282_v16  ;;  %v1734_v40 = vadd.f32 0.5, %v1733_v4  ;;  %v4038_v16 = vld [vmem:[#allocation42_spill] sm:$0xff]  ;;  %v4049_v63 = vld [vmem:[#allocation51_spill] sm:$0xff]  ;;  %v277_v4 = vadd.f32 %v4051_v28, %v224_v23 }
 0x5ac   :  { %v376_v14 = vmul.f32 %v4049_v63, %v310_v25 }
 0x5ad   :  { %v3379_v6 = vadd.f32 %v1736_v50, %v1735_v20  ;;  %v4050_v20 = vld [vmem:[#allocation52_spill] sm:$0xff] }
 0x5ae   :  { %v225_v50 = vmul.f32 %v4050_v20, %v154_v27 }
 0x5af   :  { %2208 = vtanh.f32 %v3379_v6 }
 0x5bc   :  { %v2209_v47 = vpop.eup %2208 }
 0x5bd   :  { %v1739_v60 = vmul.f32 %v2209_v47, %v1734_v40  ;;  %v4052_v40 = vld [vmem:[#allocation55_spill] sm:$0xff] }
 0x5be   :  { %v377_v47 = vmul.f32 %v4052_v40, %v310_v25 }
 0x5bf   :  { %1812 = vmatmul.mubr.f32.vlgmr.msra.gmra.mxu0 %v1739_v60  ;;  %1883 = vmatmul.mubr.f32.vlgmr.msra.gmra.mxu1 %v1739_v60  ;;  %v4053_v60 = vld [vmem:[#allocation53_spill] sm:$0xff] }
 0x5c0   :  { %1919 = vmatpush1.msra.mxu0 %v2967_v29  ;;  %1990 = vmatpush1.msra.mxu1 %v2970_v30  ;;  %v4010_v29 = vld [vmem:[#allocation12_spill] sm:$0xff]  ;;  %v4011_v30 = vld [vmem:[#allocation15_spill] sm:$0xff] }
 0x5c1   :  { %1920 = vmatprep.subr.mxu0 %v2973_v41  ;;  %1991 = vmatprep.subr.mxu1 %v2976_v31  ;;  %v4012_v41 = vld [vmem:[#allocation16_spill] sm:$0xff]  ;;  %v4013_v31 = vld [vmem:[#allocation17_spill] sm:$0xff] }
 0x5c2   :  { %1921 = vmatpush1.msra.mxu0 %v2979_v32  ;;  %1992 = vmatpush1.msra.mxu1 %v2982_v38  ;;  %v4014_v32 = vld [vmem:[#allocation18_spill] sm:$0xff]  ;;  %v4015_v38 = vld [vmem:[#allocation19_spill] sm:$0xff] }
 0x5c3   :  { %1922 = vmatprep.subr.mxu0 %v2985_v59  ;;  %1993 = vmatprep.subr.mxu1 %v2988_v0  ;;  %v4016_v59 = vld [vmem:[#allocation20_spill] sm:$0xff]  ;;  %v4017_v0 = vld [vmem:[#allocation21_spill] sm:$0xff] }
 0x5c4   :  { %1923 = vmatpush1.msra.mxu0 %v2991_v51  ;;  %1994 = vmatpush1.msra.mxu1 %v2994_v45  ;;  %v4018_v51 = vld [vmem:[#allocation22_spill] sm:$0xff]  ;;  %v4019_v45 = vld [vmem:[#allocation23_spill] sm:$0xff] }
 0x5c5   :  { %1924 = vmatprep.subr.mxu0 %v2997_v37  ;;  %1995 = vmatprep.subr.mxu1 %v3000_v57  ;;  %v4020_v37 = vld [vmem:[#allocation24_spill] sm:$0xff]  ;;  %v4021_v57 = vld [vmem:[#allocation25_spill] sm:$0xff] }
 0x5c6   :  { %1925 = vmatpush1.msra.mxu0 %v3003_v49  ;;  %1996 = vmatpush1.msra.mxu1 %v3006_v2  ;;  %v4022_v49 = vld [vmem:[#allocation26_spill] sm:$0xff]  ;;  %v4023_v2 = vld [vmem:[#allocation27_spill] sm:$0xff] }
 0x5c7   :  { %1926 = vmatprep.subr.mxu0 %v3009_v33  ;;  %1997 = vmatprep.subr.mxu1 %v3012_v46  ;;  %v4024_v33 = vld [vmem:[#allocation28_spill] sm:$0xff]  ;;  %v4025_v46 = vld [vmem:[#allocation29_spill] sm:$0xff] }
 0x5c8   :  { %1927 = vmatpush1.msra.mxu0 %v3015_v56  ;;  %1998 = vmatpush1.msra.mxu1 %v3018_v61  ;;  %v4026_v56 = vld [vmem:[#allocation30_spill] sm:$0xff]  ;;  %v4027_v61 = vld [vmem:[#allocation31_spill] sm:$0xff] }
 0x5c9   :  { %1928 = vmatprep.subr.mxu0 %v3021_v5  ;;  %1999 = vmatprep.subr.mxu1 %v3024_v7  ;;  %v4028_v5 = vld [vmem:[#allocation32_spill] sm:$0xff]  ;;  %v4029_v7 = vld [vmem:[#allocation33_spill] sm:$0xff] }
 0x5ca   :  { %1929 = vmatpush1.msra.mxu0 %v3027_v9  ;;  %2000 = vmatpush1.msra.mxu1 %v3030_v10  ;;  %v4030_v9 = vld [vmem:[#allocation34_spill] sm:$0xff]  ;;  %v4031_v10 = vld [vmem:[#allocation35_spill] sm:$0xff] }
 0x5cb   :  { %1930 = vmatprep.subr.mxu0 %v3033_v13  ;;  %2001 = vmatprep.subr.mxu1 %v3036_v15  ;;  %v4032_v13 = vld [vmem:[#allocation36_spill] sm:$0xff]  ;;  %v4033_v15 = vld [vmem:[#allocation37_spill] sm:$0xff] }
 0x5cc   :  { %1931 = vmatpush1.msra.mxu0 %v3039_v39  ;;  %2002 = vmatpush1.msra.mxu1 %v3042_v17  ;;  %v4034_v39 = vld [vmem:[#allocation38_spill] sm:$0xff]  ;;  %v4035_v17 = vld [vmem:[#allocation39_spill] sm:$0xff] }
 0x5cd   :  { %1932 = vmatprep.subr.mxu0 %v3045_v18  ;;  %2003 = vmatprep.subr.mxu1 %v3048_v19  ;;  %v4036_v18 = vld [vmem:[#allocation40_spill] sm:$0xff]  ;;  %v4037_v19 = vld [vmem:[#allocation41_spill] sm:$0xff] }
 0x5ce   :  { %1933 = vmatpush1.msra.mxu0 %v3958_v1  ;;  %2004 = vmatpush1.msra.mxu1 %v4010_v29  ;;  %v4039_v1 = vld [vmem:[#allocation43_spill] sm:$0xff]  ;;  %v508_v29 = vmul.f32 %v4053_v60, %v442_v12 }
 0x5cf   :  { %1934 = vmatprep.subr.mxu0 %v4011_v30  ;;  %2005 = vmatprep.subr.mxu1 %v4012_v41  ;;  %v408_v30 = vadd.f32 %v376_v14, %v276_v8  ;;  %v574_v41 = vpop.permute.xlu1 %573 }
 0x5d0   :  { %1935 = vmatpush1.msra.mxu0 %v4013_v31  ;;  %2006 = vmatpush1.msra.mxu1 %v4014_v32  ;;  %v4054_v31 = vld [vmem:[#allocation56_spill] sm:$0xff]  ;;  %v643_v44 = vmul.f32 %v2760_v54, %v574_v41 }
 0x5d1   :  { %1936 = vmatprep.subr.mxu0 %v4015_v38  ;;  %2007 = vmatprep.subr.mxu1 %v4016_v59  ;;  %v278_v32 = vadd.f32 %v4054_v31, %v225_v50  ;;  %v4055_v38 = vld [vmem:[#allocation58_spill] sm:$0xff] }
 0x5d2   :  { %1937 = vmatpush1.msra.mxu0 %v4017_v0  ;;  %2008 = vmatpush1.msra.mxu1 %v4018_v51  ;;  %v509_v59 = vmul.f32 %v4055_v38, %v442_v12  ;;  %v4056_v0 = vld [vmem:[#allocation57_spill] sm:$0xff] }
 0x5d3   :  { %1938 = vmatprep.subr.mxu0 %v4019_v45  ;;  %2009 = vmatprep.subr.mxu1 %v4020_v37  ;;  %v378_v51 = vmul.f32 %v4056_v0, %v310_v25  ;;  %v409_v45 = vadd.f32 %v377_v47, %v277_v4  ;;  %v226_v37 = vmul.f32 %v2733_v43, %v154_v27 }
 0x5d4   :  { %1939 = vmatpush1.msra.mxu0 %v4021_v57  ;;  %2010 = vmatpush1.msra.mxu1 %v4022_v49  ;;  %v540_v57 = vadd.f32 %v508_v29, %v408_v30  ;;  %v640_v49 = vmul.f32 %v4008_v21, %v574_v41 }
 0x5d5   :  { %1940 = vmatprep.subr.mxu0 %v4023_v2  ;;  %2011 = vmatprep.subr.mxu1 %v4024_v33  ;;  %v4057_v2 = vld [vmem:[#allocation60_spill] sm:$0xff] }
 0x5d6   :  { %1941 = vmatpush1.msra.mxu0 %v4025_v46  ;;  %2012 = vmatpush1.msra.mxu1 %v4026_v56  ;;  %v510_v33 = vmul.f32 %v4057_v2, %v442_v12  ;;  %v410_v46 = vadd.f32 %v378_v51, %v278_v32  ;;  %v541_v56 = vadd.f32 %v509_v59, %v409_v45 }
 0x5d7   :  { %1942 = vmatprep.subr.mxu0 %v4027_v61  ;;  %2013 = vmatprep.subr.mxu1 %v4028_v5  ;;  %v641_v61 = vmul.f32 %v2738_v42, %v574_v41  ;;  %v279_v5 = vadd.f32 %v2743_v58, %v226_v37 }
 0x5d8   :  { %1943 = vmatpush1.msra.mxu0 %v4029_v7  ;;  %2014 = vmatpush1.msra.mxu1 %v4030_v9  ;;  %v379_v7 = vmul.f32 %v2745_v53, %v310_v25  ;;  %v672_v9 = vadd.f32 %v640_v49, %v540_v57 }
 0x5d9   :  { %1944 = vmatprep.subr.mxu0 %v4031_v10  ;;  %2015 = vmatprep.subr.mxu1 %v4032_v13 }
 0x5da   :  { %1945 = vmatpush1.msra.mxu0 %v4033_v15  ;;  %2016 = vmatpush1.msra.mxu1 %v4034_v39  ;;  %v542_v15 = vadd.f32 %v510_v33, %v410_v46  ;;  %v642_v39 = vmul.f32 %v2749_v36, %v574_v41 }
 0x5db   :  { %1946 = vmatprep.subr.mxu0 %v4035_v17  ;;  %2017 = vmatprep.subr.mxu1 %v4036_v18  ;;  %v673_v17 = vadd.f32 %v641_v61, %v541_v56 }
 0x5dc   :  { %1947 = vmatpush1.msra.mxu0 %v4037_v19  ;;  %2018 = vmatpush1.msra.mxu1 %v4038_v16  ;;  %v511_v19 = vmul.f32 %v2753_v55, %v442_v12 }
 0x5dd   :  { %1948 = vmatprep.subr.mxu0 %v4039_v1  ;;  %2019 = vmatprep.subr.mxu1 %v4040_v35  ;;  %v411_v35 = vadd.f32 %v379_v7, %v279_v5 }
 0x5de   :  { %1949 = vmatpush1.msra.mxu0 %v4041_v34  ;;  %1982 = vmatprep.mubr.f32.mxu0 %v4042_v11 }
 0x5df   :  { %2020 = vmatpush1.msra.mxu1 %v4043_v48  ;;  %2053 = vmatprep.mubr.f32.mxu1 %v4042_v11  ;;  %v674_v11 = vadd.f32 %v642_v39, %v542_v15  ;;  %v543_v52 = vadd.f32 %v511_v19, %v411_v35 }
 0x5e1   :  { %v675_v3 = vadd.f32 %v643_v44, %v543_v52 }
 0x616   :  { %v159_v49 = vpop.permute.xlu0 %158  ;;  %v314_v33 = vpop.permute.xlu1 %313 }
 0x617   :  { %v227_v46 = vmul.f32 %v4046_v26, %v159_v49  ;;  %v380_v56 = vmul.f32 %v4049_v63, %v314_v33  ;;  %v229_v7 = vmul.f32 %v4050_v20, %v159_v49  ;;  %v230_v20 = vmul.f32 %v2733_v43, %v159_v49 }
 0x619   :  { %v280_v61 = vadd.f32 %v4048_v22, %v227_v46  ;;  %v282_v26 = vadd.f32 %v4054_v31, %v229_v7 }
 0x61b   :  { %v446_v5 = vpop.permute.xlu1 %445  ;;  %v412_v15 = vadd.f32 %v380_v56, %v280_v61  ;;  %v578_v39 = vpop.permute.xlu0 %577 }
 0x61c   :  { %v513_v63 = vmul.f32 %v4055_v38, %v446_v5  ;;  %v646_v31 = vmul.f32 %v2749_v36, %v578_v39 }
 0x67f   :  { %v1813_v10 = vpop.f32.mrf.mxu0  ;;  %v1884_v34 = vpop.f32.mrf.mxu1 }
 0x680   :  { %v1889_v13 = vadd.f32 %v1813_v10, %v672_v9  ;;  %v1891_v62 = vadd.f32 %v1884_v34, %v674_v11  ;;  %v381_v9 = vmul.f32 %v4052_v40, %v314_v33  ;;  %v514_v40 = vmul.f32 %v4057_v2, %v446_v5 }
 0x681   :  { %v1815_v18 = vpop.f32.mrf.mxu0  ;;  %v1886_v27 = vpop.f32.mrf.mxu1  ;;  %v515_v11 = vmul.f32 %v2753_v55, %v446_v5 }
 0x682   :  { %v1893_v16 = vmul.f32 0.5, %v1889_v13  ;;  %v1890_v1 = vadd.f32 %v1815_v18, %v673_v17  ;;  %v1892_v25 = vadd.f32 %v1886_v27, %v675_v3  ;;  %v512_v13 = vmul.f32 %v4053_v60, %v446_v5 }
 0x683   :  { %v382_v17 = vmul.f32 %v4056_v0, %v314_v33  ;;  %v283_v0 = vadd.f32 %v2743_v58, %v230_v20 }
 0x684   :  { %2210 = vtanh.f32 %v1893_v16  ;;  %v1897_v48 = vmul.f32 0.5, %v1890_v1  ;;  %v1902_v23 = vmul.f32 0.5, %v1892_v25  ;;  %v544_v22 = vadd.f32 %v512_v13, %v412_v15 }
 0x685   :  { %v414_v19 = vadd.f32 %v382_v17, %v282_v26  ;;  %v383_v1 = vmul.f32 %v2745_v53, %v314_v33  ;;  %v647_v53 = vmul.f32 %v2760_v54, %v578_v39 }
 0x686   :  { %2212 = vtanh.f32 %v1897_v48 }
 0x687   :  { %2214 = vtanh.f32 %v1891_v62  ;;  %v546_v38 = vadd.f32 %v514_v40, %v414_v19  ;;  %v415_v52 = vadd.f32 %v383_v1, %v283_v0 }
 0x688   :  { %2216 = vtanh.f32 %v1902_v23 }
 0x689   :  { %v678_v2 = vadd.f32 %v646_v31, %v546_v38  ;;  %v547_v58 = vadd.f32 %v515_v11, %v415_v52 }
 0x68b   :  { %v679_v3 = vadd.f32 %v647_v53, %v547_v58 }
 0x691   :  { %v2211_v8 = vpop.eup %2210 }
 0x692   :  { %v1895_v14 = vmul.f32 0.5, %v2211_v8 }
 0x693   :  { %v2213_v12 = vpop.eup %2212 }
 0x694   :  { %v1896_v50 = vadd.f32 0.5, %v1895_v14  ;;  %v1899_v4 = vmul.f32 0.5, %v2213_v12  ;;  %v2215_v29 = vpop.eup %2214 }
 0x695   :  { %v2217_v41 = vpop.eup %2216 }
 0x696   :  { %v1900_v47 = vadd.f32 0.5, %v1899_v4  ;;  %v1907_v32 = vmul.f32 %v2215_v29, %v1896_v50  ;;  %v1904_v51 = vmul.f32 0.5, %v2217_v41 }
 0x698   :  { %v1906_v30 = vmul.f32 %v1900_v47, %v3379_v6  ;;  %v1905_v45 = vadd.f32 0.5, %v1904_v51  ;;  %v228_v6 = vmul.f32 %v4047_v24, %v159_v49  ;;  %v644_v24 = vmul.f32 %v4008_v21, %v578_v39 }
 0x69a   :  { %v3472_v59 = vadd.f32 %v1907_v32, %v1906_v30  ;;  %v281_v10 = vadd.f32 %v4051_v28, %v228_v6  ;;  %v645_v28 = vmul.f32 %v2738_v42, %v578_v39  ;;  %v676_v60 = vadd.f32 %v644_v24, %v544_v22 }
 0x69c   :  { %2218 = vtanh.f32 %v3472_v59  ;;  %v413_v18 = vadd.f32 %v381_v9, %v281_v10 }
 0x69e   :  { %v545_v16 = vadd.f32 %v513_v63, %v413_v18 }
 0x6a0   :  { %v677_v34 = vadd.f32 %v645_v28, %v545_v16 }
 0x6a9   :  { %v2219_v37 = vpop.eup %2218 }
 0x6aa   :  { %v1910_v57 = vmul.f32 %v2219_v37, %v1905_v45 }
 0x6ac   :  { %1983 = vmatmul.mubr.f32.vlgmr.msra.gmra.mxu0 %v1910_v57  ;;  %2054 = vmatmul.mubr.f32.vlgmr.msra.gmra.mxu1 %v1910_v57 }
 0x76c   :  { %v1984_v35 = vpop.f32.mrf.mxu0  ;;  %v2055_v42 = vpop.f32.mrf.mxu1 }
 0x76d   :  { %v2060_v21 = vadd.f32 %v1984_v35, %v676_v60  ;;  %v2062_v27 = vadd.f32 %v2055_v42, %v678_v2 }
 0x76e   :  { %v1986_v43 = vpop.f32.mrf.mxu0  ;;  %v2057_v36 = vpop.f32.mrf.mxu1 }
 0x76f   :  { %v2064_v48 = vmul.f32 0.5, %v2060_v21  ;;  %v2061_v62 = vadd.f32 %v1986_v43, %v677_v34  ;;  %v2063_v25 = vadd.f32 %v2057_v36, %v679_v3 }
 0x771   :  { %2220 = vtanh.f32 %v2064_v48  ;;  %v2068_v44 = vmul.f32 0.5, %v2061_v62  ;;  %v2073_v23 = vmul.f32 0.5, %v2063_v25 }
 0x773   :  { %2222 = vtanh.f32 %v2068_v44 }
 0x774   :  { %2224 = vtanh.f32 %v2062_v27 }
 0x775   :  { %2226 = vtanh.f32 %v2073_v23 }
 0x77e   :  { %v2221_v8 = vpop.eup %2220 }
 0x77f   :  { %v2066_v55 = vmul.f32 0.5, %v2221_v8 }
 0x780   :  { %v2223_v14 = vpop.eup %2222 }
 0x781   :  { %v2067_v12 = vadd.f32 0.5, %v2066_v55  ;;  %v2070_v50 = vmul.f32 0.5, %v2223_v14  ;;  %v2225_v47 = vpop.eup %2224 }
 0x782   :  { %v2227_v32 = vpop.eup %2226 }
 0x783   :  { %v2071_v4 = vadd.f32 0.5, %v2070_v50  ;;  %v2078_v30 = vmul.f32 %v2225_v47, %v2067_v12  ;;  %v2075_v41 = vmul.f32 0.5, %v2227_v32 }
 0x785   :  { %v2077_v29 = vmul.f32 %v2071_v4, %v3472_v59  ;;  %v2076_v51 = vadd.f32 0.5, %v2075_v41 }
 0x787   :  { %v2079_v54 = vadd.f32 %v2078_v30, %v2077_v29 }
 0x789   :  { %2228 = vtanh.f32 %v2079_v54 }
 0x796   :  { %v2229_v45 = vpop.eup %2228 }
 0x797   :  { %v2081_v37 = vmul.f32 %v2229_v45, %v2076_v51 }
 0x799   :  { %2087 = vst [vmem:[#allocation8] sm:$0xff] %v2081_v37 }
 0x79a   :  { %2325 = shalt.err (!%p2322_p9)
}
 0x79b   :  { %2097 = dma.vmem_to_hbm [thread:$0]  %s2095_s25, 128, %s3505_s6, [#allocation7]  }
 0x79c   :  { %2336 = dma.done.wait [#allocation7], 128  }
 0x79d   :  { %2337 = vsyncadd [#allocation7], 4294967168 }
 0x79e   :  { %2101 = vsyncpa [#allocation6], 1 }
 0x79f   :  { %2102 = vsyncpa [#allocation7], 1 }

</bundles_post_ra>
